<compile_context>
chip_gen: v7x
topology: tpu7x:2x2x1
jax: 0.10.0
libtpu: 0.0.40
codegen_flags: <defaults>
</compile_context>

<pallas_src>
import functools

import jax
import jax.numpy as jnp
from jax import lax
from jax.experimental import pallas as pl
from jax.experimental.pallas import tpu as pltpu

# ----------------------------- config ----------------------------------------
EMBED_DIM = 64                 # base_cfg['embed_dim'] -> heads = 64 // 64 = 1
NUM_HEADS = EMBED_DIM // 64
HEAD_DIM = EMBED_DIM // NUM_HEADS
CMT_DEPTH = 2                  # args.cmt_depth
VOCAB_SIZE = 512               # args.vocab_size
TEMPERATURE = 0.02             # args.temperature -> logit_scale = 50.0
IMG_K_RATIO = 0.2
TEXT_K_RATIO = 0.2
MLM_LOSS_WEIGHT = 1.0

B = 2                          # batch
L_TXT = 8                      # caption length
N_IMG = 17                     # num_x * num_y + 1 image tokens (4*4 patches + CLS)
LN_EPS = 1e-5

# packed bf16 weight stack [5, D, 4D]: [cross_attn, blk0_attn, blk1_attn, blk0_fc, blk1_fc]
XATTN = 0
def _ATTN(i): return 1 + i
def _FC(i): return 1 + CMT_DEPTH + i


def _bias_layout():
    """Row layout of the packed f32 bias/LN slab [n_rows, max_width]."""
    D = EMBED_DIM
    layout = [('ln_pre_t_g', D), ('ln_pre_t_b', D),
              ('ln_pre_i_g', D), ('ln_pre_i_b', D),
              ('ln_post_g', D), ('ln_post_b', D),
              ('xattn_bqkv', 3 * D), ('xattn_bo', D)]
    for i in range(CMT_DEPTH):
        layout += [(f'blk{i}_ln1_g', D), (f'blk{i}_ln1_b', D),
                   (f'blk{i}_bqkv', 3 * D), (f'blk{i}_bo', D),
                   (f'blk{i}_ln2_g', D), (f'blk{i}_ln2_b', D),
                   (f'blk{i}_fc_b', 4 * D), (f'blk{i}_proj_b', D)]
    layout += [('mlm_dense_b', D), ('mlm_ln_g', D), ('mlm_ln_b', D),
               ('mlm_fc_b', VOCAB_SIZE)]
    width = max(w for _, w in layout)
    index = {name: (r, w) for r, (name, w) in enumerate(layout)}
    return layout, index, width


# ---------------- in-kernel helpers (operate on loaded values) ----------------
def _ln(x, g, b):
    x = x.astype(jnp.float32)
    mu = jnp.mean(x, axis=-1, keepdims=True)
    xc = x - mu
    var = jnp.mean(xc * xc, axis=-1, keepdims=True)
    return xc * lax.rsqrt(var + LN_EPS) * g + b


def _quickgelu(y):                         # CLIP QuickGELU: x * sigmoid(1.702 x)
    return y * jax.nn.sigmoid(1.702 * y)


def _softmax_lastdim(s):
    s = s - jnp.max(s, axis=-1, keepdims=True)
    p = jnp.exp(s)
    return p * pl.reciprocal(jnp.sum(p, axis=-1, keepdims=True), approx=True)


def _mm(x, w_bf16):
    """2-D [M,K] @ [K,N]: bf16 MXU inputs, f32 accumulation."""
    return jnp.dot(x.astype(jnp.bfloat16), w_bf16,
                   preferred_element_type=jnp.float32)


def _sdpa(q, k, v):
    """[B,Lq,dh] x [B,Lk,dh] -> [B,Lq,dh]; 1/sqrt(dh) pre-folded into q."""
    s = jnp.einsum('bqd,bkd->bqk', q.astype(jnp.bfloat16), k.astype(jnp.bfloat16),
                   preferred_element_type=jnp.float32)
    p = _softmax_lastdim(s)
    return jnp.einsum('bqk,bkd->bqd', p.astype(jnp.bfloat16), v.astype(jnp.bfloat16),
                      preferred_element_type=jnp.float32)


def _self_attn(x2, aw, bqkv, bo):
    """nn.MultiheadAttention self-attention on a flattened [B*L, D] sequence.
    aw is the packed [D, 4D] bf16 weight (q|k|v|o), loaded once at this call."""
    D, dh = EMBED_DIM, HEAD_DIM
    Lq = x2.shape[0] // B
    qkv = _mm(x2, aw[:, 0:3 * D]) + bqkv               # [B*Lq, 3D] single matmul
    out = bo
    for h in range(NUM_HEADS):                          # static loop (H == 1 here)
        q = qkv[:, h * dh:(h + 1) * dh].reshape(B, Lq, dh)
        k = qkv[:, D + h * dh:D + (h + 1) * dh].reshape(B, Lq, dh)
        v = qkv[:, 2 * D + h * dh:2 * D + (h + 1) * dh].reshape(B, Lq, dh)
        ctx = _sdpa(q, k, v).reshape(B * Lq, dh)
        out = out + _mm(ctx, aw[h * dh:(h + 1) * dh, 3 * D:4 * D])
    return out


def _cross_attn(q2, kv3, aw, bqkv, bo):
    """Cross attention: text query [B*Lq, D] over image keys/values [B, Lk, D]."""
    D, dh = EMBED_DIM, HEAD_DIM
    Lq = q2.shape[0] // B
    qp = _mm(q2, aw[:, 0:D]) + bqkv[:, 0:D]             # [B*Lq, D]
    kvp = jnp.einsum('bld,de->ble', kv3.astype(jnp.bfloat16), aw[:, D:3 * D],
                     preferred_element_type=jnp.float32) + bqkv[:, D:3 * D]  # [B,Lk,2D]
    out = bo
    for h in range(NUM_HEADS):
        q = qp[:, h * dh:(h + 1) * dh].reshape(B, Lq, dh)
        k = kvp[:, :, h * dh:(h + 1) * dh]
        v = kvp[:, :, D + h * dh:D + (h + 1) * dh]
        ctx = _sdpa(q, k, v).reshape(B * Lq, dh)
        out = out + _mm(ctx, aw[h * dh:(h + 1) * dh, 3 * D:4 * D])
    return out


def _resblock(x2, i, wstack_ref, projw_ref, bias):
    # CLIP ResidualAttentionBlock: x += attn(ln_1(x)); x += mlp(ln_2(x))
    h = _ln(x2, bias(f'blk{i}_ln1_g'), bias(f'blk{i}_ln1_b'))
    x2 = x2 + _self_attn(h, wstack_ref[_ATTN(i)],
                         bias(f'blk{i}_bqkv'), bias(f'blk{i}_bo'))
    h = _ln(x2, bias(f'blk{i}_ln2_g'), bias(f'blk{i}_ln2_b'))
    h = _quickgelu(_mm(h, wstack_ref[_FC(i)]) + bias(f'blk{i}_fc_b'))
    h = _mm(h, projw_ref[i]) + bias(f'blk{i}_proj_b')
    return x2 + h


# ----------------------------- the fused kernel -------------------------------
def _fused_kernel(vg_ref, tg_ref, scale_ref, mlm_ref, img_ref, lbl_ref,
                  bias_ref, wstack_ref, projw_ref, mlmw_ref, out_ref,
                  *, bias_index):
    D = EMBED_DIM

    def bias(name):
        r, w = bias_index[name]
        return bias_ref[r:r + 1, :w]                 # (1, w) f32, loaded at use

    # ---- ITC (objectives.compute_itc): symmetric InfoNCE, labels = arange(B) --
    v = vg_ref[...]
    t = tg_ref[...]
    vn = v * lax.rsqrt(jnp.sum(v * v, axis=-1, keepdims=True))
    tn = t * lax.rsqrt(jnp.sum(t * t, axis=-1, keepdims=True))
    sim = scale_ref[0, 0] * lax.dot_general(
        vn, tn, (((1,), (1,)), ((), ())), preferred_element_type=jnp.float32)  # [B,B]
    r_i = lax.broadcasted_iota(jnp.int32, sim.shape, 0)
    c_i = lax.broadcasted_iota(jnp.int32, sim.shape, 1)
    eye = r_i == c_i
    m1 = jnp.max(sim, axis=1, keepdims=True)
    lse_i = m1 + jnp.log(jnp.sum(jnp.exp(sim - m1), axis=1, keepdims=True))
    m0 = jnp.max(sim, axis=0, keepdims=True)
    lse_t = m0 + jnp.log(jnp.sum(jnp.exp(sim - m0), axis=0, keepdims=True))
    diag_c = jnp.sum(jnp.where(eye, sim, 0.0), axis=1, keepdims=True)
    diag_r = jnp.sum(jnp.where(eye, sim, 0.0), axis=0, keepdims=True)
    itc = 0.5 * (jnp.mean(lse_i - diag_c) + jnp.mean(lse_t - diag_r))

    # ---- cross_former: pre-LNs -> cross-MHA -> resblocks -> post-LN ----------
    # torch permutes to (L, B, D) and back; attention over the sequence axis is
    # layout-invariant, so the text path stays a flattened 2-D [B*L, D] matrix.
    q2 = _ln(mlm_ref[...], bias('ln_pre_t_g'), bias('ln_pre_t_b'))     # [B*L, D]
    kv3 = _ln(img_ref[...], bias('ln_pre_i_g'), bias('ln_pre_i_b'))    # [B, N, D]
    x2 = _cross_attn(q2, kv3, wstack_ref[XATTN],
                     bias('xattn_bqkv'), bias('xattn_bo'))
    for i in range(CMT_DEPTH):
        x2 = _resblock(x2, i, wstack_ref, projw_ref, bias)
    x2 = _ln(x2, bias('ln_post_g'), bias('ln_post_b'))

    # ---- mlm_head: dense -> QuickGELU -> LN -> fc(vocab) ---------------------
    h = _quickgelu(_mm(x2, mlmw_ref[:, VOCAB_SIZE:VOCAB_SIZE + D])
                   + bias('mlm_dense_b'))
    h = _ln(h, bias('mlm_ln_g'), bias('mlm_ln_b'))
    scores = _mm(h, mlmw_ref[:, 0:VOCAB_SIZE]) + bias('mlm_fc_b')      # [B*L, V]

    # ---- MLM cross-entropy (ignore_index=0) + accuracy, fused vocab passes ---
    labels = lbl_ref[...]                                              # [B*L, 1]
    m = jnp.max(scores, axis=-1, keepdims=True)
    lse = m + jnp.log(jnp.sum(jnp.exp(scores - m), axis=-1, keepdims=True))
    vcol = lax.broadcasted_iota(jnp.int32, scores.shape, 1)
    hit = vcol == labels                                               # reused mask
    picked = jnp.sum(jnp.where(hit, scores, 0.0), axis=-1, keepdims=True)
    validf = (labels != 0).astype(jnp.float32)
    denom = jnp.maximum(jnp.sum(validf), 1.0)
    mlm_loss = jnp.sum((lse - picked) * validf) / denom
    # torch scores.max(1)[1] == first index attaining the max (reuses m)
    argmax_first = jnp.min(jnp.where(scores == m, vcol, VOCAB_SIZE),
                           axis=-1, keepdims=True)
    correct = (argmax_first == labels).astype(jnp.float32) * validf
    mlm_acc = jnp.sum(correct) / denom

    # ---- single lane-packed scalar output: lanes 0/1/2 = itc/loss/acc --------
    lane = lax.broadcasted_iota(jnp.int32, (1, 128), 1)
    out_ref[...] = (jnp.where(lane == 0, itc, 0.0)
                    + jnp.where(lane == 1, mlm_loss, 0.0)
                    + jnp.where(lane == 2, mlm_acc, 0.0))


def make_fused_call(bias_index):
    kernel = functools.partial(_fused_kernel, bias_index=bias_index)
    vmem = pl.BlockSpec(memory_space=pltpu.MemorySpace.VMEM)
    smem = pl.BlockSpec(memory_space=pltpu.MemorySpace.SMEM)
    return pl.pallas_call(
        kernel,
        out_shape=jax.ShapeDtypeStruct((1, 128), jnp.float32),
        in_specs=[vmem, vmem, smem,            # Vg, Tg, logit_scale
                  vmem, vmem, vmem,            # mlm_feats, image_feats, labels
                  vmem, vmem, vmem, vmem],     # bias_slab, wstack, projw, mlmw
        out_specs=vmem)


# ----------------------------- forward (host glue) -----------------------------
def ciraf_forward(batch, tok_embed, logit_scale, packed, fused_call):
    image_feats = batch['image_feats']          # [B, N_IMG, D]
    image_score = batch['image_score']          # [B, N_IMG, N_IMG] (last layer)
    text_feats = batch['text_feats']            # [B, L, D]
    text_score = batch['text_score']            # [B, L, L]         (last layer)
    caption_ids = batch['caption_ids']          # [B, L] int32
    mlm_ids = batch['mlm_ids']                  # [B, L] int32
    mlm_labels = batch['mlm_labels']            # [B, L] int32

    Bb, L, Dd = text_feats.shape
    eot = jnp.argmax(caption_ids, axis=-1)
    Tg = text_feats[jnp.arange(Bb), eot]        # [B, D]
    Vg = image_feats[:, 0, :]                   # [B, D] (torch .half(); kept f32)

    # select_image_feats: top-K image tokens by CLS attention score (host glue).
    cls_score = image_score[:, 0, :]
    img_K = int(image_feats.shape[1] * IMG_K_RATIO)
    _, idx = lax.top_k(cls_score, img_K)
    image_feats_selected = jnp.take_along_axis(image_feats, idx[:, :, None], axis=1)

    # text-score masking / text_K preamble (computed unconditionally in forward()).
    t_score = text_score[jnp.arange(Bb), eot]
    score_mask = jnp.concatenate(
        [jnp.zeros((Bb, 1), jnp.float32), jnp.ones((Bb, L - 1), jnp.float32)], axis=1)
    score_mask = score_mask.at[jnp.arange(Bb), eot].set(0.0)
    t_score = t_score * score_mask
    text_K = jnp.round((eot + 1) * TEXT_K_RATIO).astype(jnp.int32)
    # TODO(synk): per-sample variable-length top-k (textmlm_id) feeds only the
    #             untranslated 'amlm' masking path; omitted.
    del image_feats_selected, t_score, text_K

    mlm_feats = tok_embed[mlm_ids].reshape(Bb * L, Dd)    # stub of encode_text
    labels2 = mlm_labels.reshape(Bb * L, 1).astype(jnp.int32)
    scale2d = jnp.reshape(jnp.asarray(logit_scale, jnp.float32), (1, 1))

    out = fused_call(Vg, Tg, scale2d, mlm_feats, image_feats, labels2,
                     packed['bias_slab'], packed['wstack'],
                     packed['projw'], packed['mlmw'])
    return dict(
        itc_loss=out[0, 0],
        mlm_loss=out[0, 1] * MLM_LOSS_WEIGHT,
        mlm_acc=out[0, 2],
        temperature=1.0 / jnp.asarray(logit_scale, jnp.float32),
    )


def build_forward(bias_index):
    fused_call = make_fused_call(bias_index)

    @jax.jit
    def fwd(batch, tok_embed, logit_scale, packed):
        return ciraf_forward(batch, tok_embed, logit_scale, packed, fused_call)

    return fwd


# ----------------------------- parameter init / prep ---------------------------
def init_params(key):
    D, layers, vocab = EMBED_DIM, CMT_DEPTH, VOCAB_SIZE
    scale = D ** -0.5
    proj_std = scale * (2 * layers) ** -0.5
    attn_std = scale
    fc_std = (2 * D) ** -0.5
    keys = iter(jax.random.split(key, 32))

    def nrm(shape, std):
        return jax.random.normal(next(keys), shape, jnp.float32) * std

    def attn_params():
        return dict(wq=nrm((D, D), attn_std), wk=nrm((D, D), attn_std),
                    wv=nrm((D, D), attn_std), wo=nrm((D, D), proj_std),
                    bq=jnp.zeros((1, D), jnp.float32), bk=jnp.zeros((1, D), jnp.float32),
                    bv=jnp.zeros((1, D), jnp.float32), bo=jnp.zeros((1, D), jnp.float32))

    blocks = []
    for _ in range(layers):
        blocks.append(dict(
            ln1_g=jnp.ones((1, D), jnp.float32), ln1_b=jnp.zeros((1, D), jnp.float32),
            attn=attn_params(),
            ln2_g=jnp.ones((1, D), jnp.float32), ln2_b=jnp.zeros((1, D), jnp.float32),
            fc_w=nrm((D, 4 * D), fc_std), fc_b=jnp.zeros((1, 4 * D), jnp.float32),
            proj_w=nrm((4 * D, D), proj_std), proj_b=jnp.zeros((1, D), jnp.float32)))

    return dict(
        cross_attn=attn_params(),
        blocks=blocks,
        ln_pre_t_g=jnp.ones((1, D), jnp.float32), ln_pre_t_b=jnp.zeros((1, D), jnp.float32),
        ln_pre_i_g=jnp.ones((1, D), jnp.float32), ln_pre_i_b=jnp.zeros((1, D), jnp.float32),
        ln_post_g=jnp.ones((1, D), jnp.float32), ln_post_b=jnp.zeros((1, D), jnp.float32),
        mlm_head=dict(
            dense_w=nrm((D, D), fc_std), dense_b=jnp.zeros((1, D), jnp.float32),
            ln_g=jnp.ones((1, D), jnp.float32), ln_b=jnp.zeros((1, D), jnp.float32),
            fc_w=nrm((D, vocab), proj_std), fc_b=jnp.zeros((1, vocab), jnp.float32)),
        tok_embed=nrm((vocab, D), 0.02),
        logit_scale=jnp.float32(1.0 / TEMPERATURE),
    )


def prepare_fused_params(params):
    """Pack weights into 4 DMA-friendly slabs:
       * bias_slab f32 [n_rows, 512]: all LN gains/biases and attention/mlp biases
       * wstack   bf16 [5, D, 4D]  : [wq*1/sqrt(dh) | wk | wv | wo] for the 3
                                     attentions followed by the 2 MLP fc weights
       * projw    bf16 [2, 4D, D]  : MLP projection weights
       * mlmw     bf16 [D, V+D]    : mlm fc (vocab) || mlm dense"""
    D, dh = EMBED_DIM, HEAD_DIM
    layout, index, width = _bias_layout()
    sc = dh ** -0.5

    def pack_attn_w(a):
        return jnp.concatenate([a['wq'] * sc, a['wk'], a['wv'], a['wo']], axis=1)

    def pack_attn_b(a):
        return jnp.concatenate([a['bq'] * sc, a['bk'], a['bv']], axis=1)

    mh = params['mlm_head']
    bias_vals = {
        'ln_pre_t_g': params['ln_pre_t_g'], 'ln_pre_t_b': params['ln_pre_t_b'],
        'ln_pre_i_g': params['ln_pre_i_g'], 'ln_pre_i_b': params['ln_pre_i_b'],
        'ln_post_g': params['ln_post_g'], 'ln_post_b': params['ln_post_b'],
        'xattn_bqkv': pack_attn_b(params['cross_attn']),
        'xattn_bo': params['cross_attn']['bo'],
        'mlm_dense_b': mh['dense_b'], 'mlm_ln_g': mh['ln_g'],
        'mlm_ln_b': mh['ln_b'], 'mlm_fc_b': mh['fc_b'],
    }
    for i, blk in enumerate(params['blocks']):
        bias_vals.update({
            f'blk{i}_ln1_g': blk['ln1_g'], f'blk{i}_ln1_b': blk['ln1_b'],
            f'blk{i}_bqkv': pack_attn_b(blk['attn']), f'blk{i}_bo': blk['attn']['bo'],
            f'blk{i}_ln2_g': blk['ln2_g'], f'blk{i}_ln2_b': blk['ln2_b'],
            f'blk{i}_fc_b': blk['fc_b'], f'blk{i}_proj_b': blk['proj_b'],
        })
    slab = jnp.zeros((len(layout), width), jnp.float32)
    for r, (name, w) in enumerate(layout):
        slab = slab.at[r, :w].set(jnp.reshape(bias_vals[name], (-1,)))

    wstack = jnp.stack(
        [pack_attn_w(params['cross_attn'])]
        + [pack_attn_w(b['attn']) for b in params['blocks']]
        + [b['fc_w'] for b in params['blocks']],
        axis=0).astype(jnp.bfloat16)                                   # [5, D, 4D]
    projw = jnp.stack([b['proj_w'] for b in params['blocks']],
                      axis=0).astype(jnp.bfloat16)                     # [2, 4D, D]
    mlmw = jnp.concatenate([mh['fc_w'], mh['dense_w']],
                           axis=1).astype(jnp.bfloat16)                # [D, V+D]
    return dict(bias_slab=slab, wstack=wstack, projw=projw, mlmw=mlmw), index


# ----------------------------- main --------------------------------------------
if __name__ == "__main__":
    key = jax.random.PRNGKey(0)
    k_par, k_img, k_is, k_txt, k_ts, k_mlm = jax.random.split(key, 6)
    params = init_params(k_par)
    packed, bias_index = prepare_fused_params(params)
    fwd = build_forward(bias_index)

    batch = dict(
        image_feats=jax.random.normal(k_img, (B, N_IMG, EMBED_DIM), jnp.float32),
        image_score=jax.random.normal(k_is, (B, N_IMG, N_IMG), jnp.float32),
        text_feats=jax.random.normal(k_txt, (B, L_TXT, EMBED_DIM), jnp.float32),
        text_score=jax.random.normal(k_ts, (B, L_TXT, L_TXT), jnp.float32),
        caption_ids=jnp.array([[400, 12, 34, 56, 78, 401, 0, 0],
                               [400, 5, 9, 401, 0, 0, 0, 0]], dtype=jnp.int32),
        mlm_ids=jax.random.randint(k_mlm, (B, L_TXT), 1, VOCAB_SIZE).astype(jnp.int32),
        mlm_labels=jnp.array([[0, 12, 0, 56, 0, 0, 0, 0],
                              [0, 0, 9, 0, 0, 0, 0, 0]], dtype=jnp.int32),
    )

    ret = fwd(batch, params['tok_embed'], params['logit_scale'], packed)
    jax.block_until_ready(ret)
    print("KERNEL_OK")
</pallas_src>

<mosaic_0001>
module attributes {stable_mosaic.version = 11 : i64} {
  func.func @_fused_kernel(%arg0: memref<2x64xf32, #tpu.memory_space<vmem>>, %arg1: memref<2x64xf32, #tpu.memory_space<vmem>>, %arg2: memref<1x1xf32, #tpu.memory_space<smem>>, %arg3: memref<16x64xf32, #tpu.memory_space<vmem>>, %arg4: memref<2x17x64xf32, #tpu.memory_space<vmem>>, %arg5: memref<16x1xi32, #tpu.memory_space<vmem>>, %arg6: memref<28x512xf32, #tpu.memory_space<vmem>>, %arg7: memref<5x64x256xbf16, #tpu.memory_space<vmem>>, %arg8: memref<2x256x64xbf16, #tpu.memory_space<vmem>>, %arg9: memref<64x576xbf16, #tpu.memory_space<vmem>>, %arg10: memref<1x128xf32, #tpu.memory_space<vmem>>) attributes {dimension_semantics = [], scalar_prefetch = 0 : i64, scratch_operands = 0 : i64, tpu.core_type = #tpu.core_type<tc>} {
    %c0 = arith.constant 0 : index
    %c0_0 = arith.constant 0 : index
    %0 = vector.load %arg0[%c0, %c0_0] : memref<2x64xf32, #tpu.memory_space<vmem>>, vector<2x64xf32>
    %c0_1 = arith.constant 0 : index
    %c0_2 = arith.constant 0 : index
    %1 = vector.load %arg1[%c0_1, %c0_2] : memref<2x64xf32, #tpu.memory_space<vmem>>, vector<2x64xf32>
    %2 = arith.mulf %0, %0 : vector<2x64xf32>
    %cst = arith.constant dense<0.000000e+00> : vector<2xf32>
    %3 = vector.multi_reduction <add>, %2, %cst [1] : vector<2x64xf32> to vector<2xf32>
    %4 = vector.shape_cast %3 : vector<2xf32> to vector<2x1xf32>
    %5 = math.rsqrt %4 : vector<2x1xf32>
    %6 = vector.broadcast %5 : vector<2x1xf32> to vector<2x64xf32>
    %7 = arith.mulf %0, %6 : vector<2x64xf32>
    %8 = arith.mulf %1, %1 : vector<2x64xf32>
    %cst_3 = arith.constant dense<0.000000e+00> : vector<2xf32>
    %9 = vector.multi_reduction <add>, %8, %cst_3 [1] : vector<2x64xf32> to vector<2xf32>
    %10 = vector.shape_cast %9 : vector<2xf32> to vector<2x1xf32>
    %11 = math.rsqrt %10 : vector<2x1xf32>
    %12 = vector.broadcast %11 : vector<2x1xf32> to vector<2x64xf32>
    %13 = arith.mulf %1, %12 : vector<2x64xf32>
    %c0_4 = arith.constant 0 : index
    %c0_5 = arith.constant 0 : index
    %14 = memref.load %arg2[%c0_4, %c0_5] : memref<1x1xf32, #tpu.memory_space<smem>>
    %cst_6 = arith.constant dense<0.000000e+00> : vector<2x2xf32>
    %15 = tpu.matmul %7, %13, %cst_6 {dimension_numbers = #tpu.dot_dimension_numbers<[1], [1], [0], [0], [0, 0, 1, 0], [], []>} : vector<2x64xf32>, vector<2x64xf32>, vector<2x2xf32> -> vector<2x2xf32>
    %16 = vector.broadcast %14 : f32 to vector<2x2xf32>
    %17 = arith.mulf %16, %15 : vector<2x2xf32>
    %18 = tpu.iota {dimensions = array<i32: 0>} : vector<2x2xi32>
    %19 = tpu.iota {dimensions = array<i32: 1>} : vector<2x2xi32>
    %20 = arith.cmpi eq, %18, %19 : vector<2x2xi32>
    %cst_7 = arith.constant dense<0xFF800000> : vector<2xf32>
    %21 = vector.multi_reduction <maximumf>, %17, %cst_7 [1] : vector<2x2xf32> to vector<2xf32>
    %22 = vector.shape_cast %21 : vector<2xf32> to vector<2x1xf32>
    %23 = vector.broadcast %22 : vector<2x1xf32> to vector<2x2xf32>
    %24 = arith.subf %17, %23 : vector<2x2xf32>
    %25 = math.exp %24 : vector<2x2xf32>
    %cst_8 = arith.constant dense<0.000000e+00> : vector<2xf32>
    %26 = vector.multi_reduction <add>, %25, %cst_8 [1] : vector<2x2xf32> to vector<2xf32>
    %27 = vector.shape_cast %26 : vector<2xf32> to vector<2x1xf32>
    %28 = math.log %27 : vector<2x1xf32>
    %29 = arith.addf %22, %28 : vector<2x1xf32>
    %cst_9 = arith.constant dense<0xFF800000> : vector<2xf32>
    %30 = vector.multi_reduction <maximumf>, %17, %cst_9 [0] : vector<2x2xf32> to vector<2xf32>
    %31 = vector.shape_cast %30 : vector<2xf32> to vector<1x2xf32>
    %32 = vector.broadcast %31 : vector<1x2xf32> to vector<2x2xf32>
    %33 = arith.subf %17, %32 : vector<2x2xf32>
    %34 = math.exp %33 : vector<2x2xf32>
    %cst_10 = arith.constant dense<0.000000e+00> : vector<2xf32>
    %35 = vector.multi_reduction <add>, %34, %cst_10 [0] : vector<2x2xf32> to vector<2xf32>
    %36 = vector.shape_cast %35 : vector<2xf32> to vector<1x2xf32>
    %37 = math.log %36 : vector<1x2xf32>
    %38 = arith.addf %31, %37 : vector<1x2xf32>
    %cst_11 = arith.constant 0.000000e+00 : f32
    %39 = vector.broadcast %cst_11 : f32 to vector<2x2xf32>
    %40 = arith.select %20, %17, %39 : vector<2x2xi1>, vector<2x2xf32>
    %cst_12 = arith.constant dense<0.000000e+00> : vector<2xf32>
    %41 = vector.multi_reduction <add>, %40, %cst_12 [1] : vector<2x2xf32> to vector<2xf32>
    %42 = vector.shape_cast %41 : vector<2xf32> to vector<2x1xf32>
    %cst_13 = arith.constant 0.000000e+00 : f32
    %43 = vector.broadcast %cst_13 : f32 to vector<2x2xf32>
    %44 = arith.select %20, %17, %43 : vector<2x2xi1>, vector<2x2xf32>
    %cst_14 = arith.constant dense<0.000000e+00> : vector<2xf32>
    %45 = vector.multi_reduction <add>, %44, %cst_14 [0] : vector<2x2xf32> to vector<2xf32>
    %46 = vector.shape_cast %45 : vector<2xf32> to vector<1x2xf32>
    %47 = arith.subf %29, %42 : vector<2x1xf32>
    %48 = vector.shape_cast %47 : vector<2x1xf32> to vector<1x2x1xf32>
    %cst_15 = arith.constant dense<0.000000e+00> : vector<1xf32>
    %49 = vector.multi_reduction <add>, %48, %cst_15 [1, 2] : vector<1x2x1xf32> to vector<1xf32>
    %50 = vector.shape_cast %49 : vector<1xf32> to vector<1x1x1xf32>
    %51 = vector.extract %50[0, 0, 0] : f32 from vector<1x1x1xf32>
    %cst_16 = arith.constant 2.000000e+00 : f32
    %52 = arith.divf %51, %cst_16 : f32
    %53 = arith.subf %38, %46 : vector<1x2xf32>
    %54 = vector.shape_cast %53 : vector<1x2xf32> to vector<1x1x2xf32>
    %cst_17 = arith.constant dense<0.000000e+00> : vector<1xf32>
    %55 = vector.multi_reduction <add>, %54, %cst_17 [1, 2] : vector<1x1x2xf32> to vector<1xf32>
    %56 = vector.shape_cast %55 : vector<1xf32> to vector<1x1x1xf32>
    %57 = vector.extract %56[0, 0, 0] : f32 from vector<1x1x1xf32>
    %cst_18 = arith.constant 2.000000e+00 : f32
    %58 = arith.divf %57, %cst_18 : f32
    %59 = arith.addf %52, %58 : f32
    %cst_19 = arith.constant 5.000000e-01 : f32
    %60 = arith.mulf %cst_19, %59 : f32
    %c0_20 = arith.constant 0 : index
    %c0_21 = arith.constant 0 : index
    %61 = vector.load %arg3[%c0_20, %c0_21] : memref<16x64xf32, #tpu.memory_space<vmem>>, vector<16x64xf32>
    %c0_22 = arith.constant 0 : index
    %c0_23 = arith.constant 0 : index
    %62 = vector.load %arg6[%c0_22, %c0_23] : memref<28x512xf32, #tpu.memory_space<vmem>>, vector<1x64xf32>
    %c1 = arith.constant 1 : index
    %c0_24 = arith.constant 0 : index
    %63 = vector.load %arg6[%c1, %c0_24] : memref<28x512xf32, #tpu.memory_space<vmem>>, vector<1x64xf32>
    %cst_25 = arith.constant dense<0.000000e+00> : vector<16xf32>
    %64 = vector.multi_reduction <add>, %61, %cst_25 [1] : vector<16x64xf32> to vector<16xf32>
    %65 = vector.shape_cast %64 : vector<16xf32> to vector<16x1xf32>
    %cst_26 = arith.constant 6.400000e+01 : f32
    %66 = vector.broadcast %cst_26 : f32 to vector<16x1xf32>
    %67 = arith.divf %65, %66 : vector<16x1xf32>
    %68 = vector.broadcast %67 : vector<16x1xf32> to vector<16x64xf32>
    %69 = arith.subf %61, %68 : vector<16x64xf32>
    %70 = arith.mulf %69, %69 : vector<16x64xf32>
    %cst_27 = arith.constant dense<0.000000e+00> : vector<16xf32>
    %71 = vector.multi_reduction <add>, %70, %cst_27 [1] : vector<16x64xf32> to vector<16xf32>
    %72 = vector.shape_cast %71 : vector<16xf32> to vector<16x1xf32>
    %cst_28 = arith.constant 6.400000e+01 : f32
    %73 = vector.broadcast %cst_28 : f32 to vector<16x1xf32>
    %74 = arith.divf %72, %73 : vector<16x1xf32>
    %cst_29 = arith.constant 9.99999974E-6 : f32
    %75 = vector.broadcast %cst_29 : f32 to vector<16x1xf32>
    %76 = arith.addf %74, %75 : vector<16x1xf32>
    %77 = math.rsqrt %76 : vector<16x1xf32>
    %78 = vector.broadcast %77 : vector<16x1xf32> to vector<16x64xf32>
    %79 = arith.mulf %69, %78 : vector<16x64xf32>
    %80 = vector.broadcast %62 : vector<1x64xf32> to vector<16x64xf32>
    %81 = arith.mulf %79, %80 : vector<16x64xf32>
    %82 = vector.broadcast %63 : vector<1x64xf32> to vector<16x64xf32>
    %83 = arith.addf %81, %82 : vector<16x64xf32>
    %c0_30 = arith.constant 0 : index
    %c0_31 = arith.constant 0 : index
    %c0_32 = arith.constant 0 : index
    %84 = vector.load %arg4[%c0_30, %c0_31, %c0_32] : memref<2x17x64xf32, #tpu.memory_space<vmem>>, vector<2x17x64xf32>
    %c2 = arith.constant 2 : index
    %c0_33 = arith.constant 0 : index
    %85 = vector.load %arg6[%c2, %c0_33] : memref<28x512xf32, #tpu.memory_space<vmem>>, vector<1x64xf32>
    %c3 = arith.constant 3 : index
    %c0_34 = arith.constant 0 : index
    %86 = vector.load %arg6[%c3, %c0_34] : memref<28x512xf32, #tpu.memory_space<vmem>>, vector<1x64xf32>
    %cst_35 = arith.constant dense<0.000000e+00> : vector<2x17xf32>
    %87 = vector.multi_reduction <add>, %84, %cst_35 [2] : vector<2x17x64xf32> to vector<2x17xf32>
    %88 = vector.shape_cast %87 : vector<2x17xf32> to vector<2x17x1xf32>
    %cst_36 = arith.constant 6.400000e+01 : f32
    %89 = vector.broadcast %cst_36 : f32 to vector<2x17x1xf32>
    %90 = arith.divf %88, %89 : vector<2x17x1xf32>
    %91 = vector.broadcast %90 : vector<2x17x1xf32> to vector<2x17x64xf32>
    %92 = arith.subf %84, %91 : vector<2x17x64xf32>
    %93 = arith.mulf %92, %92 : vector<2x17x64xf32>
    %cst_37 = arith.constant dense<0.000000e+00> : vector<2x17xf32>
    %94 = vector.multi_reduction <add>, %93, %cst_37 [2] : vector<2x17x64xf32> to vector<2x17xf32>
    %95 = vector.shape_cast %94 : vector<2x17xf32> to vector<2x17x1xf32>
    %cst_38 = arith.constant 6.400000e+01 : f32
    %96 = vector.broadcast %cst_38 : f32 to vector<2x17x1xf32>
    %97 = arith.divf %95, %96 : vector<2x17x1xf32>
    %cst_39 = arith.constant 9.99999974E-6 : f32
    %98 = vector.broadcast %cst_39 : f32 to vector<2x17x1xf32>
    %99 = arith.addf %97, %98 : vector<2x17x1xf32>
    %100 = math.rsqrt %99 : vector<2x17x1xf32>
    %101 = vector.broadcast %100 : vector<2x17x1xf32> to vector<2x17x64xf32>
    %102 = arith.mulf %92, %101 : vector<2x17x64xf32>
    %103 = vector.shape_cast %85 : vector<1x64xf32> to vector<1x1x64xf32>
    %104 = vector.broadcast %103 : vector<1x1x64xf32> to vector<2x17x64xf32>
    %105 = arith.mulf %102, %104 : vector<2x17x64xf32>
    %106 = vector.shape_cast %86 : vector<1x64xf32> to vector<1x1x64xf32>
    %107 = vector.broadcast %106 : vector<1x1x64xf32> to vector<2x17x64xf32>
    %108 = arith.addf %105, %107 : vector<2x17x64xf32>
    %c0_40 = arith.constant 0 : index
    %c0_41 = arith.constant 0 : index
    %c0_42 = arith.constant 0 : index
    %109 = vector.load %arg7[%c0_40, %c0_41, %c0_42] : memref<5x64x256xbf16, #tpu.memory_space<vmem>>, vector<1x64x256xbf16>
    %110 = vector.shape_cast %109 : vector<1x64x256xbf16> to vector<64x256xbf16>
    %c6 = arith.constant 6 : index
    %c0_43 = arith.constant 0 : index
    %111 = vector.load %arg6[%c6, %c0_43] : memref<28x512xf32, #tpu.memory_space<vmem>>, vector<1x192xf32>
    %c7 = arith.constant 7 : index
    %c0_44 = arith.constant 0 : index
    %112 = vector.load %arg6[%c7, %c0_44] : memref<28x512xf32, #tpu.memory_space<vmem>>, vector<1x64xf32>
    %113 = vector.extract_strided_slice %110 {offsets = [0, 0], sizes = [64, 64], strides = [1, 1]} : vector<64x256xbf16> to vector<64x64xbf16>
    %114 = arith.truncf %83 : vector<16x64xf32> to vector<16x64xbf16>
    %cst_45 = arith.constant dense<0.000000e+00> : vector<16x64xf32>
    %115 = tpu.matmul %114, %113, %cst_45 {dimension_numbers = #tpu.dot_dimension_numbers<[1], [0], [0], [1], [0, 0, 1, 1], [], []>} : vector<16x64xbf16>, vector<64x64xbf16>, vector<16x64xf32> -> vector<16x64xf32>
    %116 = vector.extract_strided_slice %111 {offsets = [0, 0], sizes = [1, 64], strides = [1, 1]} : vector<1x192xf32> to vector<1x64xf32>
    %117 = vector.broadcast %116 : vector<1x64xf32> to vector<16x64xf32>
    %118 = arith.addf %115, %117 : vector<16x64xf32>
    %119 = arith.truncf %108 : vector<2x17x64xf32> to vector<2x17x64xbf16>
    %120 = vector.extract_strided_slice %110 {offsets = [0, 64], sizes = [64, 128], strides = [1, 1]} : vector<64x256xbf16> to vector<64x128xbf16>
    "tpu.trace_start"() <{level = 10 : i32, message = "bld,de->ble"}> : () -> ()
    %cst_46 = arith.constant dense<0.000000e+00> : vector<2x17x128xf32>
    %121 = tpu.matmul %119, %120, %cst_46 {dimension_numbers = #tpu.dot_dimension_numbers<[2], [0], [0, 1], [1], [0, 0, 0, 1, 1, 1], [], []>} : vector<2x17x64xbf16>, vector<64x128xbf16>, vector<2x17x128xf32> -> vector<2x17x128xf32>
    "tpu.trace_stop"() : () -> ()
    %122 = vector.extract_strided_slice %111 {offsets = [0, 64], sizes = [1, 128], strides = [1, 1]} : vector<1x192xf32> to vector<1x128xf32>
    %123 = vector.shape_cast %122 : vector<1x128xf32> to vector<1x1x128xf32>
    %124 = vector.broadcast %123 : vector<1x1x128xf32> to vector<2x17x128xf32>
    %125 = arith.addf %121, %124 : vector<2x17x128xf32>
    %126 = vector.shape_cast %118 : vector<16x64xf32> to vector<2x8x64xf32>
    %127 = vector.extract_strided_slice %125 {offsets = [0, 0, 0], sizes = [2, 17, 64], strides = [1, 1, 1]} : vector<2x17x128xf32> to vector<2x17x64xf32>
    %128 = vector.extract_strided_slice %125 {offsets = [0, 0, 64], sizes = [2, 17, 64], strides = [1, 1, 1]} : vector<2x17x128xf32> to vector<2x17x64xf32>
    %129 = arith.truncf %126 : vector<2x8x64xf32> to vector<2x8x64xbf16>
    %130 = arith.truncf %127 : vector<2x17x64xf32> to vector<2x17x64xbf16>
    "tpu.trace_start"() <{level = 10 : i32, message = "bqd,bkd->bqk"}> : () -> ()
    %cst_47 = arith.constant dense<0.000000e+00> : vector<2x8x17xf32>
    %131 = tpu.matmul %129, %130, %cst_47 {dimension_numbers = #tpu.dot_dimension_numbers<[2], [2], [1], [1], [0, 0, 0, 1, 1, 1], [0], [0]>} : vector<2x8x64xbf16>, vector<2x17x64xbf16>, vector<2x8x17xf32> -> vector<2x8x17xf32>
    "tpu.trace_stop"() : () -> ()
    %cst_48 = arith.constant dense<0xFF800000> : vector<2x8xf32>
    %132 = vector.multi_reduction <maximumf>, %131, %cst_48 [2] : vector<2x8x17xf32> to vector<2x8xf32>
    %133 = vector.shape_cast %132 : vector<2x8xf32> to vector<2x8x1xf32>
    %134 = vector.broadcast %133 : vector<2x8x1xf32> to vector<2x8x17xf32>
    %135 = arith.subf %131, %134 : vector<2x8x17xf32>
    %136 = math.exp %135 : vector<2x8x17xf32>
    %cst_49 = arith.constant dense<0.000000e+00> : vector<2x8xf32>
    %137 = vector.multi_reduction <add>, %136, %cst_49 [2] : vector<2x8x17xf32> to vector<2x8xf32>
    %138 = vector.shape_cast %137 : vector<2x8xf32> to vector<2x8x1xf32>
    %139 = tpu.reciprocal %138 {approx = true} : vector<2x8x1xf32> -> vector<2x8x1xf32>
    %140 = vector.broadcast %139 : vector<2x8x1xf32> to vector<2x8x17xf32>
    %141 = arith.mulf %136, %140 : vector<2x8x17xf32>
    %142 = arith.truncf %141 : vector<2x8x17xf32> to vector<2x8x17xbf16>
    %143 = arith.truncf %128 : vector<2x17x64xf32> to vector<2x17x64xbf16>
    "tpu.trace_start"() <{level = 10 : i32, message = "bqk,bkd->bqd"}> : () -> ()
    %cst_50 = arith.constant dense<0.000000e+00> : vector<2x8x64xf32>
    %144 = tpu.matmul %142, %143, %cst_50 {dimension_numbers = #tpu.dot_dimension_numbers<[2], [1], [1], [2], [0, 0, 0, 1, 1, 2], [0], [0]>} : vector<2x8x17xbf16>, vector<2x17x64xbf16>, vector<2x8x64xf32> -> vector<2x8x64xf32>
    "tpu.trace_stop"() : () -> ()
    %145 = vector.shape_cast %144 : vector<2x8x64xf32> to vector<16x64xf32>
    %146 = vector.extract_strided_slice %110 {offsets = [0, 192], sizes = [64, 64], strides = [1, 1]} : vector<64x256xbf16> to vector<64x64xbf16>
    %147 = arith.truncf %145 : vector<16x64xf32> to vector<16x64xbf16>
    %cst_51 = arith.constant dense<0.000000e+00> : vector<16x64xf32>
    %148 = tpu.matmul %147, %146, %cst_51 {dimension_numbers = #tpu.dot_dimension_numbers<[1], [0], [0], [1], [0, 0, 1, 1], [], []>} : vector<16x64xbf16>, vector<64x64xbf16>, vector<16x64xf32> -> vector<16x64xf32>
    %149 = vector.broadcast %112 : vector<1x64xf32> to vector<16x64xf32>
    %150 = arith.addf %149, %148 : vector<16x64xf32>
    %c8 = arith.constant 8 : index
    %c0_52 = arith.constant 0 : index
    %151 = vector.load %arg6[%c8, %c0_52] : memref<28x512xf32, #tpu.memory_space<vmem>>, vector<1x64xf32>
    %c9 = arith.constant 9 : index
    %c0_53 = arith.constant 0 : index
    %152 = vector.load %arg6[%c9, %c0_53] : memref<28x512xf32, #tpu.memory_space<vmem>>, vector<1x64xf32>
    %cst_54 = arith.constant dense<0.000000e+00> : vector<16xf32>
    %153 = vector.multi_reduction <add>, %150, %cst_54 [1] : vector<16x64xf32> to vector<16xf32>
    %154 = vector.shape_cast %153 : vector<16xf32> to vector<16x1xf32>
    %cst_55 = arith.constant 6.400000e+01 : f32
    %155 = vector.broadcast %cst_55 : f32 to vector<16x1xf32>
    %156 = arith.divf %154, %155 : vector<16x1xf32>
    %157 = vector.broadcast %156 : vector<16x1xf32> to vector<16x64xf32>
    %158 = arith.subf %150, %157 : vector<16x64xf32>
    %159 = arith.mulf %158, %158 : vector<16x64xf32>
    %cst_56 = arith.constant dense<0.000000e+00> : vector<16xf32>
    %160 = vector.multi_reduction <add>, %159, %cst_56 [1] : vector<16x64xf32> to vector<16xf32>
    %161 = vector.shape_cast %160 : vector<16xf32> to vector<16x1xf32>
    %cst_57 = arith.constant 6.400000e+01 : f32
    %162 = vector.broadcast %cst_57 : f32 to vector<16x1xf32>
    %163 = arith.divf %161, %162 : vector<16x1xf32>
    %cst_58 = arith.constant 9.99999974E-6 : f32
    %164 = vector.broadcast %cst_58 : f32 to vector<16x1xf32>
    %165 = arith.addf %163, %164 : vector<16x1xf32>
    %166 = math.rsqrt %165 : vector<16x1xf32>
    %167 = vector.broadcast %166 : vector<16x1xf32> to vector<16x64xf32>
    %168 = arith.mulf %158, %167 : vector<16x64xf32>
    %169 = vector.broadcast %151 : vector<1x64xf32> to vector<16x64xf32>
    %170 = arith.mulf %168, %169 : vector<16x64xf32>
    %171 = vector.broadcast %152 : vector<1x64xf32> to vector<16x64xf32>
    %172 = arith.addf %170, %171 : vector<16x64xf32>
    %c1_59 = arith.constant 1 : index
    %c0_60 = arith.constant 0 : index
    %c0_61 = arith.constant 0 : index
    %173 = vector.load %arg7[%c1_59, %c0_60, %c0_61] : memref<5x64x256xbf16, #tpu.memory_space<vmem>>, vector<1x64x256xbf16>
    %174 = vector.shape_cast %173 : vector<1x64x256xbf16> to vector<64x256xbf16>
    %c10 = arith.constant 10 : index
    %c0_62 = arith.constant 0 : index
    %175 = vector.load %arg6[%c10, %c0_62] : memref<28x512xf32, #tpu.memory_space<vmem>>, vector<1x192xf32>
    %c11 = arith.constant 11 : index
    %c0_63 = arith.constant 0 : index
    %176 = vector.load %arg6[%c11, %c0_63] : memref<28x512xf32, #tpu.memory_space<vmem>>, vector<1x64xf32>
    %177 = vector.extract_strided_slice %174 {offsets = [0, 0], sizes = [64, 192], strides = [1, 1]} : vector<64x256xbf16> to vector<64x192xbf16>
    %178 = arith.truncf %172 : vector<16x64xf32> to vector<16x64xbf16>
    %cst_64 = arith.constant dense<0.000000e+00> : vector<16x192xf32>
    %179 = tpu.matmul %178, %177, %cst_64 {dimension_numbers = #tpu.dot_dimension_numbers<[1], [0], [0], [1], [0, 0, 1, 1], [], []>} : vector<16x64xbf16>, vector<64x192xbf16>, vector<16x192xf32> -> vector<16x192xf32>
    %180 = vector.broadcast %175 : vector<1x192xf32> to vector<16x192xf32>
    %181 = arith.addf %179, %180 : vector<16x192xf32>
    %182 = vector.extract_strided_slice %181 {offsets = [0, 0], sizes = [16, 64], strides = [1, 1]} : vector<16x192xf32> to vector<16x64xf32>
    %183 = vector.shape_cast %182 : vector<16x64xf32> to vector<2x8x64xf32>
    %184 = vector.extract_strided_slice %181 {offsets = [0, 64], sizes = [16, 64], strides = [1, 1]} : vector<16x192xf32> to vector<16x64xf32>
    %185 = vector.shape_cast %184 : vector<16x64xf32> to vector<2x8x64xf32>
    %186 = vector.extract_strided_slice %181 {offsets = [0, 128], sizes = [16, 64], strides = [1, 1]} : vector<16x192xf32> to vector<16x64xf32>
    %187 = vector.shape_cast %186 : vector<16x64xf32> to vector<2x8x64xf32>
    %188 = arith.truncf %183 : vector<2x8x64xf32> to vector<2x8x64xbf16>
    %189 = arith.truncf %185 : vector<2x8x64xf32> to vector<2x8x64xbf16>
    "tpu.trace_start"() <{level = 10 : i32, message = "bqd,bkd->bqk"}> : () -> ()
    %cst_65 = arith.constant dense<0.000000e+00> : vector<2x8x8xf32>
    %190 = tpu.matmul %188, %189, %cst_65 {dimension_numbers = #tpu.dot_dimension_numbers<[2], [2], [1], [1], [0, 0, 0, 1, 1, 1], [0], [0]>} : vector<2x8x64xbf16>, vector<2x8x64xbf16>, vector<2x8x8xf32> -> vector<2x8x8xf32>
    "tpu.trace_stop"() : () -> ()
    %cst_66 = arith.constant dense<0xFF800000> : vector<2x8xf32>
    %191 = vector.multi_reduction <maximumf>, %190, %cst_66 [2] : vector<2x8x8xf32> to vector<2x8xf32>
    %192 = vector.shape_cast %191 : vector<2x8xf32> to vector<2x8x1xf32>
    %193 = vector.broadcast %192 : vector<2x8x1xf32> to vector<2x8x8xf32>
    %194 = arith.subf %190, %193 : vector<2x8x8xf32>
    %195 = math.exp %194 : vector<2x8x8xf32>
    %cst_67 = arith.constant dense<0.000000e+00> : vector<2x8xf32>
    %196 = vector.multi_reduction <add>, %195, %cst_67 [2] : vector<2x8x8xf32> to vector<2x8xf32>
    %197 = vector.shape_cast %196 : vector<2x8xf32> to vector<2x8x1xf32>
    %198 = tpu.reciprocal %197 {approx = true} : vector<2x8x1xf32> -> vector<2x8x1xf32>
    %199 = vector.broadcast %198 : vector<2x8x1xf32> to vector<2x8x8xf32>
    %200 = arith.mulf %195, %199 : vector<2x8x8xf32>
    %201 = arith.truncf %200 : vector<2x8x8xf32> to vector<2x8x8xbf16>
    %202 = arith.truncf %187 : vector<2x8x64xf32> to vector<2x8x64xbf16>
    "tpu.trace_start"() <{level = 10 : i32, message = "bqk,bkd->bqd"}> : () -> ()
    %cst_68 = arith.constant dense<0.000000e+00> : vector<2x8x64xf32>
    %203 = tpu.matmul %201, %202, %cst_68 {dimension_numbers = #tpu.dot_dimension_numbers<[2], [1], [1], [2], [0, 0, 0, 1, 1, 2], [0], [0]>} : vector<2x8x8xbf16>, vector<2x8x64xbf16>, vector<2x8x64xf32> -> vector<2x8x64xf32>
    "tpu.trace_stop"() : () -> ()
    %204 = vector.shape_cast %203 : vector<2x8x64xf32> to vector<16x64xf32>
    %205 = vector.extract_strided_slice %174 {offsets = [0, 192], sizes = [64, 64], strides = [1, 1]} : vector<64x256xbf16> to vector<64x64xbf16>
    %206 = arith.truncf %204 : vector<16x64xf32> to vector<16x64xbf16>
    %cst_69 = arith.constant dense<0.000000e+00> : vector<16x64xf32>
    %207 = tpu.matmul %206, %205, %cst_69 {dimension_numbers = #tpu.dot_dimension_numbers<[1], [0], [0], [1], [0, 0, 1, 1], [], []>} : vector<16x64xbf16>, vector<64x64xbf16>, vector<16x64xf32> -> vector<16x64xf32>
    %208 = vector.broadcast %176 : vector<1x64xf32> to vector<16x64xf32>
    %209 = arith.addf %208, %207 : vector<16x64xf32>
    %210 = arith.addf %150, %209 : vector<16x64xf32>
    %c12 = arith.constant 12 : index
    %c0_70 = arith.constant 0 : index
    %211 = vector.load %arg6[%c12, %c0_70] : memref<28x512xf32, #tpu.memory_space<vmem>>, vector<1x64xf32>
    %c13 = arith.constant 13 : index
    %c0_71 = arith.constant 0 : index
    %212 = vector.load %arg6[%c13, %c0_71] : memref<28x512xf32, #tpu.memory_space<vmem>>, vector<1x64xf32>
    %cst_72 = arith.constant dense<0.000000e+00> : vector<16xf32>
    %213 = vector.multi_reduction <add>, %210, %cst_72 [1] : vector<16x64xf32> to vector<16xf32>
    %214 = vector.shape_cast %213 : vector<16xf32> to vector<16x1xf32>
    %cst_73 = arith.constant 6.400000e+01 : f32
    %215 = vector.broadcast %cst_73 : f32 to vector<16x1xf32>
    %216 = arith.divf %214, %215 : vector<16x1xf32>
    %217 = vector.broadcast %216 : vector<16x1xf32> to vector<16x64xf32>
    %218 = arith.subf %210, %217 : vector<16x64xf32>
    %219 = arith.mulf %218, %218 : vector<16x64xf32>
    %cst_74 = arith.constant dense<0.000000e+00> : vector<16xf32>
    %220 = vector.multi_reduction <add>, %219, %cst_74 [1] : vector<16x64xf32> to vector<16xf32>
    %221 = vector.shape_cast %220 : vector<16xf32> to vector<16x1xf32>
    %cst_75 = arith.constant 6.400000e+01 : f32
    %222 = vector.broadcast %cst_75 : f32 to vector<16x1xf32>
    %223 = arith.divf %221, %222 : vector<16x1xf32>
    %cst_76 = arith.constant 9.99999974E-6 : f32
    %224 = vector.broadcast %cst_76 : f32 to vector<16x1xf32>
    %225 = arith.addf %223, %224 : vector<16x1xf32>
    %226 = math.rsqrt %225 : vector<16x1xf32>
    %227 = vector.broadcast %226 : vector<16x1xf32> to vector<16x64xf32>
    %228 = arith.mulf %218, %227 : vector<16x64xf32>
    %229 = vector.broadcast %211 : vector<1x64xf32> to vector<16x64xf32>
    %230 = arith.mulf %228, %229 : vector<16x64xf32>
    %231 = vector.broadcast %212 : vector<1x64xf32> to vector<16x64xf32>
    %232 = arith.addf %230, %231 : vector<16x64xf32>
    %c3_77 = arith.constant 3 : index
    %c0_78 = arith.constant 0 : index
    %c0_79 = arith.constant 0 : index
    %233 = vector.load %arg7[%c3_77, %c0_78, %c0_79] : memref<5x64x256xbf16, #tpu.memory_space<vmem>>, vector<1x64x256xbf16>
    %234 = vector.shape_cast %233 : vector<1x64x256xbf16> to vector<64x256xbf16>
    %235 = arith.truncf %232 : vector<16x64xf32> to vector<16x64xbf16>
    %cst_80 = arith.constant dense<0.000000e+00> : vector<16x256xf32>
    %236 = tpu.matmul %235, %234, %cst_80 {dimension_numbers = #tpu.dot_dimension_numbers<[1], [0], [0], [1], [0, 0, 1, 1], [], []>} : vector<16x64xbf16>, vector<64x256xbf16>, vector<16x256xf32> -> vector<16x256xf32>
    %c14 = arith.constant 14 : index
    %c0_81 = arith.constant 0 : index
    %237 = vector.load %arg6[%c14, %c0_81] : memref<28x512xf32, #tpu.memory_space<vmem>>, vector<1x256xf32>
    %238 = vector.broadcast %237 : vector<1x256xf32> to vector<16x256xf32>
    %239 = arith.addf %236, %238 : vector<16x256xf32>
    %cst_82 = arith.constant 1.702000e+00 : f32
    %240 = vector.broadcast %cst_82 : f32 to vector<16x256xf32>
    %241 = arith.mulf %240, %239 : vector<16x256xf32>
    %242 = arith.negf %241 : vector<16x256xf32>
    %243 = math.exp %242 : vector<16x256xf32>
    %cst_83 = arith.constant 1.000000e+00 : f32
    %244 = vector.broadcast %cst_83 : f32 to vector<16x256xf32>
    %245 = arith.addf %244, %243 : vector<16x256xf32>
    %246 = arith.divf %244, %245 : vector<16x256xf32>
    %247 = arith.mulf %239, %246 : vector<16x256xf32>
    %c0_84 = arith.constant 0 : index
    %c0_85 = arith.constant 0 : index
    %c0_86 = arith.constant 0 : index
    %248 = vector.load %arg8[%c0_84, %c0_85, %c0_86] : memref<2x256x64xbf16, #tpu.memory_space<vmem>>, vector<1x256x64xbf16>
    %249 = vector.shape_cast %248 : vector<1x256x64xbf16> to vector<256x64xbf16>
    %250 = arith.truncf %247 : vector<16x256xf32> to vector<16x256xbf16>
    %cst_87 = arith.constant dense<0.000000e+00> : vector<16x64xf32>
    %251 = tpu.matmul %250, %249, %cst_87 {dimension_numbers = #tpu.dot_dimension_numbers<[1], [0], [0], [1], [0, 0, 1, 1], [], []>} : vector<16x256xbf16>, vector<256x64xbf16>, vector<16x64xf32> -> vector<16x64xf32>
    %c15 = arith.constant 15 : index
    %c0_88 = arith.constant 0 : index
    %252 = vector.load %arg6[%c15, %c0_88] : memref<28x512xf32, #tpu.memory_space<vmem>>, vector<1x64xf32>
    %253 = vector.broadcast %252 : vector<1x64xf32> to vector<16x64xf32>
    %254 = arith.addf %251, %253 : vector<16x64xf32>
    %255 = arith.addf %210, %254 : vector<16x64xf32>
    %c16 = arith.constant 16 : index
    %c0_89 = arith.constant 0 : index
    %256 = vector.load %arg6[%c16, %c0_89] : memref<28x512xf32, #tpu.memory_space<vmem>>, vector<1x64xf32>
    %c17 = arith.constant 17 : index
    %c0_90 = arith.constant 0 : index
    %257 = vector.load %arg6[%c17, %c0_90] : memref<28x512xf32, #tpu.memory_space<vmem>>, vector<1x64xf32>
    %cst_91 = arith.constant dense<0.000000e+00> : vector<16xf32>
    %258 = vector.multi_reduction <add>, %255, %cst_91 [1] : vector<16x64xf32> to vector<16xf32>
    %259 = vector.shape_cast %258 : vector<16xf32> to vector<16x1xf32>
    %cst_92 = arith.constant 6.400000e+01 : f32
    %260 = vector.broadcast %cst_92 : f32 to vector<16x1xf32>
    %261 = arith.divf %259, %260 : vector<16x1xf32>
    %262 = vector.broadcast %261 : vector<16x1xf32> to vector<16x64xf32>
    %263 = arith.subf %255, %262 : vector<16x64xf32>
    %264 = arith.mulf %263, %263 : vector<16x64xf32>
    %cst_93 = arith.constant dense<0.000000e+00> : vector<16xf32>
    %265 = vector.multi_reduction <add>, %264, %cst_93 [1] : vector<16x64xf32> to vector<16xf32>
    %266 = vector.shape_cast %265 : vector<16xf32> to vector<16x1xf32>
    %cst_94 = arith.constant 6.400000e+01 : f32
    %267 = vector.broadcast %cst_94 : f32 to vector<16x1xf32>
    %268 = arith.divf %266, %267 : vector<16x1xf32>
    %cst_95 = arith.constant 9.99999974E-6 : f32
    %269 = vector.broadcast %cst_95 : f32 to vector<16x1xf32>
    %270 = arith.addf %268, %269 : vector<16x1xf32>
    %271 = math.rsqrt %270 : vector<16x1xf32>
    %272 = vector.broadcast %271 : vector<16x1xf32> to vector<16x64xf32>
    %273 = arith.mulf %263, %272 : vector<16x64xf32>
    %274 = vector.broadcast %256 : vector<1x64xf32> to vector<16x64xf32>
    %275 = arith.mulf %273, %274 : vector<16x64xf32>
    %276 = vector.broadcast %257 : vector<1x64xf32> to vector<16x64xf32>
    %277 = arith.addf %275, %276 : vector<16x64xf32>
    %c2_96 = arith.constant 2 : index
    %c0_97 = arith.constant 0 : index
    %c0_98 = arith.constant 0 : index
    %278 = vector.load %arg7[%c2_96, %c0_97, %c0_98] : memref<5x64x256xbf16, #tpu.memory_space<vmem>>, vector<1x64x256xbf16>
    %279 = vector.shape_cast %278 : vector<1x64x256xbf16> to vector<64x256xbf16>
    %c18 = arith.constant 18 : index
    %c0_99 = arith.constant 0 : index
    %280 = vector.load %arg6[%c18, %c0_99] : memref<28x512xf32, #tpu.memory_space<vmem>>, vector<1x192xf32>
    %c19 = arith.constant 19 : index
    %c0_100 = arith.constant 0 : index
    %281 = vector.load %arg6[%c19, %c0_100] : memref<28x512xf32, #tpu.memory_space<vmem>>, vector<1x64xf32>
    %282 = vector.extract_strided_slice %279 {offsets = [0, 0], sizes = [64, 192], strides = [1, 1]} : vector<64x256xbf16> to vector<64x192xbf16>
    %283 = arith.truncf %277 : vector<16x64xf32> to vector<16x64xbf16>
    %cst_101 = arith.constant dense<0.000000e+00> : vector<16x192xf32>
    %284 = tpu.matmul %283, %282, %cst_101 {dimension_numbers = #tpu.dot_dimension_numbers<[1], [0], [0], [1], [0, 0, 1, 1], [], []>} : vector<16x64xbf16>, vector<64x192xbf16>, vector<16x192xf32> -> vector<16x192xf32>
    %285 = vector.broadcast %280 : vector<1x192xf32> to vector<16x192xf32>
    %286 = arith.addf %284, %285 : vector<16x192xf32>
    %287 = vector.extract_strided_slice %286 {offsets = [0, 0], sizes = [16, 64], strides = [1, 1]} : vector<16x192xf32> to vector<16x64xf32>
    %288 = vector.shape_cast %287 : vector<16x64xf32> to vector<2x8x64xf32>
    %289 = vector.extract_strided_slice %286 {offsets = [0, 64], sizes = [16, 64], strides = [1, 1]} : vector<16x192xf32> to vector<16x64xf32>
    %290 = vector.shape_cast %289 : vector<16x64xf32> to vector<2x8x64xf32>
    %291 = vector.extract_strided_slice %286 {offsets = [0, 128], sizes = [16, 64], strides = [1, 1]} : vector<16x192xf32> to vector<16x64xf32>
    %292 = vector.shape_cast %291 : vector<16x64xf32> to vector<2x8x64xf32>
    %293 = arith.truncf %288 : vector<2x8x64xf32> to vector<2x8x64xbf16>
    %294 = arith.truncf %290 : vector<2x8x64xf32> to vector<2x8x64xbf16>
    "tpu.trace_start"() <{level = 10 : i32, message = "bqd,bkd->bqk"}> : () -> ()
    %cst_102 = arith.constant dense<0.000000e+00> : vector<2x8x8xf32>
    %295 = tpu.matmul %293, %294, %cst_102 {dimension_numbers = #tpu.dot_dimension_numbers<[2], [2], [1], [1], [0, 0, 0, 1, 1, 1], [0], [0]>} : vector<2x8x64xbf16>, vector<2x8x64xbf16>, vector<2x8x8xf32> -> vector<2x8x8xf32>
    "tpu.trace_stop"() : () -> ()
    %cst_103 = arith.constant dense<0xFF800000> : vector<2x8xf32>
    %296 = vector.multi_reduction <maximumf>, %295, %cst_103 [2] : vector<2x8x8xf32> to vector<2x8xf32>
    %297 = vector.shape_cast %296 : vector<2x8xf32> to vector<2x8x1xf32>
    %298 = vector.broadcast %297 : vector<2x8x1xf32> to vector<2x8x8xf32>
    %299 = arith.subf %295, %298 : vector<2x8x8xf32>
    %300 = math.exp %299 : vector<2x8x8xf32>
    %cst_104 = arith.constant dense<0.000000e+00> : vector<2x8xf32>
    %301 = vector.multi_reduction <add>, %300, %cst_104 [2] : vector<2x8x8xf32> to vector<2x8xf32>
    %302 = vector.shape_cast %301 : vector<2x8xf32> to vector<2x8x1xf32>
    %303 = tpu.reciprocal %302 {approx = true} : vector<2x8x1xf32> -> vector<2x8x1xf32>
    %304 = vector.broadcast %303 : vector<2x8x1xf32> to vector<2x8x8xf32>
    %305 = arith.mulf %300, %304 : vector<2x8x8xf32>
    %306 = arith.truncf %305 : vector<2x8x8xf32> to vector<2x8x8xbf16>
    %307 = arith.truncf %292 : vector<2x8x64xf32> to vector<2x8x64xbf16>
    "tpu.trace_start"() <{level = 10 : i32, message = "bqk,bkd->bqd"}> : () -> ()
    %cst_105 = arith.constant dense<0.000000e+00> : vector<2x8x64xf32>
    %308 = tpu.matmul %306, %307, %cst_105 {dimension_numbers = #tpu.dot_dimension_numbers<[2], [1], [1], [2], [0, 0, 0, 1, 1, 2], [0], [0]>} : vector<2x8x8xbf16>, vector<2x8x64xbf16>, vector<2x8x64xf32> -> vector<2x8x64xf32>
    "tpu.trace_stop"() : () -> ()
    %309 = vector.shape_cast %308 : vector<2x8x64xf32> to vector<16x64xf32>
    %310 = vector.extract_strided_slice %279 {offsets = [0, 192], sizes = [64, 64], strides = [1, 1]} : vector<64x256xbf16> to vector<64x64xbf16>
    %311 = arith.truncf %309 : vector<16x64xf32> to vector<16x64xbf16>
    %cst_106 = arith.constant dense<0.000000e+00> : vector<16x64xf32>
    %312 = tpu.matmul %311, %310, %cst_106 {dimension_numbers = #tpu.dot_dimension_numbers<[1], [0], [0], [1], [0, 0, 1, 1], [], []>} : vector<16x64xbf16>, vector<64x64xbf16>, vector<16x64xf32> -> vector<16x64xf32>
    %313 = vector.broadcast %281 : vector<1x64xf32> to vector<16x64xf32>
    %314 = arith.addf %313, %312 : vector<16x64xf32>
    %315 = arith.addf %255, %314 : vector<16x64xf32>
    %c20 = arith.constant 20 : index
    %c0_107 = arith.constant 0 : index
    %316 = vector.load %arg6[%c20, %c0_107] : memref<28x512xf32, #tpu.memory_space<vmem>>, vector<1x64xf32>
    %c21 = arith.constant 21 : index
    %c0_108 = arith.constant 0 : index
    %317 = vector.load %arg6[%c21, %c0_108] : memref<28x512xf32, #tpu.memory_space<vmem>>, vector<1x64xf32>
    %cst_109 = arith.constant dense<0.000000e+00> : vector<16xf32>
    %318 = vector.multi_reduction <add>, %315, %cst_109 [1] : vector<16x64xf32> to vector<16xf32>
    %319 = vector.shape_cast %318 : vector<16xf32> to vector<16x1xf32>
    %cst_110 = arith.constant 6.400000e+01 : f32
    %320 = vector.broadcast %cst_110 : f32 to vector<16x1xf32>
    %321 = arith.divf %319, %320 : vector<16x1xf32>
    %322 = vector.broadcast %321 : vector<16x1xf32> to vector<16x64xf32>
    %323 = arith.subf %315, %322 : vector<16x64xf32>
    %324 = arith.mulf %323, %323 : vector<16x64xf32>
    %cst_111 = arith.constant dense<0.000000e+00> : vector<16xf32>
    %325 = vector.multi_reduction <add>, %324, %cst_111 [1] : vector<16x64xf32> to vector<16xf32>
    %326 = vector.shape_cast %325 : vector<16xf32> to vector<16x1xf32>
    %cst_112 = arith.constant 6.400000e+01 : f32
    %327 = vector.broadcast %cst_112 : f32 to vector<16x1xf32>
    %328 = arith.divf %326, %327 : vector<16x1xf32>
    %cst_113 = arith.constant 9.99999974E-6 : f32
    %329 = vector.broadcast %cst_113 : f32 to vector<16x1xf32>
    %330 = arith.addf %328, %329 : vector<16x1xf32>
    %331 = math.rsqrt %330 : vector<16x1xf32>
    %332 = vector.broadcast %331 : vector<16x1xf32> to vector<16x64xf32>
    %333 = arith.mulf %323, %332 : vector<16x64xf32>
    %334 = vector.broadcast %316 : vector<1x64xf32> to vector<16x64xf32>
    %335 = arith.mulf %333, %334 : vector<16x64xf32>
    %336 = vector.broadcast %317 : vector<1x64xf32> to vector<16x64xf32>
    %337 = arith.addf %335, %336 : vector<16x64xf32>
    %c4 = arith.constant 4 : index
    %c0_114 = arith.constant 0 : index
    %c0_115 = arith.constant 0 : index
    %338 = vector.load %arg7[%c4, %c0_114, %c0_115] : memref<5x64x256xbf16, #tpu.memory_space<vmem>>, vector<1x64x256xbf16>
    %339 = vector.shape_cast %338 : vector<1x64x256xbf16> to vector<64x256xbf16>
    %340 = arith.truncf %337 : vector<16x64xf32> to vector<16x64xbf16>
    %cst_116 = arith.constant dense<0.000000e+00> : vector<16x256xf32>
    %341 = tpu.matmul %340, %339, %cst_116 {dimension_numbers = #tpu.dot_dimension_numbers<[1], [0], [0], [1], [0, 0, 1, 1], [], []>} : vector<16x64xbf16>, vector<64x256xbf16>, vector<16x256xf32> -> vector<16x256xf32>
    %c22 = arith.constant 22 : index
    %c0_117 = arith.constant 0 : index
    %342 = vector.load %arg6[%c22, %c0_117] : memref<28x512xf32, #tpu.memory_space<vmem>>, vector<1x256xf32>
    %343 = vector.broadcast %342 : vector<1x256xf32> to vector<16x256xf32>
    %344 = arith.addf %341, %343 : vector<16x256xf32>
    %cst_118 = arith.constant 1.702000e+00 : f32
    %345 = vector.broadcast %cst_118 : f32 to vector<16x256xf32>
    %346 = arith.mulf %345, %344 : vector<16x256xf32>
    %347 = arith.negf %346 : vector<16x256xf32>
    %348 = math.exp %347 : vector<16x256xf32>
    %cst_119 = arith.constant 1.000000e+00 : f32
    %349 = vector.broadcast %cst_119 : f32 to vector<16x256xf32>
    %350 = arith.addf %349, %348 : vector<16x256xf32>
    %351 = arith.divf %349, %350 : vector<16x256xf32>
    %352 = arith.mulf %344, %351 : vector<16x256xf32>
    %c1_120 = arith.constant 1 : index
    %c0_121 = arith.constant 0 : index
    %c0_122 = arith.constant 0 : index
    %353 = vector.load %arg8[%c1_120, %c0_121, %c0_122] : memref<2x256x64xbf16, #tpu.memory_space<vmem>>, vector<1x256x64xbf16>
    %354 = vector.shape_cast %353 : vector<1x256x64xbf16> to vector<256x64xbf16>
    %355 = arith.truncf %352 : vector<16x256xf32> to vector<16x256xbf16>
    %cst_123 = arith.constant dense<0.000000e+00> : vector<16x64xf32>
    %356 = tpu.matmul %355, %354, %cst_123 {dimension_numbers = #tpu.dot_dimension_numbers<[1], [0], [0], [1], [0, 0, 1, 1], [], []>} : vector<16x256xbf16>, vector<256x64xbf16>, vector<16x64xf32> -> vector<16x64xf32>
    %c23 = arith.constant 23 : index
    %c0_124 = arith.constant 0 : index
    %357 = vector.load %arg6[%c23, %c0_124] : memref<28x512xf32, #tpu.memory_space<vmem>>, vector<1x64xf32>
    %358 = vector.broadcast %357 : vector<1x64xf32> to vector<16x64xf32>
    %359 = arith.addf %356, %358 : vector<16x64xf32>
    %360 = arith.addf %315, %359 : vector<16x64xf32>
    %c4_125 = arith.constant 4 : index
    %c0_126 = arith.constant 0 : index
    %361 = vector.load %arg6[%c4_125, %c0_126] : memref<28x512xf32, #tpu.memory_space<vmem>>, vector<1x64xf32>
    %c5 = arith.constant 5 : index
    %c0_127 = arith.constant 0 : index
    %362 = vector.load %arg6[%c5, %c0_127] : memref<28x512xf32, #tpu.memory_space<vmem>>, vector<1x64xf32>
    %cst_128 = arith.constant dense<0.000000e+00> : vector<16xf32>
    %363 = vector.multi_reduction <add>, %360, %cst_128 [1] : vector<16x64xf32> to vector<16xf32>
    %364 = vector.shape_cast %363 : vector<16xf32> to vector<16x1xf32>
    %cst_129 = arith.constant 6.400000e+01 : f32
    %365 = vector.broadcast %cst_129 : f32 to vector<16x1xf32>
    %366 = arith.divf %364, %365 : vector<16x1xf32>
    %367 = vector.broadcast %366 : vector<16x1xf32> to vector<16x64xf32>
    %368 = arith.subf %360, %367 : vector<16x64xf32>
    %369 = arith.mulf %368, %368 : vector<16x64xf32>
    %cst_130 = arith.constant dense<0.000000e+00> : vector<16xf32>
    %370 = vector.multi_reduction <add>, %369, %cst_130 [1] : vector<16x64xf32> to vector<16xf32>
    %371 = vector.shape_cast %370 : vector<16xf32> to vector<16x1xf32>
    %cst_131 = arith.constant 6.400000e+01 : f32
    %372 = vector.broadcast %cst_131 : f32 to vector<16x1xf32>
    %373 = arith.divf %371, %372 : vector<16x1xf32>
    %cst_132 = arith.constant 9.99999974E-6 : f32
    %374 = vector.broadcast %cst_132 : f32 to vector<16x1xf32>
    %375 = arith.addf %373, %374 : vector<16x1xf32>
    %376 = math.rsqrt %375 : vector<16x1xf32>
    %377 = vector.broadcast %376 : vector<16x1xf32> to vector<16x64xf32>
    %378 = arith.mulf %368, %377 : vector<16x64xf32>
    %379 = vector.broadcast %361 : vector<1x64xf32> to vector<16x64xf32>
    %380 = arith.mulf %378, %379 : vector<16x64xf32>
    %381 = vector.broadcast %362 : vector<1x64xf32> to vector<16x64xf32>
    %382 = arith.addf %380, %381 : vector<16x64xf32>
    %c0_133 = arith.constant 0 : index
    %c512 = arith.constant 512 : index
    %383 = vector.load %arg9[%c0_133, %c512] : memref<64x576xbf16, #tpu.memory_space<vmem>>, vector<64x64xbf16>
    %384 = arith.truncf %382 : vector<16x64xf32> to vector<16x64xbf16>
    %cst_134 = arith.constant dense<0.000000e+00> : vector<16x64xf32>
    %385 = tpu.matmul %384, %383, %cst_134 {dimension_numbers = #tpu.dot_dimension_numbers<[1], [0], [0], [1], [0, 0, 1, 1], [], []>} : vector<16x64xbf16>, vector<64x64xbf16>, vector<16x64xf32> -> vector<16x64xf32>
    %c24 = arith.constant 24 : index
    %c0_135 = arith.constant 0 : index
    %386 = vector.load %arg6[%c24, %c0_135] : memref<28x512xf32, #tpu.memory_space<vmem>>, vector<1x64xf32>
    %387 = vector.broadcast %386 : vector<1x64xf32> to vector<16x64xf32>
    %388 = arith.addf %385, %387 : vector<16x64xf32>
    %cst_136 = arith.constant 1.702000e+00 : f32
    %389 = vector.broadcast %cst_136 : f32 to vector<16x64xf32>
    %390 = arith.mulf %389, %388 : vector<16x64xf32>
    %391 = arith.negf %390 : vector<16x64xf32>
    %392 = math.exp %391 : vector<16x64xf32>
    %cst_137 = arith.constant 1.000000e+00 : f32
    %393 = vector.broadcast %cst_137 : f32 to vector<16x64xf32>
    %394 = arith.addf %393, %392 : vector<16x64xf32>
    %395 = arith.divf %393, %394 : vector<16x64xf32>
    %396 = arith.mulf %388, %395 : vector<16x64xf32>
    %c25 = arith.constant 25 : index
    %c0_138 = arith.constant 0 : index
    %397 = vector.load %arg6[%c25, %c0_138] : memref<28x512xf32, #tpu.memory_space<vmem>>, vector<1x64xf32>
    %c26 = arith.constant 26 : index
    %c0_139 = arith.constant 0 : index
    %398 = vector.load %arg6[%c26, %c0_139] : memref<28x512xf32, #tpu.memory_space<vmem>>, vector<1x64xf32>
    %cst_140 = arith.constant dense<0.000000e+00> : vector<16xf32>
    %399 = vector.multi_reduction <add>, %396, %cst_140 [1] : vector<16x64xf32> to vector<16xf32>
    %400 = vector.shape_cast %399 : vector<16xf32> to vector<16x1xf32>
    %cst_141 = arith.constant 6.400000e+01 : f32
    %401 = vector.broadcast %cst_141 : f32 to vector<16x1xf32>
    %402 = arith.divf %400, %401 : vector<16x1xf32>
    %403 = vector.broadcast %402 : vector<16x1xf32> to vector<16x64xf32>
    %404 = arith.subf %396, %403 : vector<16x64xf32>
    %405 = arith.mulf %404, %404 : vector<16x64xf32>
    %cst_142 = arith.constant dense<0.000000e+00> : vector<16xf32>
    %406 = vector.multi_reduction <add>, %405, %cst_142 [1] : vector<16x64xf32> to vector<16xf32>
    %407 = vector.shape_cast %406 : vector<16xf32> to vector<16x1xf32>
    %cst_143 = arith.constant 6.400000e+01 : f32
    %408 = vector.broadcast %cst_143 : f32 to vector<16x1xf32>
    %409 = arith.divf %407, %408 : vector<16x1xf32>
    %cst_144 = arith.constant 9.99999974E-6 : f32
    %410 = vector.broadcast %cst_144 : f32 to vector<16x1xf32>
    %411 = arith.addf %409, %410 : vector<16x1xf32>
    %412 = math.rsqrt %411 : vector<16x1xf32>
    %413 = vector.broadcast %412 : vector<16x1xf32> to vector<16x64xf32>
    %414 = arith.mulf %404, %413 : vector<16x64xf32>
    %415 = vector.broadcast %397 : vector<1x64xf32> to vector<16x64xf32>
    %416 = arith.mulf %414, %415 : vector<16x64xf32>
    %417 = vector.broadcast %398 : vector<1x64xf32> to vector<16x64xf32>
    %418 = arith.addf %416, %417 : vector<16x64xf32>
    %c0_145 = arith.constant 0 : index
    %c0_146 = arith.constant 0 : index
    %419 = vector.load %arg9[%c0_145, %c0_146] : memref<64x576xbf16, #tpu.memory_space<vmem>>, vector<64x512xbf16>
    %420 = arith.truncf %418 : vector<16x64xf32> to vector<16x64xbf16>
    %cst_147 = arith.constant dense<0.000000e+00> : vector<16x512xf32>
    %421 = tpu.matmul %420, %419, %cst_147 {dimension_numbers = #tpu.dot_dimension_numbers<[1], [0], [0], [1], [0, 0, 1, 1], [], []>} : vector<16x64xbf16>, vector<64x512xbf16>, vector<16x512xf32> -> vector<16x512xf32>
    %c27 = arith.constant 27 : index
    %c0_148 = arith.constant 0 : index
    %422 = vector.load %arg6[%c27, %c0_148] : memref<28x512xf32, #tpu.memory_space<vmem>>, vector<1x512xf32>
    %423 = vector.broadcast %422 : vector<1x512xf32> to vector<16x512xf32>
    %424 = arith.addf %421, %423 : vector<16x512xf32>
    %c0_149 = arith.constant 0 : index
    %c0_150 = arith.constant 0 : index
    %425 = vector.load %arg5[%c0_149, %c0_150] : memref<16x1xi32, #tpu.memory_space<vmem>>, vector<16x1xi32>
    %cst_151 = arith.constant dense<0xFF800000> : vector<16xf32>
    %426 = vector.multi_reduction <maximumf>, %424, %cst_151 [1] : vector<16x512xf32> to vector<16xf32>
    %427 = vector.shape_cast %426 : vector<16xf32> to vector<16x1xf32>
    %428 = vector.broadcast %427 : vector<16x1xf32> to vector<16x512xf32>
    %429 = arith.subf %424, %428 : vector<16x512xf32>
    %430 = math.exp %429 : vector<16x512xf32>
    %cst_152 = arith.constant dense<0.000000e+00> : vector<16xf32>
    %431 = vector.multi_reduction <add>, %430, %cst_152 [1] : vector<16x512xf32> to vector<16xf32>
    %432 = vector.shape_cast %431 : vector<16xf32> to vector<16x1xf32>
    %433 = math.log %432 : vector<16x1xf32>
    %434 = arith.addf %427, %433 : vector<16x1xf32>
    %435 = tpu.iota {dimensions = array<i32: 1>} : vector<16x512xi32>
    %436 = vector.broadcast %425 : vector<16x1xi32> to vector<16x512xi32>
    %437 = arith.cmpi eq, %435, %436 : vector<16x512xi32>
    %cst_153 = arith.constant 0.000000e+00 : f32
    %438 = vector.broadcast %cst_153 : f32 to vector<16x512xf32>
    %439 = arith.select %437, %424, %438 : vector<16x512xi1>, vector<16x512xf32>
    %cst_154 = arith.constant dense<0.000000e+00> : vector<16xf32>
    %440 = vector.multi_reduction <add>, %439, %cst_154 [1] : vector<16x512xf32> to vector<16xf32>
    %441 = vector.shape_cast %440 : vector<16xf32> to vector<16x1xf32>
    %c0_i32 = arith.constant 0 : i32
    %442 = vector.broadcast %c0_i32 : i32 to vector<16x1xi32>
    %443 = arith.cmpi ne, %425, %442 : vector<16x1xi32>
    %444 = arith.extui %443 : vector<16x1xi1> to vector<16x1xi32>
    %445 = arith.sitofp %444 : vector<16x1xi32> to vector<16x1xf32>
    %446 = vector.shape_cast %445 : vector<16x1xf32> to vector<1x16x1xf32>
    %cst_155 = arith.constant dense<0.000000e+00> : vector<1xf32>
    %447 = vector.multi_reduction <add>, %446, %cst_155 [1, 2] : vector<1x16x1xf32> to vector<1xf32>
    %448 = vector.shape_cast %447 : vector<1xf32> to vector<1x1x1xf32>
    %449 = vector.extract %448[0, 0, 0] : f32 from vector<1x1x1xf32>
    %cst_156 = arith.constant 1.000000e+00 : f32
    %450 = arith.maximumf %449, %cst_156 : f32
    %451 = arith.subf %434, %441 : vector<16x1xf32>
    %452 = arith.mulf %451, %445 : vector<16x1xf32>
    %453 = vector.shape_cast %452 : vector<16x1xf32> to vector<1x16x1xf32>
    %cst_157 = arith.constant dense<0.000000e+00> : vector<1xf32>
    %454 = vector.multi_reduction <add>, %453, %cst_157 [1, 2] : vector<1x16x1xf32> to vector<1xf32>
    %455 = vector.shape_cast %454 : vector<1xf32> to vector<1x1x1xf32>
    %456 = vector.extract %455[0, 0, 0] : f32 from vector<1x1x1xf32>
    %457 = arith.divf %456, %450 : f32
    %458 = vector.broadcast %427 : vector<16x1xf32> to vector<16x512xf32>
    %459 = arith.cmpf oeq, %424, %458 : vector<16x512xf32>
    %c512_i32 = arith.constant 512 : i32
    %460 = vector.broadcast %c512_i32 : i32 to vector<16x512xi32>
    %461 = arith.select %459, %435, %460 : vector<16x512xi1>, vector<16x512xi32>
    %cst_158 = arith.constant dense<2147483647> : vector<16xi32>
    %462 = vector.multi_reduction <minsi>, %461, %cst_158 [1] : vector<16x512xi32> to vector<16xi32>
    %463 = vector.shape_cast %462 : vector<16xi32> to vector<16x1xi32>
    %464 = arith.cmpi eq, %463, %425 : vector<16x1xi32>
    %465 = arith.extui %464 : vector<16x1xi1> to vector<16x1xi32>
    %466 = arith.sitofp %465 : vector<16x1xi32> to vector<16x1xf32>
    %467 = arith.mulf %466, %445 : vector<16x1xf32>
    %468 = vector.shape_cast %467 : vector<16x1xf32> to vector<1x16x1xf32>
    %cst_159 = arith.constant dense<0.000000e+00> : vector<1xf32>
    %469 = vector.multi_reduction <add>, %468, %cst_159 [1, 2] : vector<1x16x1xf32> to vector<1xf32>
    %470 = vector.shape_cast %469 : vector<1xf32> to vector<1x1x1xf32>
    %471 = vector.extract %470[0, 0, 0] : f32 from vector<1x1x1xf32>
    %472 = arith.divf %471, %450 : f32
    %473 = tpu.iota {dimensions = array<i32: 1>} : vector<1x128xi32>
    %c0_i32_160 = arith.constant 0 : i32
    %474 = vector.broadcast %c0_i32_160 : i32 to vector<1x128xi32>
    %475 = arith.cmpi eq, %473, %474 : vector<1x128xi32>
    %cst_161 = arith.constant 0.000000e+00 : f32
    %476 = vector.broadcast %60 : f32 to vector<1x128xf32>
    %477 = vector.broadcast %cst_161 : f32 to vector<1x128xf32>
    %478 = arith.select %475, %476, %477 : vector<1x128xi1>, vector<1x128xf32>
    %c1_i32 = arith.constant 1 : i32
    %479 = vector.broadcast %c1_i32 : i32 to vector<1x128xi32>
    %480 = arith.cmpi eq, %473, %479 : vector<1x128xi32>
    %cst_162 = arith.constant 0.000000e+00 : f32
    %481 = vector.broadcast %457 : f32 to vector<1x128xf32>
    %482 = vector.broadcast %cst_162 : f32 to vector<1x128xf32>
    %483 = arith.select %480, %481, %482 : vector<1x128xi1>, vector<1x128xf32>
    %484 = arith.addf %478, %483 : vector<1x128xf32>
    %c2_i32 = arith.constant 2 : i32
    %485 = vector.broadcast %c2_i32 : i32 to vector<1x128xi32>
    %486 = arith.cmpi eq, %473, %485 : vector<1x128xi32>
    %cst_163 = arith.constant 0.000000e+00 : f32
    %487 = vector.broadcast %472 : f32 to vector<1x128xf32>
    %488 = vector.broadcast %cst_163 : f32 to vector<1x128xf32>
    %489 = arith.select %486, %487, %488 : vector<1x128xi1>, vector<1x128xf32>
    %490 = arith.addf %484, %489 : vector<1x128xf32>
    %c0_164 = arith.constant 0 : index
    %c0_165 = arith.constant 0 : index
    %491 = vector.load %arg10[%c0_164, %c0_165] : memref<1x128xf32, #tpu.memory_space<vmem>>, vector<1x128xf32>
    tpu.vector_store %arg10[%c0_164, %c0_165], %490 {strides = array<i32>} : memref<1x128xf32, #tpu.memory_space<vmem>>, vector<1x128xf32>,
    return
  }
}

</mosaic_0001>

<bundles_post_ra>
// kernel: fwd.1
= control target key start
LH: loop header
LB: loop body
LE: loop exit
PB: predicated region body
PF: predicated region fallthrough
CT: control target
= control target key end

     0   :  { %vm53_vm0 = vcmask 523264   ;;  %vm260_vm1 = vcmask 516096   ;;  %s4724_s30 = smov 64   ;;  %vm40_vm2 = vcmask 517120   ;;  %v4725_v28 = vmov 0.0   ;;  %s4729_s14 = smov 1.0   ;;  %s5917_s4 = inlined_call_operand.vmem [shape: f32[2,17,64], index: 4, kind: input, shape index: {}]   ;;  %s5918_s7 = inlined_call_operand.vmem [shape: bf16[5,64,256], index: 7, kind: input, shape index: {}]   ;;  %s5919_s3 = inlined_call_operand.vmem [shape: f32[16,64], index: 3, kind: input, shape index: {}]   ;;  %s5920_s1 = inlined_call_operand.vmem [shape: f32[2,64], index: 1, kind: input, shape index: {}]   ;;  %s5921_s0 = inlined_call_operand.vmem [shape: f32[2,64], index: 0, kind: input, shape index: {}]   ;;  %s5922_s6 = inlined_call_operand.vmem [shape: f32[28,512], index: 6, kind: input, shape index: {}]   ;;  %s5923_s8 = inlined_call_operand.vmem [shape: bf16[2,256,64], index: 8, kind: input, shape index: {}]   ;;  %s5924_s9 = inlined_call_operand.vmem [shape: bf16[64,576], index: 9, kind: input, shape index: {}]   ;;  %s5925_s2 = inlined_call_operand.<no memory space> [shape: f32[1,1], index: 2, kind: input, shape index: {}]   ;;  %s5926_s5 = inlined_call_operand.vmem [shape: s32[16,1], index: 5, kind: input, shape index: {}]   ;;  %s5927_s10 = inlined_call_operand.vmem [shape: f32[1,128], index: 10, kind: output, shape index: {}]  }
   0x1   :  { %v246_v0 = vld [vmem:[%s5917_s4] sm:$0xff]  ;;  %v249_v1 = vld [vmem:[%s5917_s4 + $0x18] sm:$0xff]  ;;  %v4794_v2 = vld [vmem:[%s5917_s4 + $0x8] sm:$0xff]  ;;  %4298 = vmatprep.subr.bf16.mxu0 %v4725_v28  ;;  %4281 = vmatprep.subr.mxu1 %v4725_v28  ;;  %vm4726_vm3 = vmmov 0   ;;  %vm1638_vm4 = vcmask 138240   ;;  %vm1673_vm5 = vcmask 1040384  }
   0x2   :  { %v254_v3 = vsel %vm53_vm0, %v246_v0, 0.0  ;;  %v264_v4 = vsel %vm53_vm0, %v249_v1, 0.0  ;;  %v4801_v5 = vld [vmem:[%s5917_s4 + $0x20] sm:$0xff]  ;;  %v257_v6 = vsel %vm53_vm0, %v4794_v2, 0.0  ;;  %v4810_v8 = vld [vmem:[%s5917_s4 + $0x10] sm:$0x1]  ;;  %4283 = vmatprep.mubr.msk.f32.mxu1 %vm4726_vm3, %v4725_v28  ;;  %4306 = vmatprep.mubr.msk.bf16.mxu0 %vm4726_vm3, %v4725_v28 }
   0x3   :  { %255 = vadd.xlane.f32.xlu0 %v254_v3  ;;  %265 = vadd.xlane.f32.xlu1 %v264_v4  ;;  %v267_v7 = vsel %vm53_vm0, %v4801_v5, 0.0  ;;  %v4815_v9 = vld [vmem:[%s5917_s4 + $0x28] sm:$0x1]  ;;  %v261_v10 = vsel %vm260_vm1, %v4810_v8, 0.0  ;;  %v4829_v13 = vld [vmem:[%s5919_s3] sm:$0xff]  ;;  %vm2095_vm6 = vcmask 1043456  }
   0x4   :  { %v270_v11 = vsel %vm260_vm1, %v4815_v9, 0.0  ;;  %v4824_v12 = vld [vmem:[%s5919_s3 + $0x8] sm:$0xff]  ;;  %v215_v15 = vsel %vm53_vm0, %v4829_v13, 0.0  ;;  %v4842_v17 = vld [vmem:[%s5918_s7 + $0x10] ss:$8 sps:$4 sm:$0xff]   ;;  %vm2065_vm7 = vcmask 64512  }
   0x5   :  { %v218_v14 = vsel %vm53_vm0, %v4824_v12, 0.0  ;;  %v4466_v16 = vld [vmem:[%s5918_s7 + $0x4] ss:$8 sps:$4 sm:$0xff]   ;;  %v4847_v18 = vld [vmem:[%s5918_s7] ss:$8 sps:$4 sm:$0xff]   ;;  %vm137_vm8 = vcmask 9216  }
   0x6   :  { %v4470_v19 = vld [vmem:[%s5918_s7 + $0x14] ss:$8 sps:$4 sm:$0xff]   ;;  %v4860_v20 = vld [vmem:[%s5918_s7 + $0x20] ss:$8 sps:$4 sm:$0xff]   ;;  %v4473_v21 = vld [vmem:[%s5918_s7 + $0x24] ss:$8 sps:$4 sm:$0xff]  }
   0x7   :  { %258 = vadd.xlane.f32.xlu0 %v257_v6  ;;  %268 = vadd.xlane.f32.xlu1 %v267_v7  ;;  %v4871_v22 = vld [vmem:[%s5920_s1] sm:$0x3]  ;;  %v4477_v7 = vld [vmem:[%s5918_s7 + $0x30] ss:$8 sps:$4 sm:$0xff]  }
   0x8   :  { %v46_v23 = vmul.f32 %v4871_v22, %v4871_v22  ;;  %v4878_v25 = vld [vmem:[%s5921_s0] sm:$0x3] }
   0x9   :  { %v39_v26 = vmul.f32 %v4878_v25, %v4878_v25 }
   0xa   :  { %v47_v24 = vsel %vm40_vm2, %v46_v23, 0.0 }
   0xb   :  { %262 = vadd.xlane.f32.xlu0 %v261_v10  ;;  %271 = vadd.xlane.f32.xlu1 %v270_v11  ;;  %v41_v27 = vsel %vm40_vm2, %v39_v26, 0.0 }
   0xf   :  { %219 = vadd.xlane.f32.xlu1 %v218_v14  ;;  %216 = vadd.xlane.f32.xlu0 %v215_v15 }
  0x20   :  { %796 = vrot.lane.b32.xlu1 %v4466_v16, %s4724_s30 }
  0x24   :  { %798 = vrot.lane.b32.xlu1 %v4842_v17, %s4724_s30 }
  0x25   :  { %794 = vrot.lane.b32.xlu0 %v4847_v18, %s4724_s30 }
  0x28   :  { %800 = vrot.lane.b32.xlu1 %v4470_v19, %s4724_s30 }
  0x2c   :  { %802 = vrot.lane.b32.xlu1 %v4860_v20, %s4724_s30 }
  0x30   :  { %804 = vrot.lane.b32.xlu1 %v4473_v21, %s4724_s30 }
  0x44   :  { %48 = vadd.xlane.f32.xlu0 %v47_v24 }
  0x54   :  { %42 = vadd.xlane.f32.xlu1 %v41_v27  ;;  %v4727_v27 = vmov 1966171168  }
  0x90   :  { %v256_v29 = vpop.xlane.xlu0 %255  ;;  %v266_v30 = vpop.xlane.xlu1 %265 }
  0x91   :  { %v273_v31 = vmul.f32 0.015625, %v256_v29  ;;  %v276_v32 = vmul.f32 0.015625, %v266_v30 }
  0x93   :  { %v4888_v33 = vsub.f32 %v246_v0, %v273_v31  ;;  %v4890_v34 = vsub.f32 %v249_v1, %v276_v32 }
  0x94   :  { %v259_v35 = vpop.xlane.xlu0 %258  ;;  %v269_v36 = vpop.xlane.xlu1 %268 }
  0x95   :  { %v274_v37 = vmul.f32 0.015625, %v259_v35  ;;  %v277_v38 = vmul.f32 0.015625, %v269_v36  ;;  %v285_v39 = vmul.f32 %v4888_v33, %v4888_v33  ;;  %v288_v40 = vmul.f32 %v4890_v34, %v4890_v34 }
  0x97   :  { %v4897_v41 = vsub.f32 %v4794_v2, %v274_v37  ;;  %v4900_v42 = vsub.f32 %v4801_v5, %v277_v38  ;;  %v291_v43 = vsel %vm53_vm0, %v285_v39, 0.0  ;;  %v300_v46 = vsel %vm53_vm0, %v288_v40, 0.0  ;;  %v4475_v5 = vld [vmem:[%s5918_s7 + $0x34] ss:$8 sps:$4 sm:$0xff]  }
  0x98   :  { %v263_v44 = vpop.xlane.xlu0 %262  ;;  %292 = vadd.xlane.f32.xlu0 %v291_v43  ;;  %v272_v45 = vpop.xlane.xlu1 %271 }
  0x99   :  { %v275_v47 = vmul.f32 0.015625, %v263_v44  ;;  %v278_v48 = vmul.f32 0.015625, %v272_v45  ;;  %v286_v49 = vmul.f32 %v4897_v41, %v4897_v41  ;;  %v289_v50 = vmul.f32 %v4900_v42, %v4900_v42 }
  0x9b   :  { %v4909_v51 = vsub.f32 %v4810_v8, %v275_v47  ;;  %v4912_v52 = vsub.f32 %v4815_v9, %v278_v48  ;;  %v294_v53 = vsel %vm53_vm0, %v286_v49, 0.0  ;;  %v303_v57 = vsel %vm53_vm0, %v289_v50, 0.0 }
  0x9c   :  { %301 = vadd.xlane.f32.xlu0 %v300_v46  ;;  %295 = vadd.xlane.f32.xlu1 %v294_v53  ;;  %v217_v54 = vpop.xlane.xlu0 %216  ;;  %v220_v55 = vpop.xlane.xlu1 %219 }
  0x9d   :  { %v287_v56 = vmul.f32 %v4909_v51, %v4909_v51  ;;  %v290_v58 = vmul.f32 %v4912_v52, %v4912_v52  ;;  %v222_v8 = vmul.f32 0.015625, %v217_v54  ;;  %v223_v10 = vmul.f32 0.015625, %v220_v55 }
  0x9f   :  { %v297_v59 = vsel %vm260_vm1, %v287_v56, 0.0  ;;  %v306_v62 = vsel %vm260_vm1, %v290_v58, 0.0  ;;  %v4946_v9 = vsub.f32 %v4829_v13, %v222_v8  ;;  %v4949_v11 = vsub.f32 %v4824_v12, %v223_v10 }
  0xa0   :  { %298 = vadd.xlane.f32.xlu0 %v297_v59  ;;  %304 = vadd.xlane.f32.xlu1 %v303_v57  ;;  %v4921_v60 = vpop.permute.xlu1 %796  ;;  %v795_v61 = vpop.permute.xlu0 %794 }
  0xa1   :  { %v811_v63 = vsel %vm53_vm0, %v795_v61, %v4921_v60  ;;  %v226_v14 = vmul.f32 %v4946_v9, %v4946_v9  ;;  %v227_v19 = vmul.f32 %v4949_v11, %v4949_v11 }
  0xa2   :  { %4299 = vmatpush3.bf16.msra.mxu0 %v811_v63 }
  0xa3   :  { %4300 = vmatprep.subr.bf16.mxu0 %v4725_v28  ;;  %v228_v16 = vsel %vm53_vm0, %v226_v14, 0.0  ;;  %v231_v21 = vsel %vm53_vm0, %v227_v19, 0.0 }
  0xa4   :  { %307 = vadd.xlane.f32.xlu1 %v306_v62  ;;  %v799_v0 = vpop.permute.xlu1 %798 }
  0xa8   :  { %v4927_v1 = vpop.permute.xlu1 %800 }
  0xa9   :  { %v812_v2 = vsel %vm53_vm0, %v799_v0, %v4927_v1 }
  0xaa   :  { %4301 = vmatpush3.bf16.msra.mxu0 %v812_v2 }
  0xab   :  { %4302 = vmatprep.subr.bf16.mxu0 %v4725_v28 }
  0xac   :  { %v803_v3 = vpop.permute.xlu1 %802 }
  0xb0   :  { %v4932_v4 = vpop.permute.xlu1 %804 }
  0xb1   :  { %v813_v6 = vsel %vm53_vm0, %v803_v3, %v4932_v4 }
  0xb2   :  { %4303 = vmatpush3.bf16.msra.mxu0 %v813_v6 }
  0xb3   :  { %4304 = vmatprep.subr.bf16.mxu0 %v4725_v28 }
  0xb5   :  { %808 = vrot.lane.b32.xlu1 %v4475_v5, %s4724_s30 }
  0xb6   :  { %806 = vrot.lane.b32.xlu0 %v4477_v7, %s4724_s30 }
  0xd1   :  { %v49_v15 = vpop.xlane.xlu0 %48 }
  0xd2   :  { %4586 = vrsqrt.f32 %v49_v15 }
  0xd5   :  { %229 = vadd.xlane.f32.xlu0 %v228_v16 }
  0xd9   :  { %232 = vadd.xlane.f32.xlu1 %v231_v21 }
  0xdc   :  { %v4587_v13 = vpop.eup %4586 }
  0xdd   :  { %v51_v23 = vmul.f32 %v4587_v13, %v4871_v22  ;;  %v132_v22 = vlaneseq }
  0xdf   :  { %4282 = vmatpush3.xpose.msk.msra.mxu1 %vm53_vm0, %v51_v23  ;;  %v4971_v29 = vshrl.u32 %v132_v22, 7 }
  0xe0   :  { %4286 = vmatprep.subr.bf16.mxu1 %v4725_v28 }
  0xe1   :  { %v43_v12 = vpop.xlane.xlu1 %42  ;;  %v4978_v30 = vsub.s32 0, %v4971_v29 }
  0xe2   :  { %4588 = vrsqrt.f32 %v43_v12 }
  0xec   :  { %v4589_v24 = vpop.eup %4588 }
  0xed   :  { %v45_v26 = vmul.f32 %v4589_v24, %v4878_v25  ;;  %v445_v25 = vunpack.c.l.s4 %v4727_v27 }
  0xef   :  { %4284 = vmatmul.mubr.msk.f32.vlgmr.msra.gmra.mrb[0].mxu1 %vm53_vm0, %v45_v26 }
  0xf0   :  { %4287 = vmatpush3.bf16.msra.mxu1 %v4847_v18  ;;  %4294 = vmatprep.mubr.msk.bf16.mxu1 %vm4726_vm3, %v4725_v28  ;;  %v446_v18 = vunpack.c.0.s8 %v445_v25 }
  0xf1   :  { %4288 = vmatprep.subr.bf16.mxu1 %v4725_v28 }
  0xf2   :  { %v4988_v35 = vsub.s32 %v446_v18, %v4971_v29 }
  0xf4   :  { %4289 = vmatpush3.bf16.msra.mxu1 %v4842_v17  ;;  %v3954_v17 = vld [vmem:[%s5922_s6 + $0x6] ss:$8 sm:$0x3] }
  0xf5   :  { %4290 = vmatprep.subr.bf16.mxu1 %v4725_v28  ;;  %v4984_v31 = vrot.slane %v3954_v17, %v4978_v30 }
  0xf8   :  { %4291 = vmatpush3.bf16.msra.mxu1 %v4860_v20  ;;  %v4981_v20 = vsub.s32 1, %v4971_v29 }
  0xf9   :  { %4292 = vmatprep.subr.bf16.mxu1 %v4725_v28 }
  0xfa   :  { %v438_v32 = vrot.slane %v3954_v17, %v4981_v20 }
  0xfc   :  { %4293 = vmatpush3.bf16.msra.mxu1 %v4477_v7  ;;  %v603_v36 = vcombine.low %v4984_v31, %v438_v32  ;;  %v604_v37 = vcombine.high %v4984_v31, %v438_v32 }
  0xfd   :  { %4318 = vmatprep.subr.bf16.mxu1 %v4725_v28 }
  0xfe   :  { %v611_v38 = vrot.slane %v603_v36, %v4988_v35  ;;  %v618_v39 = vrot.slane %v604_v37, %v4988_v35 }
 0x100   :  { %v619_v40 = vcombine.high %v611_v38, %v611_v38  ;;  %v620_v43 = vcombine.high %v618_v39, %v618_v39  ;;  %v627_v44 = vrot.slane %v611_v38, %v4988_v35  ;;  %v634_v45 = vrot.slane %v618_v39, %v4988_v35 }
 0x102   :  { %v641_v46 = vrot.slane %v619_v40, %v4988_v35  ;;  %v648_v47 = vrot.slane %v620_v43, %v4988_v35  ;;  %v649_v48 = vcombine.high %v627_v44, %v627_v44  ;;  %v650_v49 = vcombine.high %v634_v45, %v634_v45 }
 0x103   :  { %v885_v50 = vcombine.low %v627_v44, %v627_v44 }
 0x104   :  { %v819_v53 = vcombine.low %v627_v44, %v641_v46  ;;  %v3977_v54 = vcombine.high %v627_v44, %v641_v46  ;;  %v821_v55 = vcombine.low %v634_v45, %v648_v47  ;;  %v3978_v56 = vcombine.high %v634_v45, %v648_v47 }
 0x105   :  { %v651_v57 = vcombine.high %v641_v46, %v641_v46  ;;  %v886_v58 = vcombine.low %v641_v46, %v649_v48  ;;  %v888_v59 = vcombine.low %v648_v47, %v650_v49  ;;  %v895_v61 = vrot.slane %v885_v50, %v4988_v35 }
 0x106   :  { %v829_v62 = vrot.slane %v819_v53, %v4988_v35  ;;  %v836_v63 = vrot.slane %v3977_v54, %v4988_v35  ;;  %v843_v0 = vrot.slane %v821_v55, %v4988_v35  ;;  %v850_v2 = vrot.slane %v3978_v56, %v4988_v35 }
 0x107   :  { %v887_v3 = vcombine.low %v651_v57, %v634_v45  ;;  %v902_v5 = vrot.slane %v886_v58, %v4988_v35  ;;  %v916_v6 = vrot.slane %v888_v59, %v4988_v35  ;;  %v652_v7 = vcombine.high %v648_v47, %v648_v47 }
 0x108   :  { %v851_v8 = vcombine.low %v829_v62, %v836_v63  ;;  %v853_v10 = vcombine.low %v843_v0, %v850_v2  ;;  %v852_v14 = vcombine.high %v829_v62, %v836_v63  ;;  %v854_v15 = vcombine.high %v843_v0, %v850_v2 }
 0x109   :  { %v909_v16 = vrot.slane %v887_v3, %v4988_v35  ;;  %v917_v19 = vcombine.low %v895_v61, %v902_v5  ;;  %v918_v21 = vcombine.high %v895_v61, %v902_v5  ;;  %v951_v13 = vcombine.low %v652_v7, %v627_v44 }
 0x10a   :  { %v861_v23 = vrot.slane %v851_v8, %v4988_v35  ;;  %v875_v12 = vrot.slane %v853_v10, %v4988_v35  ;;  %v868_v24 = vrot.slane %v852_v14, %v4988_v35  ;;  %v882_v26 = vrot.slane %v854_v15, %v4988_v35 }
 0x10b   :  { %v919_v27 = vcombine.low %v909_v16, %v916_v6  ;;  %v927_v25 = vrot.slane %v917_v19, %v4988_v35  ;;  %v920_v18 = vcombine.high %v909_v16, %v916_v6  ;;  %v958_v36 = vrot.slane %v951_v13, %v4988_v35 }
 0x10c   :  { %v883_v17 = vcombine.low %v861_v23, %v875_v12  ;;  %v884_v32 = vcombine.low %v868_v24, %v882_v26  ;;  %v934_v38 = vrot.slane %v918_v21, %v4988_v35  ;;  %v252_v12 = vld [vmem:[%s5922_s6 + $0x2] ss:$0 sm:$0xff] }
 0x10d   :  { %v941_v37 = vrot.slane %v919_v27, %v4988_v35  ;;  %v948_v39 = vrot.slane %v920_v18, %v4988_v35  ;;  %v959_v40 = vcombine.low %v958_v36, %v902_v5  ;;  %v960_v43 = vcombine.high %v958_v36, %v902_v5 }
 0x10e   :  { %992 = vrot.lane.b32.xlu0 %v883_v17, %s4724_s30  ;;  %994 = vrot.lane.b32.xlu1 %v884_v32, %s4724_s30  ;;  %v977_v46 = vcombine.high %v958_v36, %v958_v36  ;;  %v984_v54 = vrot.slane %v958_v36, %v4988_v35 }
 0x10f   :  { %v949_v44 = vcombine.low %v927_v25, %v941_v37  ;;  %v974_v45 = vrot.slane %v960_v43, %v4988_v35  ;;  %v950_v47 = vcombine.low %v934_v38, %v948_v39  ;;  %v967_v48 = vrot.slane %v959_v40, %v4988_v35 }
 0x110   :  { %v991_v50 = vrot.slane %v977_v46, %v4988_v35 }
 0x111   :  { %v976_v49 = vcombine.low %v974_v45, %v948_v39  ;;  %v975_v53 = vcombine.low %v967_v48, %v941_v37 }
 0x112   :  { %996 = vrot.lane.b32.xlu0 %v949_v44, %s4724_s30 }
 0x113   :  { %1002 = vrot.lane.b32.xlu1 %v976_v49, %s4724_s30 }
 0x116   :  { %998 = vrot.lane.b32.xlu0 %v950_v47, %s4724_s30 }
 0x117   :  { %1006 = vrot.lane.b32.xlu1 %v991_v50, %s4724_s30 }
 0x11a   :  { %1000 = vrot.lane.b32.xlu0 %v975_v53, %s4724_s30 }
 0x11e   :  { %1004 = vrot.lane.b32.xlu0 %v984_v54, %s4724_s30 }
 0x125   :  { %v293_v55 = vpop.xlane.xlu0 %292 }
 0x126   :  { %v309_v56 = vmul.f32 0.015625, %v293_v55 }
 0x128   :  { %v315_v57 = vadd.f32 1e-05, %v309_v56 }
 0x129   :  { %v302_v58 = vpop.xlane.xlu0 %301  ;;  %v296_v59 = vpop.xlane.xlu1 %295 }
 0x12a   :  { %4590 = vrsqrt.f32 %v315_v57  ;;  %v312_v61 = vmul.f32 0.015625, %v302_v58  ;;  %v310_v62 = vmul.f32 0.015625, %v296_v59 }
 0x12c   :  { %v318_v63 = vadd.f32 1e-05, %v312_v61  ;;  %v316_v0 = vadd.f32 1e-05, %v310_v62 }
 0x12d   :  { %v299_v2 = vpop.xlane.xlu0 %298  ;;  %v305_v3 = vpop.xlane.xlu1 %304 }
 0x12e   :  { %4592 = vrsqrt.f32 %v318_v63  ;;  %v311_v5 = vmul.f32 0.015625, %v299_v2  ;;  %v313_v6 = vmul.f32 0.015625, %v305_v3 }
 0x12f   :  { %4594 = vrsqrt.f32 %v316_v0 }
 0x130   :  { %v317_v7 = vadd.f32 1e-05, %v311_v5  ;;  %v319_v8 = vadd.f32 1e-05, %v313_v6 }
 0x131   :  { %v308_v10 = vpop.xlane.xlu1 %307  ;;  %v807_v19 = vpop.permute.xlu0 %806 }
 0x132   :  { %4596 = vrsqrt.f32 %v317_v7  ;;  %v314_v14 = vmul.f32 0.015625, %v308_v10 }
 0x133   :  { %4598 = vrsqrt.f32 %v319_v8 }
 0x134   :  { %v4591_v15 = vpop.eup %4590  ;;  %v320_v16 = vadd.f32 1e-05, %v314_v14 }
 0x135   :  { %v5027_v21 = vpop.permute.xlu1 %808  ;;  %v327_v13 = vmul.f32 %v4591_v15, %v4888_v33  ;;  %v253_v33 = vld [vmem:[%s5922_s6 + $0x3] ss:$0 sm:$0xff] }
 0x136   :  { %4600 = vrsqrt.f32 %v320_v16  ;;  %v814_v23 = vsel %vm53_vm0, %v807_v19, %v5027_v21 }
 0x137   :  { %4305 = vmatpush3.bf16.msra.mxu0 %v814_v23  ;;  %v333_v27 = vmul.f32 %v327_v13, %v252_v12 }
 0x138   :  { %v4593_v24 = vpop.eup %4592  ;;  %4326 = vmatprep.subr.bf16.mxu0 %v4725_v28 }
 0x139   :  { %v4595_v26 = vpop.eup %4594  ;;  %v330_v25 = vmul.f32 %v4593_v24, %v4890_v34  ;;  %v339_v38 = vadd.f32 %v333_v27, %v253_v33 }
 0x13a   :  { %v328_v18 = vmul.f32 %v4595_v26, %v4897_v41 }
 0x13b   :  { %v336_v39 = vmul.f32 %v330_v25, %v252_v12 }
 0x13c   :  { %v4597_v17 = vpop.eup %4596  ;;  %v334_v32 = vmul.f32 %v328_v18, %v252_v12 }
 0x13d   :  { %v4599_v36 = vpop.eup %4598  ;;  %v329_v37 = vmul.f32 %v4597_v17, %v4909_v51  ;;  %v342_v49 = vadd.f32 %v336_v39, %v253_v33 }
 0x13e   :  { %v340_v40 = vadd.f32 %v334_v32, %v253_v33  ;;  %v331_v43 = vmul.f32 %v4599_v36, %v4900_v42 }
 0x13f   :  { %v335_v44 = vmul.f32 %v329_v37, %v252_v12 }
 0x140   :  { %v4601_v45 = vpop.eup %4600  ;;  %v431_v46 = vpack.c.bf16 %v340_v40, %v339_v38  ;;  %v3960_v34 = vpack.c.bf16 %v340_v40, %v340_v40  ;;  %v337_v47 = vmul.f32 %v331_v43, %v252_v12 }
 0x141   :  { %v341_v41 = vadd.f32 %v335_v44, %v253_v33  ;;  %v332_v48 = vmul.f32 %v4601_v45, %v4912_v52 }
 0x142   :  { %v343_v50 = vadd.f32 %v337_v47, %v253_v33  ;;  %v450_v53 = vrot.slane %v431_v46, %v4988_v35  ;;  %v457_v54 = vrot.slane %v3960_v34, %v4988_v35 }
 0x143   :  { %v432_v51 = vpack.c.bf16 %v341_v41, %v341_v41  ;;  %v338_v55 = vmul.f32 %v332_v48, %v252_v12 }
 0x144   :  { %v433_v56 = vpack.c.bf16 %v343_v50, %v342_v49  ;;  %v3961_v57 = vpack.c.bf16 %v343_v50, %v343_v50  ;;  %v458_v58 = vcombine.high %v450_v53, %v450_v53  ;;  %v459_v42 = vcombine.high %v457_v54, %v457_v54 }
 0x145   :  { %v498_v59 = vrot.slane %v432_v51, %v4988_v35  ;;  %v466_v61 = vrot.slane %v450_v53, %v4988_v35  ;;  %v344_v2 = vadd.f32 %v338_v55, %v253_v33  ;;  %v473_v3 = vrot.slane %v457_v54, %v4988_v35 }
 0x146   :  { %v513_v62 = vrot.slane %v433_v56, %v4988_v35  ;;  %v520_v52 = vrot.slane %v3961_v57, %v4988_v35  ;;  %v480_v63 = vrot.slane %v458_v58, %v4988_v35  ;;  %v487_v0 = vrot.slane %v459_v42, %v4988_v35 }
 0x147   :  { %v505_v5 = vrot.slane %v498_v59, %v4988_v35  ;;  %v434_v51 = vpack.c.bf16 %v344_v2, %v344_v2 }
 0x148   :  { %v521_v6 = vcombine.high %v513_v62, %v513_v62  ;;  %v522_v7 = vcombine.high %v520_v52, %v520_v52  ;;  %v670_v8 = vcombine.low %v466_v61, %v480_v63  ;;  %v3971_v10 = vcombine.high %v466_v61, %v480_v63 }
 0x149   :  { %v672_v14 = vcombine.low %v473_v3, %v487_v0  ;;  %v3972_v15 = vcombine.high %v473_v3, %v487_v0  ;;  %v529_v16 = vrot.slane %v513_v62, %v4988_v35  ;;  %v536_v19 = vrot.slane %v520_v52, %v4988_v35 }
 0x14a   :  { %v680_v13 = vrot.slane %v670_v8, %v4988_v35  ;;  %v687_v23 = vrot.slane %v3971_v10, %v4988_v35  ;;  %v543_v12 = vrot.slane %v521_v6, %v4988_v35  ;;  %v550_v24 = vrot.slane %v522_v7, %v4988_v35 }
 0x14b   :  { %v694_v26 = vrot.slane %v672_v14, %v4988_v35  ;;  %v701_v27 = vrot.slane %v3972_v15, %v4988_v35  ;;  %v551_v25 = vcombine.high %v529_v16, %v529_v16  ;;  %v552_v18 = vcombine.high %v536_v19, %v536_v19 }
 0x14c   :  { %v702_v33 = vcombine.low %v680_v13, %v687_v23  ;;  %v553_v17 = vcombine.high %v543_v12, %v543_v12  ;;  %v554_v32 = vcombine.high %v550_v24, %v550_v24  ;;  %v587_v36 = vunpack.i.h.s16 %v529_v16 }
 0x14d   :  { %v703_v37 = vcombine.low %v694_v26, %v701_v27  ;;  %v589_v38 = vunpack.i.h.s16 %v543_v12  ;;  %v591_v39 = vunpack.i.h.s16 %v551_v25  ;;  %v595_v40 = vunpack.i.h.s16 %v536_v19 }
 0x14e   :  { %v710_v43 = vrot.slane %v702_v33, %v4988_v35  ;;  %v593_v44 = vunpack.i.h.s16 %v553_v17  ;;  %v597_v45 = vunpack.i.h.s16 %v550_v24  ;;  %v599_v46 = vunpack.i.h.s16 %v552_v18 }
 0x14f   :  { %v717_v34 = vrot.slane %v703_v37, %v4988_v35  ;;  %v3962_v47 = vpack.i.b16 %v529_v16, %v505_v5  ;;  %v3963_v41 = vpack.i.b16 %v543_v12, %v587_v36  ;;  %v3964_v48 = vpack.i.b16 %v551_v25, %v589_v38  ;;  %v214_v36 = vld [vmem:[%s5922_s6 + $0x1] ss:$0 sm:$0xff] }
 0x150   :  { %v3965_v49 = vpack.i.b16 %v553_v17, %v591_v39  ;;  %v3966_v50 = vpack.i.b16 %v536_v19, %v593_v44  ;;  %v3967_v53 = vpack.i.b16 %v550_v24, %v595_v40  ;;  %v3968_v54 = vpack.i.b16 %v552_v18, %v597_v45  ;;  %v213_v18 = vld [vmem:[%s5922_s6] ss:$0 sm:$0xff] }
 0x151   :  { %v718_v55 = vcombine.low %v710_v43, %v717_v34  ;;  %v3969_v56 = vpack.i.b16 %v554_v32, %v599_v46  ;;  %v719_v57 = vcombine.low %v3962_v47, %v3963_v41  ;;  %v561_v0 = vrot.slane %v434_v51, %v4988_v35 }
 0x152   :  { %v720_v58 = vcombine.low %v3964_v48, %v3965_v49  ;;  %v721_v42 = vcombine.low %v3966_v50, %v3967_v53  ;;  %v601_v5 = vunpack.i.h.s16 %v554_v32 }
 0x153   :  { %4307 = vmatmul.mubr.msk.bf16.vlgmr.msra.gmra.mrb[0].mxu0 %vm53_vm0, %v718_v55  ;;  %v722_v59 = vcombine.low %v3968_v54, %v3969_v56  ;;  %v729_v61 = vrot.slane %v719_v57, %v4988_v35  ;;  %v568_v8 = vrot.slane %v561_v0, %v4988_v35 }
 0x154   :  { %4310 = vmatprep.mubr.msk.bf16.mxu0 %vm4726_vm3, %v4725_v28  ;;  %v736_v62 = vrot.slane %v720_v58, %v4988_v35  ;;  %v743_v52 = vrot.slane %v721_v42, %v4988_v35 }
 0x155   :  { %v750_v63 = vrot.slane %v722_v59, %v4988_v35  ;;  %v3970_v14 = vpack.i.b16 %v568_v8, %v601_v5 }
 0x156   :  { %v751_v2 = vcombine.low %v729_v61, %v736_v62 }
 0x157   :  { %v752_v3 = vcombine.low %v743_v52, %v750_v63  ;;  %v774_v15 = vrot.slane %v3970_v14, %v4988_v35 }
 0x158   :  { %v759_v6 = vrot.slane %v751_v2, %v4988_v35 }
 0x159   :  { %v766_v7 = vrot.slane %v752_v3, %v4988_v35  ;;  %v781_v13 = vrot.slane %v774_v15, %v4988_v35 }
 0x15b   :  { %v767_v10 = vcombine.low %v759_v6, %v766_v7 }
 0x15d   :  { %4311 = vmatmul.mubr.msk.bf16.gmra.mrb[4].mxu0 %vm53_vm0, %v767_v10 }
 0x15e   :  { %4314 = vmatprep.mubr.msk.bf16.mxu0 %vm4726_vm3, %v4725_v28 }
 0x162   :  { %v230_v16 = vpop.xlane.xlu0 %229 }
 0x163   :  { %v234_v19 = vmul.f32 0.015625, %v230_v16 }
 0x165   :  { %v236_v23 = vadd.f32 1e-05, %v234_v19  ;;  %4315 = vmatmul.mubr.msk.bf16.gmra.mrb[8].mxu0 %vm53_vm0, %v781_v13 }
 0x166   :  { %v233_v12 = vpop.xlane.xlu1 %232  ;;  %4330 = vmatprep.mubr.msk.bf16.mxu0 %vm4726_vm3, %v4725_v28 }
 0x167   :  { %4602 = vrsqrt.f32 %v236_v23  ;;  %v235_v24 = vmul.f32 0.015625, %v233_v12 }
 0x169   :  { %v237_v26 = vadd.f32 1e-05, %v235_v24 }
 0x16b   :  { %4604 = vrsqrt.f32 %v237_v26 }
 0x171   :  { %v4603_v27 = vpop.eup %4602 }
 0x172   :  { %v240_v25 = vmul.f32 %v4603_v27, %v4946_v9 }
 0x174   :  { %v242_v17 = vmul.f32 %v240_v25, %v213_v18 }
 0x175   :  { %v4605_v33 = vpop.eup %4604 }
 0x176   :  { %v241_v32 = vmul.f32 %v4605_v33, %v4949_v11  ;;  %v244_v38 = vadd.f32 %v242_v17, %v214_v36 }
 0x178   :  { %v243_v37 = vmul.f32 %v241_v32, %v213_v18 }
 0x17a   :  { %v245_v39 = vadd.f32 %v243_v37, %v214_v36 }
 0x17c   :  { %v356_v40 = vpack.c.bf16 %v245_v39, %v244_v38 }
 0x17e   :  { %4295 = vmatmul.mubr.msk.bf16.vlgmr.msra.gmra.mrb[4].mxu1 %vm53_vm0, %v356_v40 }
 0x17f   :  { %4322 = vmatprep.mubr.msk.bf16.mxu1 %vm4726_vm3, %v4725_v28 }
 0x180   :  { %v993_v44 = vpop.permute.xlu0 %992  ;;  %v995_v46 = vpop.permute.xlu1 %994 }
 0x181   :  { %v1008_v11 = vsel %vm53_vm0, %v993_v44, %v995_v46 }
 0x184   :  { %v997_v45 = vpop.permute.xlu0 %996 }
 0x185   :  { %v1003_v59 = vpop.permute.xlu1 %1002 }
 0x188   :  { %v999_v48 = vpop.permute.xlu0 %998 }
 0x189   :  { %v1007_v16 = vpop.permute.xlu1 %1006  ;;  %v1009_v13 = vsel %vm53_vm0, %v997_v45, %v999_v48 }
 0x18c   :  { %v1001_v58 = vpop.permute.xlu0 %1000 }
 0x18d   :  { %v1010_v5 = vsel %vm53_vm0, %v1001_v58, %v1003_v59 }
 0x190   :  { %v1005_v6 = vpop.permute.xlu0 %1004 }
 0x191   :  { %v1011_v32 = vsel %vm53_vm0, %v1005_v6, %v1007_v16 }
 0x1c2   :  { %v5094_v9 = vpop.f32.mrb[0].mxu1 }
 0x1c3   :  { %v4285_v43 = vpop.f32.mrb[1].mxu1 }
 0x226   :  { %v1059_v34 = vpop.f32.mrb[0].mxu0 }
 0x227   :  { %v1060_v47 = vadd.f32 %v1059_v34, %v1008_v11  ;;  %v4308_v41 = vpop.f32.mrb[1].mxu0 }
 0x228   :  { %v1062_v49 = vpop.f32.mrb[2].mxu0 }
 0x229   :  { %v1086_v50 = vcombine.high %v1060_v47, %v1060_v47  ;;  %v1093_v53 = vrot.slane %v1060_v47, %v4988_v35  ;;  %v1063_v54 = vadd.f32 %v1062_v49, %v1008_v11  ;;  %v4309_v51 = vpop.f32.mrb[3].mxu0 }
 0x22b   :  { %v1100_v55 = vrot.slane %v1086_v50, %v4988_v35  ;;  %v1101_v56 = vcombine.high %v1093_v53, %v1093_v53  ;;  %v1135_v57 = vcombine.high %v1063_v54, %v1063_v54  ;;  %v1142_v42 = vrot.slane %v1063_v54, %v4988_v35 }
 0x22c   :  { %v1109_v63 = vrot.slane %v1093_v53, %v4988_v35 }
 0x22d   :  { %v1102_v61 = vcombine.high %v1100_v55, %v1100_v55  ;;  %v1123_v62 = vrot.slane %v1101_v56, %v4988_v35  ;;  %v1149_v52 = vrot.slane %v1135_v57, %v4988_v35  ;;  %v1150_v0 = vcombine.high %v1142_v42, %v1142_v42 }
 0x22e   :  { %v1116_v7 = vrot.slane %v1100_v55, %v4988_v35  ;;  %v1158_v19 = vrot.slane %v1142_v42, %v4988_v35 }
 0x22f   :  { %v1130_v2 = vrot.slane %v1102_v61, %v4988_v35  ;;  %v1151_v3 = vcombine.high %v1149_v52, %v1149_v52  ;;  %v1306_v8 = vcombine.low %v1109_v63, %v1123_v62  ;;  %v3982_v10 = vcombine.high %v1109_v63, %v1123_v62 }
 0x230   :  { %v1172_v14 = vrot.slane %v1150_v0, %v4988_v35  ;;  %v1067_v15 = vpop.f32.mrb[4].mxu0  ;;  %v1165_v18 = vrot.slane %v1149_v52, %v4988_v35 }
 0x231   :  { %v4312_v23 = vpop.f32.mrb[5].mxu0  ;;  %v1308_v12 = vcombine.low %v1116_v7, %v1130_v2  ;;  %v3983_v24 = vcombine.high %v1116_v7, %v1130_v2  ;;  %v1179_v26 = vrot.slane %v1151_v3, %v4988_v35  ;;  %v1068_v27 = vadd.f32 %v1067_v15, %v1009_v13 }
 0x232   :  { %v1070_v25 = vpop.f32.mrb[6].mxu0  ;;  %v5113_v36 = vrot.slane %v1306_v8, %v4988_v35  ;;  %v5116_v37 = vrot.slane %v3982_v10, %v4988_v35  ;;  %v1355_v38 = vcombine.low %v1158_v19, %v1172_v14  ;;  %v3984_v39 = vcombine.high %v1158_v19, %v1172_v14 }
 0x233   :  { %v1071_v33 = vadd.f32 %v1070_v25, %v1010_v5  ;;  %v4313_v17 = vpop.f32.mrb[7].mxu0  ;;  %v1184_v40 = vcombine.high %v1068_v27, %v1068_v27  ;;  %v1191_v43 = vrot.slane %v1068_v27, %v4988_v35  ;;  %v1330_v46 = vrot.slane %v1308_v12, %v4988_v35 }
 0x234   :  { %v1337_v11 = vrot.slane %v3983_v24, %v4988_v35  ;;  %v1357_v34 = vcombine.low %v1165_v18, %v1179_v26  ;;  %v3985_v47 = vcombine.high %v1165_v18, %v1179_v26  ;;  %v1365_v53 = vrot.slane %v1355_v38, %v4988_v35 }
 0x235   :  { %v1233_v44 = vcombine.high %v1071_v33, %v1071_v33  ;;  %v1240_v45 = vrot.slane %v1071_v33, %v4988_v35  ;;  %v1198_v41 = vrot.slane %v1184_v40, %v4988_v35  ;;  %v1199_v48 = vcombine.high %v1191_v43, %v1191_v43 }
 0x236   :  { %v5124_v49 = vrot.slane %v1191_v43, %v4988_v35  ;;  %v1372_v54 = vrot.slane %v3984_v39, %v4988_v35  ;;  %v1379_v62 = vrot.slane %v1357_v34, %v4988_v35  ;;  %v1386_v3 = vrot.slane %v3985_v47, %v4988_v35 }
 0x237   :  { %v1247_v50 = vrot.slane %v1233_v44, %v4988_v35  ;;  %v1248_v51 = vcombine.high %v1240_v45, %v1240_v45  ;;  %v1256_v55 = vrot.slane %v1240_v45, %v4988_v35  ;;  %v1200_v57 = vcombine.high %v1198_v41, %v1198_v41 }
 0x238   :  { %v1075_v56 = vpop.f32.mrb[8].mxu0  ;;  %v1214_v58 = vrot.slane %v1198_v41, %v4988_v35  ;;  %v1221_v42 = vrot.slane %v1199_v48, %v4988_v35  ;;  %v1229_v59 = vcombine.high %v5124_v49, %v5124_v49  ;;  %v1339_v12 = vcombine.low %v1330_v46, %v1337_v11 }
 0x239   :  { %v4316_v61 = vpop.f32.mrb[9].mxu0  ;;  %v1249_v52 = vcombine.high %v1247_v50, %v1247_v50  ;;  %v1263_v63 = vrot.slane %v1247_v50, %v4988_v35  ;;  %v1270_v0 = vrot.slane %v1248_v51, %v4988_v35  ;;  %v1228_v5 = vrot.slane %v1200_v57, %v4988_v35 }
 0x23a   :  { %v1078_v2 = vpop.f32.mrb[10].mxu0  ;;  %v1230_v6 = vcombine.high %v1214_v58, %v1214_v58  ;;  %v1231_v7 = vcombine.high %v1221_v42, %v1221_v42  ;;  %v1418_v10 = vcombine.low %v1221_v42, %v1229_v59  ;;  %v1278_v15 = vcombine.high %v1256_v55, %v1256_v55 }
 0x23b   :  { %v4317_v8 = vpop.f32.mrb[11].mxu0  ;;  %v1277_v14 = vrot.slane %v1249_v52, %v4988_v35  ;;  %v1280_v16 = vcombine.high %v1270_v0, %v1270_v0  ;;  %v1232_v23 = vcombine.high %v1228_v5, %v1228_v5  ;;  %v1279_v24 = vcombine.high %v1263_v63, %v1263_v63 }
 0x23c   :  { %v1419_v19 = vcombine.low %v1231_v7, %v1214_v58  ;;  %v1420_v13 = vcombine.low %v1228_v5, %v1230_v6  ;;  %v1076_v27 = vadd.f32 %v1075_v56, %v1011_v32  ;;  %v1338_v25 = vcombine.low %v5113_v36, %v5116_v37 }
 0x23d   :  { %v1468_v26 = vcombine.low %v1280_v16, %v1263_v63  ;;  %v1387_v18 = vcombine.low %v1365_v53, %v1372_v54  ;;  %v1421_v17 = vcombine.low %v1232_v23, %v1256_v55  ;;  %v1428_v38 = vrot.slane %v1418_v10, %v4988_v35 }
 0x23e   :  { %v1435_v33 = vrot.slane %v1419_v19, %v4988_v35  ;;  %v1467_v39 = vcombine.low %v1270_v0, %v1278_v15  ;;  %v1281_v40 = vcombine.high %v1277_v14, %v1277_v14  ;;  %v1288_v43 = vrot.slane %v1076_v27, %v4988_v35 }
 0x23f   :  { %v1442_v44 = vrot.slane %v1420_v13, %v4988_v35  ;;  %v1449_v45 = vrot.slane %v1421_v17, %v4988_v35  ;;  %v1353_v46 = vrot.slane %v1339_v12, %v4988_v35  ;;  %v1388_v32 = vcombine.low %v1379_v62, %v1386_v3 }
 0x240   :  { %v1469_v11 = vcombine.low %v1277_v14, %v1279_v24  ;;  %v1484_v36 = vrot.slane %v1468_v26, %v4988_v35  ;;  %v1296_v37 = vrot.slane %v1288_v43, %v4988_v35  ;;  %v1450_v34 = vcombine.low %v1428_v38, %v1435_v33 }
 0x241   :  { %v1451_v47 = vcombine.low %v1442_v44, %v1449_v45  ;;  %v1346_v41 = vrot.slane %v1338_v25, %v4988_v35  ;;  %v1395_v48 = vrot.slane %v1387_v18, %v4988_v35  ;;  %v1402_v50 = vrot.slane %v1388_v32, %v4988_v35 }
 0x242   :  { %v1410_v53 = vrot.slane %v5124_v49, %v4988_v35  ;;  %v1477_v54 = vrot.slane %v1467_v39, %v4988_v35  ;;  %v1289_v51 = vcombine.high %v1288_v43, %v1288_v43  ;;  %v1470_v55 = vcombine.low %v1281_v40, %v1296_v37 }
 0x243   :  { %v1354_v56 = vcombine.low %v1346_v41, %v1353_v46  ;;  %v1403_v57 = vcombine.low %v1395_v48, %v1402_v50  ;;  %v1458_v58 = vrot.slane %v1450_v34, %v4988_v35  ;;  %v1465_v42 = vrot.slane %v1451_v47, %v4988_v35 }
 0x244   :  { %v1491_v59 = vrot.slane %v1469_v11, %v4988_v35  ;;  %v1498_v61 = vrot.slane %v1470_v55, %v4988_v35  ;;  %v1499_v62 = vcombine.low %v1477_v54, %v1484_v36  ;;  %v1303_v49 = vrot.slane %v1289_v51, %v4988_v35 }
 0x245   :  { %v5160_v52 = vpack.c.bf16 %v1403_v57, %v1354_v56  ;;  %v1466_v63 = vcombine.low %v1458_v58, %v1465_v42  ;;  %v1417_v3 = vrot.slane %v1410_v53, %v4988_v35 }
 0x246   :  { %v1500_v0 = vcombine.low %v1491_v59, %v1498_v61  ;;  %v1507_v5 = vrot.slane %v1499_v62, %v4988_v35  ;;  %v1522_v8 = vrot.slane %v1303_v49, %v4988_v35 }
 0x247   :  { %v1544_v2 = vsel %vm53_vm0, %v5160_v52, 0  ;;  %v1537_v10 = vpack.c.bf16 %v1417_v3, %v1417_v3 }
 0x248   :  { %4319 = vmatpush3.bf16.xpose.msra.mxu1 %v1544_v2  ;;  %v1514_v6 = vrot.slane %v1500_v0, %v4988_v35  ;;  %v1529_v16 = vrot.slane %v1522_v8, %v4988_v35 }
 0x249   :  { %4320 = vmatprep.subr.bf16.mxu1 %v4725_v28  ;;  %v1547_v19 = vsel %vm53_vm0, %v1537_v10, 0 }
 0x24a   :  { %v1515_v7 = vcombine.low %v1507_v5, %v1514_v6  ;;  %v1539_v26 = vpack.c.bf16 %v1529_v16, %v1529_v16 }
 0x24c   :  { %v1538_v14 = vpack.c.bf16 %v1515_v7, %v1466_v63  ;;  %v1596_v18 = vsel %vm53_vm0, %v1539_v26, 0 }
 0x24e   :  { %v1593_v15 = vsel %vm53_vm0, %v1538_v14, 0 }
 0x24f   :  { %4327 = vmatpush3.bf16.xpose.msra.mxu0 %v1593_v15  ;;  %v355_v15 = vld [vmem:[%s5922_s6 + $0x7] ss:$0 sm:$0xff] }
 0x250   :  { %4321 = vmatpush3.bf16.xpose.msra.mxu1 %v1547_v19  ;;  %4328 = vmatprep.subr.bf16.mxu0 %v4725_v28 }
 0x251   :  { %v424_v13 = vpop.f32.mrb[4].mxu1  ;;  %4334 = vmatprep.subr.bf16.mxu1 %v4725_v28 }
 0x252   :  { %v425_v23 = vadd.f32 %v424_v13, %v4984_v31  ;;  %v4296_v12 = vpop.f32.mrb[5].mxu1 }
 0x253   :  { %v427_v24 = vpop.f32.mrb[6].mxu1 }
 0x254   :  { %v4297_v27 = vpop.f32.mrb[7].mxu1  ;;  %v1304_v25 = vpack.c.bf16 %v425_v23, %v425_v23  ;;  %v428_v35 = vadd.f32 %v427_v24, %v4984_v31 }
 0x256   :  { %v1305_v33 = vpack.c.bf16 %v428_v35, %v428_v35 }
 0x257   :  { %4329 = vmatpush3.bf16.xpose.msra.mxu0 %v1596_v18  ;;  %4323 = vmatmul.mubr.msk.bf16.vlgmr.msra.gmra.mrb[8].mxu1 %vm53_vm0, %v1304_v25 }
 0x258   :  { %4350 = vmatprep.subr.bf16.mxu0 %v4725_v28  ;;  %4338 = vmatprep.mubr.msk.bf16.mxu1 %vm4726_vm3, %v4725_v28 }
 0x25e   :  { %4331 = vmatmul.mubr.msk.bf16.vlgmr.msra.gmra.mrb[12].mxu0 %vm53_vm0, %v1305_v33 }
 0x25f   :  { %4351 = vmatpush3.bf16.msra.mxu0 %v4921_v60  ;;  %4358 = vmatprep.mubr.msk.bf16.mxu0 %vm4726_vm3, %v4725_v28 }
 0x260   :  { %4352 = vmatprep.subr.bf16.mxu0 %v4725_v28 }
 0x263   :  { %4353 = vmatpush3.bf16.msra.mxu0 %v4927_v1 }
 0x264   :  { %4354 = vmatprep.subr.bf16.mxu0 %v4725_v28 }
 0x267   :  { %4355 = vmatpush3.bf16.msra.mxu0 %v4932_v4 }
 0x268   :  { %4356 = vmatprep.subr.bf16.mxu0 %v4725_v28 }
 0x26b   :  { %4357 = vmatpush3.bf16.msra.mxu0 %v5027_v21  ;;  %v4728_v21 = vmov 0  }
 0x26c   :  { %4362 = vmatprep.subr.bf16.mxu0 %v4725_v28  ;;  %4465 = vset.pattern.permute.xlu1 %v4728_v21  ;;  %v1675_v55 = vsel %vm1673_vm5, 65535, %v4728_v21 }
 0x26d   :  { %4464 = vset.pattern.permute.xlu0 %v4728_v21 }
 0x32a   :  { %v1583_v31 = vpop.f32.mrb[8].mxu1 }
 0x32b   :  { %v4324_v60 = vpop.f32.mrb[9].mxu1  ;;  %v1639_v17 = vsel %vm1638_vm4, %v1583_v31, -inf }
 0x32c   :  { %1640 = vmax.xlane.f32.xlu0 %v1639_v17  ;;  %v1586_v38 = vpop.f32.mrb[10].mxu1 }
 0x32d   :  { %v4325_v39 = vpop.f32.mrb[11].mxu1 }
 0x331   :  { %v1632_v40 = vpop.f32.mrb[12].mxu0 }
 0x332   :  { %v4332_v1 = vpop.f32.mrb[13].mxu0  ;;  %v1642_v43 = vsel %vm1638_vm4, %v1632_v40, -inf }
 0x333   :  { %1643 = vmax.xlane.f32.xlu1 %v1642_v43  ;;  %v1635_v4 = vpop.f32.mrb[14].mxu0  ;;  %v5234_v1 = vld [vmem:[%s5918_s7 + $0x44] ss:$8 sps:$4 sm:$0xff]   ;;  %v4478_v43 = vld [vmem:[%s5918_s7 + $0x40] ss:$8 sps:$4 sm:$0xff]  }
 0x334   :  { %v4333_v44 = vpop.f32.mrb[15].mxu0  ;;  %v5243_v4 = vld [vmem:[%s5918_s7 + $0x54] ss:$8 sps:$4 sm:$0xff]  }
 0x335   :  { %v4481_v44 = vld [vmem:[%s5918_s7 + $0x50] ss:$8 sps:$4 sm:$0xff]  }
 0x344   :  { %1667 = vrot.lane.b32.xlu1 %v1537_v10, %s4724_s30 }
 0x348   :  { %1721 = vrot.lane.b32.xlu1 %v1538_v14, %s4724_s30 }
 0x34c   :  { %1723 = vrot.lane.b32.xlu1 %v1539_v26, %s4724_s30 }
 0x3b9   :  { %v1641_v45 = vpop.xlane.xlu0 %1640 }
 0x3ba   :  { %v1645_v46 = vsub.f32 %v1583_v31, %v1641_v45  ;;  %v5252_v45 = vld [vmem:[%s5918_s7 + $0x64] ss:$8 sps:$4 sm:$0xff]  }
 0x3bc   :  { %v1647_v32 = vmul.f32 1.442695, %v1645_v46  ;;  %v4484_v46 = vld [vmem:[%s5918_s7 + $0x60] ss:$8 sps:$4 sm:$0xff]  }
 0x3be   :  { %4606 = vpow2.f32 %v1647_v32  ;;  %v5261_v32 = vld [vmem:[%s5918_s7 + $0x74] ss:$8 sps:$4 sm:$0xff]  }
 0x3c0   :  { %v1644_v11 = vpop.xlane.xlu1 %1643 }
 0x3c1   :  { %v1646_v36 = vsub.f32 %v1632_v40, %v1644_v11  ;;  %v4487_v11 = vld [vmem:[%s5918_s7 + $0x70] ss:$8 sps:$4 sm:$0xff]  }
 0x3c3   :  { %v1649_v37 = vmul.f32 1.442695, %v1646_v36 }
 0x3c4   :  { %v1668_v53 = vpop.permute.xlu1 %1667 }
 0x3c5   :  { %4608 = vpow2.f32 %v1649_v37  ;;  %v1677_v42 = vand.u32 %v1675_v55, %v1668_v53 }
 0x3c8   :  { %v4607_v34 = vpop.eup %4606  ;;  %v1722_v58 = vpop.permute.xlu1 %1721 }
 0x3c9   :  { %v1651_v47 = vsel %vm1638_vm4, %v4607_v34, 0.0 }
 0x3ca   :  { %1652 = vadd.xlane.f32.xlu0 %v1651_v47 }
 0x3cc   :  { %v1724_v62 = vpop.permute.xlu1 %1723 }
 0x3cd   :  { %v1730_v63 = vand.u32 %v1724_v62, %v1675_v55  ;;  %v3999_v62 = vld [vmem:[%s5922_s6 + $0x22] ss:$8 sm:$0x3] }
 0x3cf   :  { %v4609_v41 = vpop.eup %4608 }
 0x3d0   :  { %v1654_v48 = vsel %vm1638_vm4, %v4609_v41, 0.0 }
 0x3d1   :  { %1655 = vadd.xlane.f32.xlu0 %v1654_v48 }
 0x3e7   :  { %1665 = vrot.lane.b32.xlu0 %v5160_v52, %s4724_s30 }
 0x457   :  { %v1653_v50 = vpop.xlane.xlu0 %1652 }
 0x458   :  { %4610 = vrcp.f32 %v1653_v50 }
 0x45e   :  { %v1656_v54 = vpop.xlane.xlu0 %1655 }
 0x45f   :  { %4612 = vrcp.f32 %v1656_v54  ;;  %v1823_v54 = vld [vmem:[%s5922_s6 + $0x20] ss:$0 sm:$0xff] }
 0x462   :  { %v4611_v51 = vpop.eup %4610  ;;  %v1666_v56 = vpop.permute.xlu0 %1665 }
 0x463   :  { %v1659_v57 = vmul.f32 %v4611_v51, %v4607_v34  ;;  %4335 = vmatpush3.bf16.msra.mxu1 %v1666_v56 }
 0x464   :  { %4336 = vmatprep.subr.bf16.mxu1 %v4725_v28 }
 0x465   :  { %v1661_v59 = vpack.c.bf16 %v1659_v57, %v1659_v57  ;;  %v1824_v57 = vld [vmem:[%s5922_s6 + $0x21] ss:$0 sm:$0xff] }
 0x467   :  { %4337 = vmatpush3.bf16.msra.mxu1 %v1677_v42 }
 0x468   :  { %4342 = vmatprep.subr.bf16.mxu1 %v4725_v28 }
 0x469   :  { %v4613_v61 = vpop.eup %4612 }
 0x46a   :  { %4339 = vmatmul.mubr.msk.bf16.vlgmr.msra.gmra.mrb[12].mxu1 %vm1638_vm4, %v1661_v59  ;;  %v1660_v52 = vmul.f32 %v4613_v61, %v4609_v41 }
 0x46b   :  { %4343 = vmatpush3.bf16.msra.mxu1 %v1722_v58  ;;  %4346 = vmatprep.mubr.msk.bf16.mxu1 %vm4726_vm3, %v4725_v28 }
 0x46c   :  { %4344 = vmatprep.subr.bf16.mxu1 %v4725_v28  ;;  %v1662_v49 = vpack.c.bf16 %v1660_v52, %v1660_v52  ;;  %v1872_v52 = vrot.slane %v3999_v62, %v4978_v30 }
 0x46f   :  { %4345 = vmatpush3.bf16.msra.mxu1 %v1730_v63 }
 0x470   :  { %1922 = vmatprep.subr.bf16.mxu1 %v5234_v1 }
 0x472   :  { %4347 = vmatmul.mubr.msk.bf16.vlgmr.msra.gmra.mrb[16].mxu1 %vm1638_vm4, %v1662_v49 }
 0x473   :  { %1954 = vmatprep.mubr.bf16.mxu1 %v4728_v21  ;;  %1923 = vmatpush1.bf16.msra.mxu1 %v4478_v43 }
 0x474   :  { %1924 = vmatprep.subr.bf16.mxu1 %v5243_v4 }
 0x477   :  { %1925 = vmatpush1.bf16.msra.mxu1 %v4481_v44 }
 0x478   :  { %1926 = vmatprep.subr.bf16.mxu1 %v5252_v45 }
 0x47b   :  { %1927 = vmatpush1.bf16.msra.mxu1 %v4484_v46 }
 0x47c   :  { %1928 = vmatprep.subr.bf16.mxu1 %v5261_v32 }
 0x47f   :  { %1929 = vmatpush1.bf16.msra.mxu1 %v4487_v11 }
 0x480   :  { %4368 = vmatprep.subr.bf16.mxu1 %v4725_v28 }
 0x53d   :  { %v1713_v0 = vpop.f32.mrb[12].mxu1 }
 0x53e   :  { %v4340_v2 = vpop.f32.mrb[13].mxu1 }
 0x53f   :  { %v1716_v3 = vpop.f32.mrb[14].mxu1 }
 0x540   :  { %v4341_v5 = vpop.f32.mrb[15].mxu1 }
 0x545   :  { %v1766_v6 = vpop.f32.mrb[16].mxu1 }
 0x546   :  { %v1772_v7 = vpack.c.bf16 %v1766_v6, %v1713_v0  ;;  %v4348_v8 = vpop.f32.mrb[17].mxu1 }
 0x547   :  { %v1769_v10 = vpop.f32.mrb[18].mxu1  ;;  %v1876_v8 = vrot.slane %v3999_v62, %v4981_v20 }
 0x548   :  { %v4349_v14 = vpop.f32.mrb[19].mxu1  ;;  %4359 = vmatmul.mubr.msk.bf16.vlgmr.msra.gmra.mrb[16].mxu0 %vm53_vm0, %v1772_v7 }
 0x549   :  { %4364 = vmatprep.mubr.msk.bf16.mxu0 %vm4726_vm3, %v4725_v28 }
 0x61b   :  { %v1814_v16 = vpop.f32.mrb[16].mxu0 }
 0x61c   :  { %v5219_v19 = vadd.f32 %v1814_v16, %v355_v15  ;;  %v4360_v13 = vpop.f32.mrb[17].mxu0 }
 0x61d   :  { %v1817_v23 = vpop.f32.mrb[18].mxu0 }
 0x61e   :  { %v5221_v12 = vadd.f32 %v1817_v23, %v355_v15  ;;  %v4361_v24 = vpop.f32.mrb[19].mxu0  ;;  %v1825_v26 = vsel %vm53_vm0, %v5219_v19, 0.0 }
 0x61f   :  { %1826 = vadd.xlane.f32.xlu0 %v1825_v26 }
 0x620   :  { %v1828_v27 = vsel %vm53_vm0, %v5221_v12, 0.0 }
 0x621   :  { %1829 = vadd.xlane.f32.xlu1 %v1828_v27 }
 0x6ac   :  { %v1827_v25 = vpop.xlane.xlu0 %1826 }
 0x6ad   :  { %v1831_v18 = vmul.f32 0.015625, %v1827_v25 }
 0x6ae   :  { %v1830_v35 = vpop.xlane.xlu1 %1829 }
 0x6af   :  { %v1833_v33 = vsub.f32 %v5219_v19, %v1831_v18  ;;  %v1832_v31 = vmul.f32 0.015625, %v1830_v35 }
 0x6b1   :  { %v1834_v60 = vsub.f32 %v5221_v12, %v1832_v31  ;;  %v1835_v17 = vmul.f32 %v1833_v33, %v1833_v33 }
 0x6b3   :  { %v1837_v38 = vsel %vm53_vm0, %v1835_v17, 0.0  ;;  %v1836_v39 = vmul.f32 %v1834_v60, %v1834_v60 }
 0x6b4   :  { %1838 = vadd.xlane.f32.xlu0 %v1837_v38 }
 0x6b5   :  { %v1840_v40 = vsel %vm53_vm0, %v1836_v39, 0.0 }
 0x6b8   :  { %1841 = vadd.xlane.f32.xlu0 %v1840_v40 }
 0x741   :  { %v1839_v36 = vpop.xlane.xlu0 %1838 }
 0x742   :  { %v1843_v37 = vmul.f32 0.015625, %v1839_v36 }
 0x744   :  { %v1845_v34 = vadd.f32 1e-05, %v1843_v37 }
 0x745   :  { %v1842_v47 = vpop.xlane.xlu0 %1841 }
 0x746   :  { %4614 = vrsqrt.f32 %v1845_v34  ;;  %v1844_v41 = vmul.f32 0.015625, %v1842_v47 }
 0x748   :  { %v1846_v48 = vadd.f32 1e-05, %v1844_v41 }
 0x74a   :  { %4616 = vrsqrt.f32 %v1846_v48 }
 0x750   :  { %v4615_v50 = vpop.eup %4614 }
 0x751   :  { %v1849_v53 = vmul.f32 %v4615_v50, %v1833_v33 }
 0x753   :  { %v1851_v55 = vmul.f32 %v1849_v53, %v1823_v54 }
 0x754   :  { %v4617_v51 = vpop.eup %4616 }
 0x755   :  { %v1850_v56 = vmul.f32 %v4617_v51, %v1834_v60  ;;  %v1853_v42 = vadd.f32 %v1851_v55, %v1824_v57 }
 0x757   :  { %v1852_v58 = vmul.f32 %v1850_v56, %v1823_v54 }
 0x759   :  { %v1854_v59 = vadd.f32 %v1852_v58, %v1824_v57 }
 0x75b   :  { %v1867_v61 = vpack.c.bf16 %v1854_v59, %v1853_v42 }
 0x75d   :  { %4008 = vmatmul.mubr.msk.bf16.vlgmr.msra.gmra.mrb[20].mxu1 %vm53_vm0, %v1867_v61 }
 0x75e   :  { %4370 = vmatprep.mubr.msk.bf16.mxu1 %vm4726_vm3, %v4725_v28 }
 0x830   :  { %v1956_v63 = vpop.f32.mrb[20].mxu1 }
 0x831   :  { %v1957_v49 = vadd.f32 %v1956_v63, %v1872_v52  ;;  %v1958_v0 = vpop.f32.mrb[21].mxu1 }
 0x832   :  { %v1960_v2 = vpop.f32.mrb[22].mxu1  ;;  %v1959_v14 = vadd.f32 %v1958_v0, %v1876_v8 }
 0x833   :  { %v1965_v3 = vpack.c.bf16 %v1957_v49, %v1957_v49  ;;  %v1961_v5 = vadd.f32 %v1960_v2, %v1872_v52  ;;  %v1962_v6 = vpop.f32.mrb[23].mxu1 }
 0x834   :  { %v1963_v13 = vadd.f32 %v1962_v6, %v1876_v8  ;;  %v2090_v24 = vpack.c.bf16 %v1959_v14, %v1959_v14 }
 0x835   :  { %v1966_v7 = vpack.c.bf16 %v1961_v5, %v1961_v5  ;;  %1968 = vrot.lane.b32.xlu0 %v1965_v3, %s4724_s30  ;;  %v1866_v5 = vld [vmem:[%s5922_s6 + $0x23] ss:$0 sm:$0xff] }
 0x836   :  { %v2091_v26 = vpack.c.bf16 %v1963_v13, %v1963_v13  ;;  %v2097_v27 = vsel %vm2095_vm6, %v2090_v24, 0 }
 0x837   :  { %2017 = vrot.lane.b32.xlu1 %v1966_v7, %s4724_s30 }
 0x838   :  { %v2143_v25 = vsel %vm2095_vm6, %v2091_v26, 0 }
 0x8a7   :  { %v1969_v10 = vpop.permute.xlu0 %1968 }
 0x8a8   :  { %v1974_v15 = vsel %vm53_vm0, %v1969_v10, 0 }
 0x8a9   :  { %v2018_v16 = vpop.permute.xlu1 %2017  ;;  %4363 = vmatpush3.bf16.xpose.msra.mxu0 %v1974_v15 }
 0x8aa   :  { %v2023_v23 = vsel %vm53_vm0, %v2018_v16, 0  ;;  %4374 = vmatprep.subr.bf16.mxu0 %v4725_v28 }
 0x8ab   :  { %4369 = vmatpush3.bf16.xpose.msra.mxu1 %v2023_v23 }
 0x8ac   :  { %4380 = vmatprep.subr.bf16.mxu1 %v4725_v28 }
 0x8b0   :  { %4365 = vmatmul.mubr.msk.bf16.vlgmr.msra.gmra.mrb[20].mxu0 %vm53_vm0, %v1965_v3 }
 0x8b1   :  { %4375 = vmatpush3.bf16.msra.mxu0 %v2097_v27  ;;  %4376 = vmatprep.mubr.msk.bf16.mxu0 %vm4726_vm3, %v4725_v28 }
 0x8b2   :  { %4371 = vmatmul.mubr.msk.bf16.vlgmr.msra.gmra.mrb[24].mxu1 %vm53_vm0, %v1966_v7  ;;  %4386 = vmatprep.subr.bf16.mxu0 %v4725_v28 }
 0x8b3   :  { %4381 = vmatpush3.bf16.msra.mxu1 %v2143_v25  ;;  %4382 = vmatprep.mubr.msk.bf16.mxu1 %vm4726_vm3, %v4725_v28 }
 0x983   :  { %v2010_v18 = vpop.f32.mrb[20].mxu0 }
 0x984   :  { %v4366_v35 = vpop.f32.mrb[21].mxu0  ;;  %v2066_v33 = vsel %vm2065_vm7, %v2010_v18, -inf }
 0x985   :  { %v2059_v31 = vpop.f32.mrb[24].mxu1  ;;  %2067 = vmax.xlane.f32.xlu1 %v2066_v33  ;;  %v2013_v60 = vpop.f32.mrb[22].mxu0 }
 0x986   :  { %v4367_v17 = vpop.f32.mrb[23].mxu0  ;;  %v4372_v38 = vpop.f32.mrb[25].mxu1  ;;  %v2069_v39 = vsel %vm2065_vm7, %v2059_v31, -inf }
 0x987   :  { %v2062_v40 = vpop.f32.mrb[26].mxu1  ;;  %2070 = vmax.xlane.f32.xlu0 %v2069_v39  ;;  %v4492_v17 = vld [vmem:[%s5918_s7 + $0xc4] ss:$8 sps:$4 sm:$0xff]   ;;  %v4490_v38 = vld [vmem:[%s5918_s7 + $0xc0] ss:$8 sps:$4 sm:$0xff]  }
 0x988   :  { %v4373_v43 = vpop.f32.mrb[27].mxu1  ;;  %2344 = vmatprep.subr.bf16.mxu1 %v4492_v17  ;;  %v4495_v39 = vld [vmem:[%s5918_s7 + $0xd4] ss:$8 sps:$4 sm:$0xff]   ;;  %v4493_v40 = vld [vmem:[%s5918_s7 + $0xd0] ss:$8 sps:$4 sm:$0xff]  }
 0x989   :  { %v4498_v43 = vld [vmem:[%s5918_s7 + $0xe4] ss:$8 sps:$4 sm:$0xff]  }
 0xa12   :  { %v2068_v44 = vpop.xlane.xlu1 %2067 }
 0xa13   :  { %v2072_v46 = vsub.f32 %v2010_v18, %v2068_v44  ;;  %v4496_v44 = vld [vmem:[%s5918_s7 + $0xe0] ss:$8 sps:$4 sm:$0xff]  }
 0xa14   :  { %v2071_v11 = vpop.xlane.xlu0 %2070 }
 0xa15   :  { %v2074_v36 = vmul.f32 1.442695, %v2072_v46  ;;  %v2073_v37 = vsub.f32 %v2059_v31, %v2071_v11  ;;  %v4501_v46 = vld [vmem:[%s5918_s7 + $0xf4] ss:$8 sps:$4 sm:$0xff]   ;;  %v4499_v11 = vld [vmem:[%s5918_s7 + $0xf0] ss:$8 sps:$4 sm:$0xff]  }
 0xa17   :  { %4618 = vpow2.f32 %v2074_v36  ;;  %v2076_v34 = vmul.f32 1.442695, %v2073_v37 }
 0xa19   :  { %4620 = vpow2.f32 %v2076_v34 }
 0xa21   :  { %v4619_v47 = vpop.eup %4618 }
 0xa22   :  { %v2078_v41 = vsel %vm2065_vm7, %v4619_v47, 0.0 }
 0xa23   :  { %v4621_v48 = vpop.eup %4620  ;;  %2079 = vadd.xlane.f32.xlu0 %v2078_v41 }
 0xa24   :  { %v2081_v50 = vsel %vm2065_vm7, %v4621_v48, 0.0 }
 0xa25   :  { %2082 = vadd.xlane.f32.xlu1 %v2081_v50 }
 0xa36   :  { %2188 = vrot.lane.b32.xlu1 %v5243_v4, %s4724_s30 }
 0xa39   :  { %2186 = vrot.lane.b32.xlu0 %v5234_v1, %s4724_s30 }
 0xa3a   :  { %2190 = vrot.lane.b32.xlu1 %v5252_v45, %s4724_s30 }
 0xa3e   :  { %2192 = vrot.lane.b32.xlu1 %v5261_v32, %s4724_s30 }
 0xab0   :  { %v2080_v53 = vpop.xlane.xlu0 %2079 }
 0xab1   :  { %4622 = vrcp.f32 %v2080_v53 }
 0xab2   :  { %v2083_v54 = vpop.xlane.xlu1 %2082 }
 0xab3   :  { %4624 = vrcp.f32 %v2083_v54  ;;  %v2246_v54 = vld [vmem:[%s5922_s6 + $0x24] ss:$0 sm:$0xff] }
 0xab4   :  { %v2187_v42 = vpop.permute.xlu0 %2186 }
 0xab6   :  { %v2189_v1 = vpop.permute.xlu1 %2188 }
 0xaba   :  { %v2191_v45 = vpop.permute.xlu1 %2190 }
 0xabb   :  { %v4623_v51 = vpop.eup %4622 }
 0xabc   :  { %v2086_v55 = vmul.f32 %v4623_v51, %v4619_v47 }
 0xabd   :  { %v4625_v56 = vpop.eup %4624 }
 0xabe   :  { %v2087_v57 = vmul.f32 %v4625_v56, %v4621_v48  ;;  %v2088_v58 = vpack.c.bf16 %v2086_v55, %v2086_v55  ;;  %v2193_v32 = vpop.permute.xlu1 %2192 }
 0xac0   :  { %4377 = vmatmul.mubr.msk.bf16.vlgmr.msra.gmra.mrb[24].mxu0 %vm2065_vm7, %v2088_v58  ;;  %v2089_v4 = vpack.c.bf16 %v2087_v57, %v2087_v57  ;;  %v2247_v57 = vld [vmem:[%s5922_s6 + $0x25] ss:$0 sm:$0xff] }
 0xac1   :  { %4387 = vmatpush3.bf16.msra.mxu0 %v2187_v42  ;;  %4394 = vmatprep.mubr.msk.bf16.mxu0 %vm4726_vm3, %v4725_v28 }
 0xac2   :  { %4383 = vmatmul.mubr.msk.bf16.vlgmr.msra.gmra.mrb[28].mxu1 %vm2065_vm7, %v2089_v4  ;;  %4388 = vmatprep.subr.bf16.mxu0 %v4725_v28 }
 0xac3   :  { %2376 = vmatprep.mubr.bf16.mxu1 %v4728_v21  ;;  %2345 = vmatpush1.bf16.msra.mxu1 %v4490_v38 }
 0xac4   :  { %2346 = vmatprep.subr.bf16.mxu1 %v4495_v39 }
 0xac5   :  { %4389 = vmatpush3.bf16.msra.mxu0 %v2189_v1 }
 0xac6   :  { %4390 = vmatprep.subr.bf16.mxu0 %v4725_v28 }
 0xac7   :  { %2347 = vmatpush1.bf16.msra.mxu1 %v4493_v40 }
 0xac8   :  { %2348 = vmatprep.subr.bf16.mxu1 %v4498_v43 }
 0xac9   :  { %4391 = vmatpush3.bf16.msra.mxu0 %v2191_v45  ;;  %v4502_v45 = vld [vmem:[%s5923_s8 + $0x40] sm:$0xff]  }
 0xaca   :  { %4392 = vmatprep.subr.bf16.mxu0 %v4725_v28 }
 0xacb   :  { %2349 = vmatpush1.bf16.msra.mxu1 %v4496_v44 }
 0xacc   :  { %2350 = vmatprep.subr.bf16.mxu1 %v4501_v46 }
 0xacd   :  { %4393 = vmatpush3.bf16.msra.mxu0 %v2193_v32  ;;  %v4503_v32 = vld [vmem:[%s5923_s8] sm:$0xff]  }
 0xace   :  { %4219 = vmatprep.subr.bf16.mxu0 %v4502_v45 }
 0xacf   :  { %2351 = vmatpush1.bf16.msra.mxu1 %v4499_v11 }
 0xb93   :  { %v2133_v59 = vpop.f32.mrb[24].mxu0 }
 0xb94   :  { %v4378_v61 = vpop.f32.mrb[25].mxu0 }
 0xb95   :  { %v2136_v62 = vpop.f32.mrb[26].mxu0  ;;  %v2179_v52 = vpop.f32.mrb[28].mxu1  ;;  %v4505_v61 = vld [vmem:[%s5923_s8 + $0x8] sm:$0xff]  }
 0xb96   :  { %v2185_v63 = vpack.c.bf16 %v2179_v52, %v2133_v59  ;;  %v4379_v49 = vpop.f32.mrb[27].mxu0  ;;  %v4384_v0 = vpop.f32.mrb[29].mxu1  ;;  %v4504_v59 = vld [vmem:[%s5923_s8 + $0x48] sm:$0xff]   ;;  %v4506_v62 = vld [vmem:[%s5923_s8 + $0x50] sm:$0xff]  }
 0xb97   :  { %v2182_v2 = vpop.f32.mrb[30].mxu1  ;;  %v4507_v52 = vld [vmem:[%s5923_s8 + $0x10] sm:$0xff]   ;;  %v4509_v49 = vld [vmem:[%s5923_s8 + $0x18] sm:$0xff]   ;;  %v4510_v0 = vld [vmem:[%s5923_s8 + $0x60] sm:$0xff]  }
 0xb98   :  { %v4385_v3 = vpop.f32.mrb[31].mxu1  ;;  %4395 = vmatmul.mubr.msk.bf16.vlgmr.msra.gmra.mrb[28].mxu0 %vm53_vm0, %v2185_v63  ;;  %v4508_v63 = vld [vmem:[%s5923_s8 + $0x58] sm:$0xff]   ;;  %v4511_v2 = vld [vmem:[%s5923_s8 + $0x20] sm:$0xff]  }
 0xb99   :  { %4220 = vmatpush3.bf16.msra.mxu0 %v4503_v32  ;;  %v4512_v3 = vld [vmem:[%s5923_s8 + $0x68] sm:$0xff]  }
 0xb9a   :  { %4221 = vmatprep.subr.bf16.mxu0 %v4504_v59 }
 0xb9d   :  { %4222 = vmatpush3.bf16.msra.mxu0 %v4505_v61 }
 0xb9e   :  { %4223 = vmatprep.subr.bf16.mxu0 %v4506_v62 }
 0xba1   :  { %4224 = vmatpush3.bf16.msra.mxu0 %v4507_v52 }
 0xba2   :  { %4225 = vmatprep.subr.bf16.mxu0 %v4508_v63 }
 0xba5   :  { %4226 = vmatpush3.bf16.msra.mxu0 %v4509_v49 }
 0xba6   :  { %4227 = vmatprep.subr.bf16.mxu0 %v4510_v0 }
 0xba9   :  { %4228 = vmatpush3.bf16.msra.mxu0 %v4511_v2 }
 0xbaa   :  { %4229 = vmatprep.subr.bf16.mxu0 %v4512_v3 }
 0xc6b   :  { %v2235_v6 = vpop.f32.mrb[28].mxu0 }
 0xc6c   :  { %v2242_v7 = vadd.f32 %v2235_v6, %v1866_v5  ;;  %v4396_v8 = vpop.f32.mrb[29].mxu0  ;;  %v4514_v6 = vld [vmem:[%s5923_s8 + $0x70] sm:$0xff]  }
 0xc6d   :  { %v2238_v10 = vpop.f32.mrb[30].mxu0  ;;  %v4516_v8 = vld [vmem:[%s5923_s8 + $0x78] sm:$0xff]  }
 0xc6e   :  { %v5322_v14 = vadd.f32 %v2242_v7, %v5219_v19  ;;  %v2243_v15 = vadd.f32 %v2238_v10, %v1866_v5  ;;  %v4397_v16 = vpop.f32.mrb[31].mxu0  ;;  %v4513_v5 = vld [vmem:[%s5923_s8 + $0x28] sm:$0xff]   ;;  %v4515_v7 = vld [vmem:[%s5923_s8 + $0x30] sm:$0xff]   ;;  %v4517_v10 = vld [vmem:[%s5923_s8 + $0x38] sm:$0xff]  }
 0xc6f   :  { %4230 = vmatpush3.bf16.msra.mxu0 %v4513_v5 }
 0xc70   :  { %v5325_v13 = vadd.f32 %v2243_v15, %v5221_v12  ;;  %v2248_v23 = vsel %vm53_vm0, %v5322_v14, 0.0  ;;  %4231 = vmatprep.subr.bf16.mxu0 %v4514_v6  ;;  %v4022_v15 = vld [vmem:[%s5922_s6 + $0x26] ss:$8 sm:$0x3] }
 0xc71   :  { %2249 = vadd.xlane.f32.xlu0 %v2248_v23  ;;  %v2294_v16 = vrot.slane %v4022_v15, %v4978_v30  ;;  %v2298_v23 = vrot.slane %v4022_v15, %v4981_v20 }
 0xc72   :  { %v2251_v24 = vsel %vm53_vm0, %v5325_v13, 0.0 }
 0xc73   :  { %2252 = vadd.xlane.f32.xlu1 %v2251_v24  ;;  %4232 = vmatpush3.bf16.msra.mxu0 %v4515_v7 }
 0xc74   :  { %4233 = vmatprep.subr.bf16.mxu0 %v4516_v8 }
 0xc77   :  { %4234 = vmatpush3.bf16.msra.mxu0 %v4517_v10 }
 0xc78   :  { %4410 = vmatprep.subr.bf16.mxu0 %v4725_v28 }
 0xcfe   :  { %v2250_v26 = vpop.xlane.xlu0 %2249 }
 0xcff   :  { %v2254_v27 = vmul.f32 0.015625, %v2250_v26 }
 0xd00   :  { %v2253_v25 = vpop.xlane.xlu1 %2252 }
 0xd01   :  { %v2256_v18 = vsub.f32 %v5322_v14, %v2254_v27  ;;  %v2255_v19 = vmul.f32 0.015625, %v2253_v25 }
 0xd03   :  { %v2257_v35 = vsub.f32 %v5325_v13, %v2255_v19  ;;  %v2258_v33 = vmul.f32 %v2256_v18, %v2256_v18 }
 0xd05   :  { %v2260_v12 = vsel %vm53_vm0, %v2258_v33, 0.0  ;;  %v2259_v31 = vmul.f32 %v2257_v35, %v2257_v35 }
 0xd06   :  { %2261 = vadd.xlane.f32.xlu0 %v2260_v12 }
 0xd07   :  { %v2263_v60 = vsel %vm53_vm0, %v2259_v31, 0.0 }
 0xd0a   :  { %2264 = vadd.xlane.f32.xlu0 %v2263_v60 }
 0xd93   :  { %v2262_v36 = vpop.xlane.xlu0 %2261 }
 0xd94   :  { %v2266_v37 = vmul.f32 0.015625, %v2262_v36 }
 0xd96   :  { %v2268_v34 = vadd.f32 1e-05, %v2266_v37 }
 0xd97   :  { %v2265_v47 = vpop.xlane.xlu0 %2264 }
 0xd98   :  { %4626 = vrsqrt.f32 %v2268_v34  ;;  %v2267_v41 = vmul.f32 0.015625, %v2265_v47 }
 0xd9a   :  { %v2269_v48 = vadd.f32 1e-05, %v2267_v41 }
 0xd9c   :  { %4628 = vrsqrt.f32 %v2269_v48 }
 0xda2   :  { %v4627_v50 = vpop.eup %4626 }
 0xda3   :  { %v2272_v53 = vmul.f32 %v4627_v50, %v2256_v18 }
 0xda5   :  { %v2274_v55 = vmul.f32 %v2272_v53, %v2246_v54 }
 0xda6   :  { %v4629_v51 = vpop.eup %4628 }
 0xda7   :  { %v2273_v56 = vmul.f32 %v4629_v51, %v2257_v35  ;;  %v2276_v42 = vadd.f32 %v2274_v55, %v2247_v57 }
 0xda9   :  { %v2275_v58 = vmul.f32 %v2273_v56, %v2246_v54 }
 0xdab   :  { %v2277_v4 = vadd.f32 %v2275_v58, %v2247_v57 }
 0xdad   :  { %v2287_v1 = vpack.c.bf16 %v2277_v4, %v2276_v42 }
 0xdaf   :  { %4031 = vmatmul.mubr.msk.bf16.vlgmr.msra.gmra.mrb[32].mxu1 %vm53_vm0, %v2287_v1  ;;  %v2453_v1 = vld [vmem:[%s5922_s6 + $0x27] ss:$0 sm:$0xff] }
 0xdb0   :  { %2724 = vmatprep.mubr.bf16.mxu1 %v4728_v21 }
 0xe82   :  { %v2378_v24 = vpop.f32.mrb[32].mxu1 }
 0xe83   :  { %v2379_v26 = vadd.f32 %v2378_v24, %v2294_v16  ;;  %v2380_v27 = vpop.f32.mrb[33].mxu1  ;;  %v5443_v24 = vld [vmem:[%s5918_s7 + $0x84] ss:$8 sps:$4 sm:$0xff]  }
 0xe84   :  { %v2381_v25 = vadd.f32 %v2380_v27, %v2298_v23  ;;  %v2382_v18 = vpop.f32.mrb[34].mxu1  ;;  %2692 = vmatprep.subr.bf16.mxu1 %v5443_v24  ;;  %v5452_v27 = vld [vmem:[%s5918_s7 + $0x94] ss:$8 sps:$4 sm:$0xff]  }
 0xe85   :  { %v4032_v19 = vmul.f32 -1.702, %v2379_v26  ;;  %v2383_v35 = vadd.f32 %v2382_v18, %v2294_v16  ;;  %v2384_v33 = vpop.f32.mrb[35].mxu1  ;;  %v5461_v18 = vld [vmem:[%s5918_s7 + $0xa4] ss:$8 sps:$4 sm:$0xff]  }
 0xe86   :  { %v4033_v12 = vmul.f32 -1.702, %v2381_v25  ;;  %v2385_v31 = vadd.f32 %v2384_v33, %v2298_v23  ;;  %v4527_v33 = vld [vmem:[%s5918_s7 + $0xb0] ss:$8 sps:$4 sm:$0xff]  }
 0xe87   :  { %v2395_v60 = vmul.f32 1.442695, %v4032_v19  ;;  %v4034_v17 = vmul.f32 -1.702, %v2383_v35  ;;  %v4524_v19 = vld [vmem:[%s5918_s7 + $0xa0] ss:$8 sps:$4 sm:$0xff]  }
 0xe88   :  { %v2397_v38 = vmul.f32 1.442695, %v4033_v12  ;;  %v4035_v39 = vmul.f32 -1.702, %v2385_v31 }
 0xe89   :  { %4630 = vpow2.f32 %v2395_v60  ;;  %v2399_v40 = vmul.f32 1.442695, %v4034_v17 }
 0xe8a   :  { %4632 = vpow2.f32 %v2397_v38  ;;  %v2401_v43 = vmul.f32 1.442695, %v4035_v39 }
 0xe8b   :  { %4634 = vpow2.f32 %v2399_v40 }
 0xe8c   :  { %4636 = vpow2.f32 %v2401_v43  ;;  %v2593_v43 = vld [vmem:[%s5922_s6 + $0x40] ss:$0 sm:$0xff] }
 0xe93   :  { %v4631_v44 = vpop.eup %4630 }
 0xe94   :  { %v4633_v46 = vpop.eup %4632  ;;  %v2403_v11 = vadd.f32 1.0, %v4631_v44 }
 0xe95   :  { %v4635_v36 = vpop.eup %4634  ;;  %v2404_v37 = vadd.f32 1.0, %v4633_v46 }
 0xe96   :  { %v4637_v34 = vpop.eup %4636  ;;  %4638 = vrcp.f32 %v2403_v11  ;;  %v2405_v47 = vadd.f32 1.0, %v4635_v36 }
 0xe97   :  { %4640 = vrcp.f32 %v2404_v37  ;;  %v2406_v41 = vadd.f32 1.0, %v4637_v34  ;;  %v2594_v37 = vld [vmem:[%s5922_s6 + $0x41] ss:$0 sm:$0xff] }
 0xe98   :  { %4642 = vrcp.f32 %v2405_v47 }
 0xe99   :  { %4644 = vrcp.f32 %v2406_v41 }
 0xea0   :  { %v4639_v48 = vpop.eup %4638 }
 0xea1   :  { %v4641_v50 = vpop.eup %4640  ;;  %v2415_v51 = vmul.f32 %v4639_v48, %v2379_v26  ;;  %v4518_v26 = vld [vmem:[%s5918_s7 + $0x80] ss:$8 sps:$4 sm:$0xff]  }
 0xea2   :  { %v4643_v53 = vpop.eup %4642  ;;  %v2416_v56 = vmul.f32 %v4641_v50, %v2381_v25  ;;  %2693 = vmatpush1.bf16.msra.mxu1 %v4518_v26  ;;  %v4521_v25 = vld [vmem:[%s5918_s7 + $0x90] ss:$8 sps:$4 sm:$0xff]   ;;  %v4060_v50 = vld [vmem:[%s5922_s6 + $0x42] ss:$8 sm:$0x3] }
 0xea3   :  { %v4645_v54 = vpop.eup %4644  ;;  %v2417_v55 = vmul.f32 %v4643_v53, %v2383_v35  ;;  %2694 = vmatprep.subr.bf16.mxu1 %v5452_v27  ;;  %v5470_v35 = vld [vmem:[%s5918_s7 + $0xb4] ss:$8 sps:$4 sm:$0xff]   ;;  %v2642_v53 = vrot.slane %v4060_v50, %v4978_v30 }
 0xea4   :  { %v2418_v57 = vmul.f32 %v4645_v54, %v2385_v31  ;;  %v2646_v54 = vrot.slane %v4060_v50, %v4981_v20 }
 0xea5   :  { %v2451_v58 = vpack.c.bf16 %v2417_v55, %v2415_v51 }
 0xea6   :  { %v2452_v42 = vpack.c.bf16 %v2418_v57, %v2416_v56  ;;  %2695 = vmatpush1.bf16.msra.mxu1 %v4521_v25 }
 0xea7   :  { %2696 = vmatprep.subr.bf16.mxu1 %v5461_v18 }
 0xea8   :  { %2582 = vmatprep.mubr.bf16.mxu0 %v2452_v42 }
 0xea9   :  { %2583 = vmatmul.mubr.bf16.vlgmr.msra.gmra.mrb[32].mxu0 %v2451_v58 }
 0xeaa   :  { %4412 = vmatprep.mubr.msk.bf16.mxu0 %vm4726_vm3, %v4725_v28  ;;  %2697 = vmatpush1.bf16.msra.mxu1 %v4524_v19 }
 0xeab   :  { %2698 = vmatprep.subr.bf16.mxu1 %v5470_v35 }
 0xeae   :  { %2699 = vmatpush1.bf16.msra.mxu1 %v4527_v33 }
 0xeaf   :  { %4398 = vmatprep.subr.bf16.mxu1 %v4725_v28 }
 0xf7c   :  { %v4235_v4 = vpop.f32.mrb[32].mxu0 }
 0xf7d   :  { %v4236_v45 = vpop.f32.mrb[33].mxu0 }
 0xf7e   :  { %v4237_v32 = vadd.f32 %v4236_v45, %v4235_v4  ;;  %v4238_v59 = vpop.f32.mrb[34].mxu0 }
 0xf7f   :  { %v4239_v61 = vpop.f32.mrb[35].mxu0 }
 0xf80   :  { %v2585_v62 = vadd.f32 %v4237_v32, %v2453_v1  ;;  %v4240_v52 = vadd.f32 %v4239_v61, %v4238_v59 }
 0xf82   :  { %v5427_v63 = vadd.f32 %v2585_v62, %v5322_v14  ;;  %v2588_v49 = vadd.f32 %v4240_v52, %v2453_v1 }
 0xf84   :  { %v5430_v0 = vadd.f32 %v2588_v49, %v5325_v13  ;;  %v2595_v2 = vsel %vm53_vm0, %v5427_v63, 0.0 }
 0xf85   :  { %2596 = vadd.xlane.f32.xlu0 %v2595_v2 }
 0xf86   :  { %v2598_v3 = vsel %vm53_vm0, %v5430_v0, 0.0 }
 0xf87   :  { %2599 = vadd.xlane.f32.xlu1 %v2598_v3 }
0x1012   :  { %v2597_v5 = vpop.xlane.xlu0 %2596 }
0x1013   :  { %v2601_v6 = vmul.f32 0.015625, %v2597_v5 }
0x1014   :  { %v2600_v7 = vpop.xlane.xlu1 %2599 }
0x1015   :  { %v2603_v8 = vsub.f32 %v5427_v63, %v2601_v6  ;;  %v2602_v10 = vmul.f32 0.015625, %v2600_v7 }
0x1017   :  { %v2604_v14 = vsub.f32 %v5430_v0, %v2602_v10  ;;  %v2605_v15 = vmul.f32 %v2603_v8, %v2603_v8 }
0x1019   :  { %v2607_v13 = vsel %vm53_vm0, %v2605_v15, 0.0  ;;  %v2606_v16 = vmul.f32 %v2604_v14, %v2604_v14 }
0x101a   :  { %2608 = vadd.xlane.f32.xlu0 %v2607_v13 }
0x101b   :  { %v2610_v23 = vsel %vm53_vm0, %v2606_v16, 0.0 }
0x101c   :  { %2611 = vadd.xlane.f32.xlu1 %v2610_v23 }
0x10a7   :  { %v2609_v12 = vpop.xlane.xlu0 %2608 }
0x10a8   :  { %v2613_v31 = vmul.f32 0.015625, %v2609_v12 }
0x10a9   :  { %v2612_v60 = vpop.xlane.xlu1 %2611 }
0x10aa   :  { %v2615_v17 = vadd.f32 1e-05, %v2613_v31  ;;  %v2614_v38 = vmul.f32 0.015625, %v2612_v60 }
0x10ac   :  { %4646 = vrsqrt.f32 %v2615_v17  ;;  %v2616_v39 = vadd.f32 1e-05, %v2614_v38 }
0x10ae   :  { %4648 = vrsqrt.f32 %v2616_v39 }
0x10b6   :  { %v4647_v40 = vpop.eup %4646 }
0x10b7   :  { %v2619_v44 = vmul.f32 %v4647_v40, %v2603_v8 }
0x10b8   :  { %v4649_v46 = vpop.eup %4648 }
0x10b9   :  { %v2621_v11 = vmul.f32 %v2619_v44, %v2593_v43  ;;  %v2620_v36 = vmul.f32 %v4649_v46, %v2604_v14 }
0x10bb   :  { %v2622_v34 = vmul.f32 %v2620_v36, %v2593_v43  ;;  %v2623_v47 = vadd.f32 %v2621_v11, %v2594_v37 }
0x10bd   :  { %v2624_v41 = vadd.f32 %v2622_v34, %v2594_v37 }
0x10bf   :  { %v2637_v48 = vpack.c.bf16 %v2624_v41, %v2623_v47 }
0x10c1   :  { %4069 = vmatmul.mubr.msk.bf16.vlgmr.msra.gmra.mrb[36].mxu1 %vm53_vm0, %v2637_v48 }
0x10c2   :  { %4400 = vmatprep.mubr.msk.bf16.mxu1 %vm4726_vm3, %v4725_v28 }
0x1194   :  { %v2726_v51 = vpop.f32.mrb[36].mxu1 }
0x1195   :  { %v2727_v55 = vadd.f32 %v2726_v51, %v2642_v53  ;;  %v2728_v56 = vpop.f32.mrb[37].mxu1 }
0x1196   :  { %v2729_v57 = vadd.f32 %v2728_v56, %v2646_v54  ;;  %v2730_v58 = vpop.f32.mrb[38].mxu1 }
0x1197   :  { %v2735_v42 = vpack.c.bf16 %v2727_v55, %v2727_v55  ;;  %v2731_v4 = vadd.f32 %v2730_v58, %v2642_v53  ;;  %v2732_v1 = vpop.f32.mrb[39].mxu1  ;;  %v2636_v58 = vld [vmem:[%s5922_s6 + $0x43] ss:$0 sm:$0xff] }
0x1198   :  { %v2859_v45 = vpack.c.bf16 %v2729_v57, %v2729_v57  ;;  %v2733_v32 = vadd.f32 %v2732_v1, %v2646_v54 }
0x1199   :  { %v2736_v59 = vpack.c.bf16 %v2731_v4, %v2731_v4  ;;  %2738 = vrot.lane.b32.xlu0 %v2735_v42, %s4724_s30 }
0x119a   :  { %v2865_v61 = vsel %vm2095_vm6, %v2859_v45, 0  ;;  %v2860_v3 = vpack.c.bf16 %v2733_v32, %v2733_v32 }
0x119b   :  { %2787 = vrot.lane.b32.xlu1 %v2736_v59, %s4724_s30  ;;  %4411 = vmatpush3.bf16.msra.mxu0 %v2865_v61 }
0x119c   :  { %4422 = vmatprep.subr.bf16.mxu0 %v4725_v28  ;;  %v2911_v5 = vsel %vm2095_vm6, %v2860_v3, 0 }
0x120b   :  { %v2739_v62 = vpop.permute.xlu0 %2738 }
0x120c   :  { %v2744_v52 = vsel %vm53_vm0, %v2739_v62, 0 }
0x120d   :  { %4399 = vmatpush3.bf16.xpose.msra.mxu1 %v2744_v52  ;;  %v2788_v49 = vpop.permute.xlu1 %2787 }
0x120e   :  { %4404 = vmatprep.subr.bf16.mxu1 %v4725_v28  ;;  %v2793_v2 = vsel %vm53_vm0, %v2788_v49, 0 }
0x1214   :  { %4401 = vmatmul.mubr.msk.bf16.vlgmr.msra.gmra.mrb[40].mxu1 %vm53_vm0, %v2735_v42 }
0x1215   :  { %4405 = vmatpush3.bf16.xpose.msra.mxu1 %v2793_v2  ;;  %4406 = vmatprep.mubr.msk.bf16.mxu1 %vm4726_vm3, %v4725_v28 }
0x1216   :  { %4416 = vmatprep.subr.bf16.mxu1 %v4725_v28 }
0x121c   :  { %4407 = vmatmul.mubr.msk.bf16.vlgmr.msra.gmra.mrb[44].mxu1 %vm53_vm0, %v2736_v59 }
0x121d   :  { %4417 = vmatpush3.bf16.msra.mxu1 %v2911_v5  ;;  %4418 = vmatprep.mubr.msk.bf16.mxu1 %vm4726_vm3, %v4725_v28 }
0x12e7   :  { %v2780_v6 = vpop.f32.mrb[40].mxu1 }
0x12e8   :  { %v4402_v7 = vpop.f32.mrb[41].mxu1  ;;  %v2835_v8 = vsel %vm2065_vm7, %v2780_v6, -inf }
0x12e9   :  { %2836 = vmax.xlane.f32.xlu1 %v2835_v8  ;;  %v2783_v10 = vpop.f32.mrb[42].mxu1 }
0x12ea   :  { %v4403_v14 = vpop.f32.mrb[43].mxu1 }
0x12ef   :  { %v2829_v15 = vpop.f32.mrb[44].mxu1 }
0x12f0   :  { %v4408_v13 = vpop.f32.mrb[45].mxu1  ;;  %v2838_v16 = vsel %vm2065_vm7, %v2829_v15, -inf }
0x12f1   :  { %2839 = vmax.xlane.f32.xlu0 %v2838_v16  ;;  %v2832_v23 = vpop.f32.mrb[46].mxu1  ;;  %v4530_v13 = vld [vmem:[%s5918_s7 + $0x100] ss:$8 sps:$4 sm:$0xff]   ;;  %v4535_v16 = vld [vmem:[%s5918_s7 + $0x114] ss:$8 sps:$4 sm:$0xff]  }
0x12f2   :  { %v4409_v26 = vpop.f32.mrb[47].mxu1  ;;  %v4533_v23 = vld [vmem:[%s5918_s7 + $0x110] ss:$8 sps:$4 sm:$0xff]  }
0x12f3   :  { %v4538_v26 = vld [vmem:[%s5918_s7 + $0x124] ss:$8 sps:$4 sm:$0xff]  }
0x1376   :  { %v2837_v25 = vpop.xlane.xlu1 %2836 }
0x1377   :  { %v2841_v19 = vsub.f32 %v2780_v6, %v2837_v25  ;;  %v4536_v25 = vld [vmem:[%s5918_s7 + $0x120] ss:$8 sps:$4 sm:$0xff]  }
0x1379   :  { %v2843_v33 = vmul.f32 1.442695, %v2841_v19  ;;  %v4541_v19 = vld [vmem:[%s5918_s7 + $0x134] ss:$8 sps:$4 sm:$0xff]  }
0x137b   :  { %4650 = vpow2.f32 %v2843_v33  ;;  %v4539_v33 = vld [vmem:[%s5918_s7 + $0x130] ss:$8 sps:$4 sm:$0xff]  }
0x137e   :  { %v2840_v12 = vpop.xlane.xlu0 %2839 }
0x137f   :  { %v2842_v31 = vsub.f32 %v2829_v15, %v2840_v12  ;;  %v4532_v15 = vld [vmem:[%s5918_s7 + $0x104] ss:$8 sps:$4 sm:$0xff]  }
0x1380   :  { %3112 = vmatprep.subr.bf16.mxu1 %v4532_v15 }
0x1381   :  { %v2845_v60 = vmul.f32 1.442695, %v2842_v31 }
0x1383   :  { %4652 = vpow2.f32 %v2845_v60 }
0x1385   :  { %v4651_v17 = vpop.eup %4650 }
0x1386   :  { %v2847_v38 = vsel %vm2065_vm7, %v4651_v17, 0.0 }
0x1387   :  { %2848 = vadd.xlane.f32.xlu0 %v2847_v38 }
0x138d   :  { %v4653_v39 = vpop.eup %4652 }
0x138e   :  { %v2850_v40 = vsel %vm2065_vm7, %v4653_v39, 0.0 }
0x138f   :  { %2851 = vadd.xlane.f32.xlu1 %v2850_v40 }
0x139d   :  { %2954 = vrot.lane.b32.xlu0 %v5443_v24, %s4724_s30 }
0x13a0   :  { %2956 = vrot.lane.b32.xlu1 %v5452_v27, %s4724_s30 }
0x13a4   :  { %2958 = vrot.lane.b32.xlu1 %v5461_v18, %s4724_s30 }
0x13a8   :  { %2960 = vrot.lane.b32.xlu1 %v5470_v35, %s4724_s30 }
0x1414   :  { %v2849_v43 = vpop.xlane.xlu0 %2848 }
0x1415   :  { %4654 = vrcp.f32 %v2849_v43 }
0x1418   :  { %v2955_v37 = vpop.permute.xlu0 %2954 }
0x141c   :  { %v2852_v44 = vpop.xlane.xlu1 %2851 }
0x141d   :  { %4656 = vrcp.f32 %v2852_v44  ;;  %v3014_v44 = vld [vmem:[%s5922_s6 + $0x44] ss:$0 sm:$0xff] }
0x141f   :  { %v4655_v46 = vpop.eup %4654 }
0x1420   :  { %v2855_v11 = vmul.f32 %v4655_v46, %v4651_v17  ;;  %v2957_v24 = vpop.permute.xlu1 %2956 }
0x1422   :  { %v2857_v36 = vpack.c.bf16 %v2855_v11, %v2855_v11 }
0x1424   :  { %4413 = vmatmul.mubr.msk.bf16.vlgmr.msra.gmra.mrb[36].mxu0 %vm2065_vm7, %v2857_v36  ;;  %v2959_v34 = vpop.permute.xlu1 %2958 }
0x1425   :  { %4423 = vmatpush3.bf16.msra.mxu0 %v2955_v37  ;;  %4430 = vmatprep.mubr.msk.bf16.mxu0 %vm4726_vm3, %v4725_v28  ;;  %v3015_v37 = vld [vmem:[%s5922_s6 + $0x45] ss:$0 sm:$0xff] }
0x1426   :  { %4424 = vmatprep.subr.bf16.mxu0 %v4725_v28 }
0x1427   :  { %v4657_v27 = vpop.eup %4656 }
0x1428   :  { %v2856_v18 = vmul.f32 %v4657_v27, %v4653_v39  ;;  %v2961_v47 = vpop.permute.xlu1 %2960 }
0x1429   :  { %4425 = vmatpush3.bf16.msra.mxu0 %v2957_v24 }
0x142a   :  { %v2858_v35 = vpack.c.bf16 %v2856_v18, %v2856_v18  ;;  %4426 = vmatprep.subr.bf16.mxu0 %v4725_v28 }
0x142c   :  { %4419 = vmatmul.mubr.msk.bf16.vlgmr.msra.gmra.mrb[48].mxu1 %vm2065_vm7, %v2858_v35 }
0x142d   :  { %3144 = vmatprep.mubr.bf16.mxu1 %v4728_v21  ;;  %4427 = vmatpush3.bf16.msra.mxu0 %v2959_v34  ;;  %v4542_v34 = vld [vmem:[%s5923_s8 + $0xc0] sm:$0xff]  }
0x142e   :  { %4428 = vmatprep.subr.bf16.mxu0 %v4725_v28  ;;  %3113 = vmatpush1.bf16.msra.mxu1 %v4530_v13 }
0x142f   :  { %3114 = vmatprep.subr.bf16.mxu1 %v4535_v16 }
0x1431   :  { %4429 = vmatpush3.bf16.msra.mxu0 %v2961_v47  ;;  %v4543_v47 = vld [vmem:[%s5923_s8 + $0x80] sm:$0xff]  }
0x1432   :  { %3115 = vmatpush1.bf16.msra.mxu1 %v4533_v23  ;;  %4254 = vmatprep.subr.bf16.mxu0 %v4542_v34 }
0x1433   :  { %3116 = vmatprep.subr.bf16.mxu1 %v4538_v26 }
0x1436   :  { %3117 = vmatpush1.bf16.msra.mxu1 %v4536_v25 }
0x1437   :  { %3118 = vmatprep.subr.bf16.mxu1 %v4541_v19 }
0x143a   :  { %3119 = vmatpush1.bf16.msra.mxu1 %v4539_v33 }
0x143b   :  { %4434 = vmatprep.subr.bf16.mxu1 %v4725_v28 }
0x14f7   :  { %v2901_v41 = vpop.f32.mrb[36].mxu0 }
0x14f8   :  { %v4414_v48 = vpop.f32.mrb[37].mxu0 }
0x14f9   :  { %v2904_v50 = vpop.f32.mrb[38].mxu0  ;;  %v4545_v48 = vld [vmem:[%s5923_s8 + $0x88] sm:$0xff]  }
0x14fa   :  { %v4415_v53 = vpop.f32.mrb[39].mxu0  ;;  %v4546_v50 = vld [vmem:[%s5923_s8 + $0xd0] sm:$0xff]  }
0x14fb   :  { %v4547_v53 = vld [vmem:[%s5923_s8 + $0x90] sm:$0xff]  }
0x14ff   :  { %v2947_v54 = vpop.f32.mrb[48].mxu1 }
0x1500   :  { %v2953_v51 = vpack.c.bf16 %v2947_v54, %v2901_v41  ;;  %v4420_v55 = vpop.f32.mrb[49].mxu1  ;;  %v4544_v41 = vld [vmem:[%s5923_s8 + $0xc8] sm:$0xff]   ;;  %v4548_v54 = vld [vmem:[%s5923_s8 + $0xd8] sm:$0xff]  }
0x1501   :  { %v2950_v56 = vpop.f32.mrb[50].mxu1  ;;  %v4550_v55 = vld [vmem:[%s5923_s8 + $0xe0] sm:$0xff]  }
0x1502   :  { %v4421_v57 = vpop.f32.mrb[51].mxu1  ;;  %4431 = vmatmul.mubr.msk.bf16.vlgmr.msra.gmra.mrb[40].mxu0 %vm53_vm0, %v2953_v51  ;;  %v4549_v51 = vld [vmem:[%s5923_s8 + $0x98] sm:$0xff]   ;;  %v4551_v56 = vld [vmem:[%s5923_s8 + $0xa0] sm:$0xff]  }
0x1503   :  { %4255 = vmatpush3.bf16.msra.mxu0 %v4543_v47  ;;  %v4552_v57 = vld [vmem:[%s5923_s8 + $0xe8] sm:$0xff]  }
0x1504   :  { %4256 = vmatprep.subr.bf16.mxu0 %v4544_v41 }
0x1507   :  { %4257 = vmatpush3.bf16.msra.mxu0 %v4545_v48 }
0x1508   :  { %4258 = vmatprep.subr.bf16.mxu0 %v4546_v50 }
0x150b   :  { %4259 = vmatpush3.bf16.msra.mxu0 %v4547_v53 }
0x150c   :  { %4260 = vmatprep.subr.bf16.mxu0 %v4548_v54 }
0x150f   :  { %4261 = vmatpush3.bf16.msra.mxu0 %v4549_v51 }
0x1510   :  { %4262 = vmatprep.subr.bf16.mxu0 %v4550_v55 }
0x1513   :  { %4263 = vmatpush3.bf16.msra.mxu0 %v4551_v56 }
0x1514   :  { %4264 = vmatprep.subr.bf16.mxu0 %v4552_v57 }
0x15d5   :  { %v3003_v42 = vpop.f32.mrb[40].mxu0 }
0x15d6   :  { %v3010_v4 = vadd.f32 %v3003_v42, %v2636_v58  ;;  %v4432_v1 = vpop.f32.mrb[41].mxu0  ;;  %v4554_v42 = vld [vmem:[%s5923_s8 + $0xf0] sm:$0xff]  }
0x15d7   :  { %v3006_v45 = vpop.f32.mrb[42].mxu0  ;;  %v4556_v1 = vld [vmem:[%s5923_s8 + $0xf8] sm:$0xff]  }
0x15d8   :  { %v5531_v32 = vadd.f32 %v3010_v4, %v5427_v63  ;;  %v3011_v59 = vadd.f32 %v3006_v45, %v2636_v58  ;;  %v4433_v61 = vpop.f32.mrb[43].mxu0  ;;  %v4553_v58 = vld [vmem:[%s5923_s8 + $0xa8] sm:$0xff]   ;;  %v4555_v4 = vld [vmem:[%s5923_s8 + $0xb0] sm:$0xff]   ;;  %v4557_v45 = vld [vmem:[%s5923_s8 + $0xb8] sm:$0xff]  }
0x15d9   :  { %4265 = vmatpush3.bf16.msra.mxu0 %v4553_v58 }
0x15da   :  { %v5534_v62 = vadd.f32 %v3011_v59, %v5430_v0  ;;  %v3016_v52 = vsel %vm53_vm0, %v5531_v32, 0.0  ;;  %4266 = vmatprep.subr.bf16.mxu0 %v4554_v42  ;;  %v4083_v59 = vld [vmem:[%s5922_s6 + $0x46] ss:$8 sm:$0x3] }
0x15db   :  { %3017 = vadd.xlane.f32.xlu0 %v3016_v52  ;;  %v3062_v61 = vrot.slane %v4083_v59, %v4978_v30  ;;  %v3066_v52 = vrot.slane %v4083_v59, %v4981_v20 }
0x15dc   :  { %v3019_v49 = vsel %vm53_vm0, %v5534_v62, 0.0 }
0x15dd   :  { %3020 = vadd.xlane.f32.xlu1 %v3019_v49  ;;  %4267 = vmatpush3.bf16.msra.mxu0 %v4555_v4 }
0x15de   :  { %4268 = vmatprep.subr.bf16.mxu0 %v4556_v1 }
0x15e1   :  { %4269 = vmatpush3.bf16.msra.mxu0 %v4557_v45 }
0x1668   :  { %v3018_v2 = vpop.xlane.xlu0 %3017 }
0x1669   :  { %v3022_v3 = vmul.f32 0.015625, %v3018_v2 }
0x166a   :  { %v3021_v5 = vpop.xlane.xlu1 %3020 }
0x166b   :  { %v3024_v6 = vsub.f32 %v5531_v32, %v3022_v3  ;;  %v3023_v63 = vmul.f32 0.015625, %v3021_v5 }
0x166d   :  { %v3025_v7 = vsub.f32 %v5534_v62, %v3023_v63  ;;  %v3026_v8 = vmul.f32 %v3024_v6, %v3024_v6 }
0x166f   :  { %v3028_v0 = vsel %vm53_vm0, %v3026_v8, 0.0  ;;  %v3027_v10 = vmul.f32 %v3025_v7, %v3025_v7 }
0x1670   :  { %3029 = vadd.xlane.f32.xlu0 %v3028_v0 }
0x1671   :  { %v3031_v14 = vsel %vm53_vm0, %v3027_v10, 0.0 }
0x1674   :  { %3032 = vadd.xlane.f32.xlu0 %v3031_v14 }
0x16fd   :  { %v3030_v12 = vpop.xlane.xlu0 %3029 }
0x16fe   :  { %v3034_v31 = vmul.f32 0.015625, %v3030_v12 }
0x1700   :  { %v3036_v60 = vadd.f32 1e-05, %v3034_v31 }
0x1701   :  { %v3033_v17 = vpop.xlane.xlu0 %3032 }
0x1702   :  { %4658 = vrsqrt.f32 %v3036_v60  ;;  %v3035_v38 = vmul.f32 0.015625, %v3033_v17 }
0x1704   :  { %v3037_v39 = vadd.f32 1e-05, %v3035_v38 }
0x1706   :  { %4660 = vrsqrt.f32 %v3037_v39 }
0x170c   :  { %v4659_v40 = vpop.eup %4658 }
0x170d   :  { %v3040_v43 = vmul.f32 %v4659_v40, %v3024_v6 }
0x170f   :  { %v3042_v11 = vmul.f32 %v3040_v43, %v3014_v44 }
0x1710   :  { %v4661_v46 = vpop.eup %4660 }
0x1711   :  { %v3041_v36 = vmul.f32 %v4661_v46, %v3025_v7  ;;  %v3044_v27 = vadd.f32 %v3042_v11, %v3015_v37 }
0x1713   :  { %v3043_v24 = vmul.f32 %v3041_v36, %v3014_v44 }
0x1715   :  { %v3045_v18 = vadd.f32 %v3043_v24, %v3015_v37 }
0x1717   :  { %v3055_v35 = vpack.c.bf16 %v3045_v18, %v3044_v27 }
0x1719   :  { %4092 = vmatmul.mubr.msk.bf16.vlgmr.msra.gmra.mrb[52].mxu1 %vm53_vm0, %v3055_v35  ;;  %v3222_v35 = vld [vmem:[%s5922_s6 + $0x47] ss:$0 sm:$0xff] }
0x171a   :  { %4442 = vmatprep.mubr.msk.bf16.mxu1 %vm4726_vm3, %v4725_v28 }
0x17ec   :  { %v3146_v49 = vpop.f32.mrb[52].mxu1 }
0x17ed   :  { %v3147_v2 = vadd.f32 %v3146_v49, %v3062_v61  ;;  %v3148_v3 = vpop.f32.mrb[53].mxu1 }
0x17ee   :  { %v3149_v5 = vadd.f32 %v3148_v3, %v3066_v52  ;;  %v3150_v6 = vpop.f32.mrb[54].mxu1  ;;  %v4560_v3 = vld [vmem:[%s5924_s9 + $0x60] ss:$20 sps:$4 sm:$0xff]  }
0x17ef   :  { %v4093_v63 = vmul.f32 -1.702, %v3147_v2  ;;  %v3151_v7 = vadd.f32 %v3150_v6, %v3062_v61  ;;  %v3152_v8 = vpop.f32.mrb[55].mxu1 }
0x17f0   :  { %v4094_v0 = vmul.f32 -1.702, %v3149_v5  ;;  %v3153_v10 = vadd.f32 %v3152_v8, %v3066_v52 }
0x17f1   :  { %v3163_v14 = vmul.f32 1.442695, %v4093_v63  ;;  %v4095_v15 = vmul.f32 -1.702, %v3151_v7 }
0x17f2   :  { %v3165_v13 = vmul.f32 1.442695, %v4094_v0  ;;  %v4096_v16 = vmul.f32 -1.702, %v3153_v10 }
0x17f3   :  { %4662 = vpow2.f32 %v3163_v14  ;;  %v3167_v23 = vmul.f32 1.442695, %v4095_v15  ;;  %v3362_v15 = vld [vmem:[%s5922_s6 + $0x4] ss:$0 sm:$0xff] }
0x17f4   :  { %4664 = vpow2.f32 %v3165_v13  ;;  %v3169_v26 = vmul.f32 1.442695, %v4096_v16 }
0x17f5   :  { %4666 = vpow2.f32 %v3167_v23 }
0x17f6   :  { %4668 = vpow2.f32 %v3169_v26 }
0x17fd   :  { %v4663_v25 = vpop.eup %4662 }
0x17fe   :  { %v4665_v19 = vpop.eup %4664  ;;  %v3171_v33 = vadd.f32 1.0, %v4663_v25  ;;  %v3363_v25 = vld [vmem:[%s5922_s6 + $0x5] ss:$0 sm:$0xff] }
0x17ff   :  { %v4667_v12 = vpop.eup %4666  ;;  %v3172_v31 = vadd.f32 1.0, %v4665_v19 }
0x1800   :  { %v4669_v60 = vpop.eup %4668  ;;  %4670 = vrcp.f32 %v3171_v33  ;;  %v3173_v17 = vadd.f32 1.0, %v4667_v12 }
0x1801   :  { %4672 = vrcp.f32 %v3172_v31  ;;  %v3174_v38 = vadd.f32 1.0, %v4669_v60  ;;  %v3403_v60 = vld [vmem:[%s5922_s6 + $0x60] ss:$0 sm:$0xff] }
0x1802   :  { %4674 = vrcp.f32 %v3173_v17 }
0x1803   :  { %4676 = vrcp.f32 %v3174_v38 }
0x180a   :  { %v4671_v39 = vpop.eup %4670 }
0x180b   :  { %v4673_v40 = vpop.eup %4672  ;;  %v3183_v46 = vmul.f32 %v4671_v39, %v3147_v2  ;;  %v4559_v2 = vld [vmem:[%s5924_s9 + $0x38] ss:$20 sps:$4 sm:$0xff]  }
0x180c   :  { %v4675_v43 = vpop.eup %4674  ;;  %v3184_v36 = vmul.f32 %v4673_v40, %v3149_v5  ;;  %v4561_v5 = vld [vmem:[%s5924_s9 + $0x88] ss:$20 sps:$4 sm:$0xff]  }
0x180d   :  { %v4677_v44 = vpop.eup %4676  ;;  %v3185_v11 = vmul.f32 %v4675_v43, %v3151_v7 }
0x180e   :  { %v3186_v37 = vmul.f32 %v4677_v44, %v3153_v10 }
0x180f   :  { %v3220_v24 = vpack.c.bf16 %v3185_v11, %v3183_v46 }
0x1810   :  { %v3221_v27 = vpack.c.bf16 %v3186_v37, %v3184_v36 }
0x1812   :  { %3351 = vmatprep.mubr.bf16.mxu0 %v3221_v27 }
0x1813   :  { %3352 = vmatmul.mubr.bf16.vlgmr.msra.gmra.mrb[44].mxu0 %v3220_v24 }
0x1814   :  { %3718 = vmatprep.mubr.bf16.mxu0 %v4728_v21 }
0x18e6   :  { %v4270_v18 = vpop.f32.mrb[44].mxu0 }
0x18e7   :  { %v4271_v34 = vpop.f32.mrb[45].mxu0 }
0x18e8   :  { %v4272_v47 = vadd.f32 %v4271_v34, %v4270_v18  ;;  %v4273_v41 = vpop.f32.mrb[46].mxu0 }
0x18e9   :  { %v4274_v48 = vpop.f32.mrb[47].mxu0 }
0x18ea   :  { %v3354_v50 = vadd.f32 %v4272_v47, %v3222_v35  ;;  %v4275_v53 = vadd.f32 %v4274_v48, %v4273_v41 }
0x18ec   :  { %v3357_v54 = vadd.f32 %v4275_v53, %v3222_v35  ;;  %v3360_v51 = vadd.f32 %v3354_v50, %v5531_v32 }
0x18ee   :  { %v3364_v55 = vsel %vm53_vm0, %v3360_v51, 0.0  ;;  %v3361_v56 = vadd.f32 %v3357_v54, %v5534_v62  ;;  %v4558_v62 = vld [vmem:[%s5924_s9 + $0x10] ss:$20 sps:$4 sm:$0xff]  }
0x18ef   :  { %3365 = vadd.xlane.f32.xlu0 %v3364_v55  ;;  %4435 = vmatpush3.bf16.msra.mxu1 %v4558_v62  ;;  %v4570_v62 = vld [vmem:[%s5924_s9 + $0x2c] ss:$20 sps:$4 sm:$0xff]  }
0x18f0   :  { %v3367_v57 = vsel %vm53_vm0, %v3361_v56, 0.0  ;;  %4436 = vmatprep.subr.bf16.mxu1 %v4725_v28 }
0x18f1   :  { %3368 = vadd.xlane.f32.xlu1 %v3367_v57  ;;  %v130_v57 = vstv %s5925_s2 }
0x18f3   :  { %4437 = vmatpush3.bf16.msra.mxu1 %v4559_v2  ;;  %v4573_v2 = vld [vmem:[%s5924_s9 + $0x34] ss:$20 sps:$4 sm:$0xff]  }
0x18f4   :  { %4438 = vmatprep.subr.bf16.mxu1 %v4725_v28 }
0x18f7   :  { %4439 = vmatpush3.bf16.msra.mxu1 %v4560_v3  ;;  %v4568_v3 = vld [vmem:[%s5924_s9 + $0x28] ss:$20 sps:$4 sm:$0xff]  }
0x18f8   :  { %4440 = vmatprep.subr.bf16.mxu1 %v4725_v28 }
0x18fb   :  { %4441 = vmatpush3.bf16.msra.mxu1 %v4561_v5  ;;  %v4571_v5 = vld [vmem:[%s5924_s9 + $0x30] ss:$20 sps:$4 sm:$0xff]  }
0x197c   :  { %v3366_v58 = vpop.xlane.xlu0 %3365 }
0x197d   :  { %v3370_v42 = vmul.f32 0.015625, %v3366_v58 }
0x197e   :  { %v3369_v4 = vpop.xlane.xlu1 %3368 }
0x197f   :  { %v3372_v1 = vsub.f32 %v3360_v51, %v3370_v42  ;;  %v3371_v45 = vmul.f32 0.015625, %v3369_v4  ;;  %v5673_v4 = vmul.f32 %v130_v57, %v5094_v9  ;;  %v4567_v9 = vld [vmem:[%s5924_s9 + $0xc] ss:$20 sps:$4 sm:$0xff]  }
0x1980   :  { %3686 = vmatprep.subr.bf16.mxu0 %v4567_v9 }
0x1981   :  { %v3373_v59 = vsub.f32 %v3361_v56, %v3371_v45  ;;  %v3374_v61 = vmul.f32 %v3372_v1, %v3372_v1 }
0x1983   :  { %v3376_v52 = vsel %vm53_vm0, %v3374_v61, 0.0  ;;  %v3375_v49 = vmul.f32 %v3373_v59, %v3373_v59  ;;  %v5679_v61 = vsel %vm137_vm8, %v5673_v4, -inf }
0x1984   :  { %3377 = vadd.xlane.f32.xlu0 %v3376_v52  ;;  %v4564_v52 = vld [vmem:[%s5924_s9 + $0x4] ss:$20 sps:$4 sm:$0xff]  }
0x1985   :  { %v3379_v32 = vsel %vm53_vm0, %v3375_v49, 0.0  ;;  %v4562_v49 = vld [vmem:[%s5924_s9] ss:$20 sps:$4 sm:$0xff]   ;;  %3643 = vmatprep.subr.bf16.mxu1 %v4564_v52 }
0x1986   :  { %3380 = vadd.xlane.f32.xlu1 %v3379_v32  ;;  %v4565_v32 = vld [vmem:[%s5924_s9 + $0x8] ss:$20 sps:$4 sm:$0xff]  }
0x1987   :  { %3687 = vmatpush1.bf16.msra.mxu0 %v4565_v32 }
0x1988   :  { %3688 = vmatprep.subr.bf16.mxu0 %v4573_v2 }
0x198b   :  { %3689 = vmatpush1.bf16.msra.mxu0 %v4571_v5 }
0x1a11   :  { %v3378_v6 = vpop.xlane.xlu0 %3377 }
0x1a12   :  { %v3382_v63 = vmul.f32 0.015625, %v3378_v6  ;;  %v4576_v6 = vld [vmem:[%s5924_s9 + $0x54] ss:$20 sps:$4 sm:$0xff]  }
0x1a13   :  { %v3381_v7 = vpop.xlane.xlu1 %3380 }
0x1a14   :  { %v3384_v8 = vadd.f32 1e-05, %v3382_v63  ;;  %v3383_v0 = vmul.f32 0.015625, %v3381_v7  ;;  %v4574_v63 = vld [vmem:[%s5924_s9 + $0x50] ss:$20 sps:$4 sm:$0xff]  }
0x1a15   :  { %v4577_v7 = vld [vmem:[%s5924_s9 + $0x58] ss:$20 sps:$4 sm:$0xff]  }
0x1a16   :  { %4678 = vrsqrt.f32 %v3384_v8  ;;  %v3385_v10 = vadd.f32 1e-05, %v3383_v0  ;;  %v4579_v8 = vld [vmem:[%s5924_s9 + $0x5c] ss:$20 sps:$4 sm:$0xff]  }
0x1a17   :  { %v4582_v0 = vld [vmem:[%s5924_s9 + $0x7c] ss:$20 sps:$4 sm:$0xff]   ;;  %3690 = vmatprep.subr.bf16.mxu0 %v4579_v8 }
0x1a18   :  { %4680 = vrsqrt.f32 %v3385_v10  ;;  %v4585_v10 = vld [vmem:[%s5924_s9 + $0x84] ss:$20 sps:$4 sm:$0xff]   ;;  %3691 = vmatpush1.bf16.msra.mxu0 %v4577_v7 }
0x1a19   :  { %3692 = vmatprep.subr.bf16.mxu0 %v4585_v10 }
0x1a20   :  { %v4679_v14 = vpop.eup %4678 }
0x1a21   :  { %v3388_v13 = vmul.f32 %v4679_v14, %v3372_v1  ;;  %v4580_v14 = vld [vmem:[%s5924_s9 + $0x78] ss:$20 sps:$4 sm:$0xff]  }
0x1a22   :  { %v4681_v16 = vpop.eup %4680 }
0x1a23   :  { %v3390_v23 = vmul.f32 %v3388_v13, %v3362_v15  ;;  %v3389_v26 = vmul.f32 %v4681_v16, %v3373_v59 }
0x1a25   :  { %v3391_v19 = vmul.f32 %v3389_v26, %v3362_v15  ;;  %v3392_v33 = vadd.f32 %v3390_v23, %v3363_v25  ;;  %v4583_v15 = vld [vmem:[%s5924_s9 + $0x80] ss:$20 sps:$4 sm:$0xff]  }
0x1a26   :  { %3693 = vmatpush1.bf16.msra.mxu0 %v4583_v15 }
0x1a27   :  { %v3393_v12 = vadd.f32 %v3391_v19, %v3363_v25 }
0x1a29   :  { %v3402_v31 = vpack.c.bf16 %v3393_v12, %v3392_v33  ;;  %v3488_v12 = vld [vmem:[%s5922_s6 + $0x61] ss:$0 sm:$0xff] }
0x1a2b   :  { %4443 = vmatmul.mubr.msk.bf16.vlgmr.msra.gmra.mrb[56].mxu1 %vm53_vm0, %v3402_v31 }
0x1a2c   :  { %3675 = vmatprep.mubr.bf16.mxu1 %v4728_v21  ;;  %3644 = vmatpush1.bf16.msra.mxu1 %v4562_v49 }
0x1a2d   :  { %3645 = vmatprep.subr.bf16.mxu1 %v4570_v62 }
0x1a30   :  { %3646 = vmatpush1.bf16.msra.mxu1 %v4568_v3 }
0x1a31   :  { %3647 = vmatprep.subr.bf16.mxu1 %v4576_v6  ;;  %v150_v6 = vrot.slane %v5679_v61, 4 }
0x1a34   :  { %3648 = vmatpush1.bf16.msra.mxu1 %v4574_v63  ;;  %v151_v63 = vmax.f32 %v5679_v61, %v150_v6 }
0x1a35   :  { %3649 = vmatprep.subr.bf16.mxu1 %v4582_v0 }
0x1a36   :  { %v152_v7 = vrot.slane %v151_v63, 2 }
0x1a38   :  { %3650 = vmatpush1.bf16.msra.mxu1 %v4580_v14  ;;  %v153_v8 = vmax.f32 %v151_v63, %v152_v7  ;;  %v5779_v14 = vand.u32 127, %v132_v22 }
0x1a3a   :  { %v154_v0 = vrot.slane %v153_v8, 1  ;;  %vm136_vm7 = vcmp.eq.s32.totalorder %v4971_v29, %v5779_v14 }
0x1a3c   :  { %v5776_v10 = vmax.f32 %v153_v8, %v154_v0 }
0x1a3e   :  { %v156_v15 = vsub.f32 %v5673_v4, %v5776_v10 }
0x1afe   :  { %v3465_v17 = vpop.f32.mrb[56].mxu1 }
0x1aff   :  { %v3466_v38 = vadd.f32 %v3465_v17, %v3403_v60  ;;  %v4444_v39 = vpop.f32.mrb[57].mxu1 }
0x1b00   :  { %v3468_v40 = vpop.f32.mrb[58].mxu1  ;;  %v3489_v39 = vld [vmem:[%s5922_s6 + $0x62] ss:$0 sm:$0xff] }
0x1b01   :  { %v4150_v43 = vmul.f32 -1.702, %v3466_v38  ;;  %v3469_v44 = vadd.f32 %v3468_v40, %v3403_v60  ;;  %v4445_v46 = vpop.f32.mrb[59].mxu1 }
0x1b03   :  { %v3476_v11 = vmul.f32 1.442695, %v4150_v43  ;;  %v4151_v36 = vmul.f32 -1.702, %v3469_v44 }
0x1b05   :  { %4682 = vpow2.f32 %v3476_v11  ;;  %v3478_v37 = vmul.f32 1.442695, %v4151_v36 }
0x1b07   :  { %4684 = vpow2.f32 %v3478_v37  ;;  %v3550_v37 = vsub.s32 2, %v4971_v29 }
0x1b0f   :  { %v4683_v24 = vpop.eup %4682 }
0x1b10   :  { %v3480_v27 = vadd.f32 1.0, %v4683_v24 }
0x1b11   :  { %v4685_v18 = vpop.eup %4684 }
0x1b12   :  { %4686 = vrcp.f32 %v3480_v27  ;;  %v3481_v21 = vadd.f32 1.0, %v4685_v18  ;;  %v4152_v27 = vld [vmem:[%s5922_s6 + $0x63] ss:$8 sm:$0xf]  ;;  %v3554_v18 = vsub.s32 3, %v4971_v29 }
0x1b14   :  { %4688 = vrcp.f32 %v3481_v21  ;;  %v3543_v21 = vrot.slane %v4152_v27, %v4978_v30 }
0x1b1c   :  { %v4687_v35 = vpop.eup %4686 }
0x1b1d   :  { %v3486_v34 = vmul.f32 %v4687_v35, %v3466_v38  ;;  %v3551_v35 = vrot.slane %v4152_v27, %v3550_v37 }
0x1b1e   :  { %v4689_v47 = vpop.eup %4688 }
0x1b1f   :  { %v3490_v41 = vsel %vm53_vm0, %v3486_v34, 0.0  ;;  %v3487_v48 = vmul.f32 %v4689_v47, %v3469_v44  ;;  %v3555_v47 = vrot.slane %v4152_v27, %v3554_v18 }
0x1b20   :  { %3491 = vadd.xlane.f32.xlu0 %v3490_v41 }
0x1b21   :  { %v3493_v50 = vsel %vm53_vm0, %v3487_v48, 0.0 }
0x1b22   :  { %3494 = vadd.xlane.f32.xlu1 %v3493_v50 }
0x1bad   :  { %v3492_v53 = vpop.xlane.xlu0 %3491 }
0x1bae   :  { %v3496_v54 = vmul.f32 0.015625, %v3492_v53 }
0x1baf   :  { %v3495_v51 = vpop.xlane.xlu1 %3494 }
0x1bb0   :  { %v3498_v55 = vsub.f32 %v3486_v34, %v3496_v54  ;;  %v3497_v56 = vmul.f32 0.015625, %v3495_v51  ;;  %v3547_v34 = vrot.slane %v4152_v27, %v4981_v20 }
0x1bb2   :  { %v3499_v58 = vsub.f32 %v3487_v48, %v3497_v56  ;;  %v3500_v42 = vmul.f32 %v3498_v55, %v3498_v55 }
0x1bb4   :  { %v3502_v1 = vsel %vm53_vm0, %v3500_v42, 0.0  ;;  %v3501_v45 = vmul.f32 %v3499_v58, %v3499_v58 }
0x1bb5   :  { %3503 = vadd.xlane.f32.xlu0 %v3502_v1 }
0x1bb6   :  { %v3505_v59 = vsel %vm53_vm0, %v3501_v45, 0.0 }
0x1bb7   :  { %3506 = vadd.xlane.f32.xlu1 %v3505_v59 }
0x1bb9   :  { %139 = vmax.xlane.f32.xlu0 %v5679_v61 }
0x1c42   :  { %v3504_v13 = vpop.xlane.xlu0 %3503 }
0x1c43   :  { %v3508_v16 = vmul.f32 0.015625, %v3504_v13  ;;  %v5784_v13 = vadd.s32 128, %v5779_v14 }
0x1c44   :  { %v3507_v23 = vpop.xlane.xlu1 %3506 }
0x1c45   :  { %v3510_v26 = vadd.f32 1e-05, %v3508_v16  ;;  %v3509_v25 = vmul.f32 0.015625, %v3507_v23  ;;  %v5787_v16 = vadd.s32 256, %v5779_v14  ;;  %v5790_v23 = vadd.s32 384, %v5779_v14 }
0x1c46   :  { %v5738_v11 = vpop.xlane.xlu0 %139 }
0x1c47   :  { %4690 = vrsqrt.f32 %v3510_v26  ;;  %v3511_v19 = vadd.f32 1e-05, %v3509_v25  ;;  %v141_v36 = vsub.f32 %v5673_v4, %v5738_v11  ;;  %v157_v26 = vmul.f32 1.442695, %v156_v15 }
0x1c49   :  { %4692 = vrsqrt.f32 %v3511_v19  ;;  %v142_v24 = vmul.f32 1.442695, %v141_v36 }
0x1c4b   :  { %4694 = vpow2.f32 %v142_v24 }
0x1c4c   :  { %4696 = vpow2.f32 %v157_v26 }
0x1c51   :  { %v4691_v33 = vpop.eup %4690 }
0x1c52   :  { %v3514_v31 = vmul.f32 %v4691_v33, %v3498_v55 }
0x1c53   :  { %v4693_v60 = vpop.eup %4692 }
0x1c54   :  { %v3516_v17 = vmul.f32 %v3514_v31, %v3488_v12  ;;  %v3515_v38 = vmul.f32 %v4693_v60, %v3499_v58 }
0x1c55   :  { %v4695_v2 = vpop.eup %4694 }
0x1c56   :  { %v3517_v40 = vmul.f32 %v3515_v38, %v3488_v12  ;;  %v3518_v43 = vadd.f32 %v3516_v17, %v3489_v39  ;;  %v144_v5 = vsel %vm137_vm8, %v4695_v2, 0.0 }
0x1c58   :  { %v3519_v44 = vadd.f32 %v3517_v40, %v3489_v39 }
0x1c5a   :  { %v3536_v46 = vpack.c.bf16 %v3519_v44, %v3518_v43 }
0x1c5c   :  { %4169 = vmatmul.mubr.msk.bf16.vlgmr.msra.gmra.mrb[60].mxu1 %vm53_vm0, %v3536_v46  ;;  %4170 = vmatmul.mubr.msk.bf16.vlgmr.msra.gmra.mrb[48].mxu0 %vm53_vm0, %v3536_v46 }
0x1d2f   :  { %v3677_v41 = vpop.f32.mrb[60].mxu1  ;;  %v3720_v48 = vpop.f32.mrb[48].mxu0 }
0x1d30   :  { %v5749_v50 = vadd.f32 %v3677_v41, %v3543_v21  ;;  %v5751_v53 = vadd.f32 %v3720_v48, %v3551_v35  ;;  %v3679_v54 = vpop.f32.mrb[61].mxu1  ;;  %v3722_v51 = vpop.f32.mrb[49].mxu0 }
0x1d31   :  { %v5753_v55 = vadd.f32 %v3679_v54, %v3547_v34  ;;  %v5755_v56 = vadd.f32 %v3722_v51, %v3555_v47  ;;  %v3681_v57 = vpop.f32.mrb[62].mxu1  ;;  %v3724_v58 = vpop.f32.mrb[50].mxu0  ;;  %v5842_v54 = vld [vmem:[%s5926_s5] sm:$0xff] }
0x1d32   :  { %v5757_v30 = vadd.f32 %v3681_v57, %v3543_v21  ;;  %v5759_v42 = vadd.f32 %v3724_v58, %v3551_v35  ;;  %v3683_v20 = vpop.f32.mrb[63].mxu1  ;;  %v3726_v1 = vpop.f32.mrb[51].mxu0  ;;  %v3731_v45 = vmax.f32 %v5749_v50, %v5751_v53 }
0x1d33   :  { %v5763_v59 = vadd.f32 %v3683_v20, %v3547_v34  ;;  %v5765_v52 = vadd.f32 %v3726_v1, %v3555_v47  ;;  %v3732_v9 = vmax.f32 %v5753_v55, %v5755_v56  ;;  %v4697_v21 = vpop.eup %4696  ;;  %v5836_v47 = vld [vmem:[%s5926_s5 + $0x8] sm:$0xff]  ;;  %v169_v1 = vsel %vm136_vm7, %v5673_v4, 0.0 }
0x1d34   :  { %v3736_v49 = vmax.f32 %v5757_v30, %v5759_v42  ;;  %v159_v35 = vsel %vm137_vm8, %v4697_v21, 0.0 }
0x1d35   :  { %v3733_v32 = vmax.f32 %v3731_v45, %v3732_v9  ;;  %v3737_v62 = vmax.f32 %v5763_v59, %v5765_v52  ;;  %v160_v34 = vrot.slane %v159_v35, 4 }
0x1d37   :  { %3734 = vmax.xlane.f32.xlu1 %v3733_v32  ;;  %v3738_v3 = vmax.f32 %v3736_v49, %v3737_v62  ;;  %v161_v41 = vadd.f32 %v160_v34, %v159_v35  ;;  %v170_v32 = vsel %vm137_vm8, %v169_v1, 0.0  ;;  %vm195_vm8 = vcmask 8192  }
0x1d38   :  { %v173_v6 = vrot.slane %v170_v32, 4 }
0x1d39   :  { %3739 = vmax.xlane.f32.xlu0 %v3738_v3  ;;  %v162_v48 = vrot.slane %v161_v41, 2 }
0x1d3a   :  { %v174_v8 = vadd.f32 %v173_v6, %v170_v32 }
0x1d3b   :  { %145 = vadd.xlane.f32.xlu1 %v144_v5  ;;  %v163_v57 = vadd.f32 %v162_v48, %v161_v41 }
0x1d3d   :  { %v164_v49 = vrot.slane %v163_v57, 1 }
0x1d3f   :  { %v165_v5 = vadd.f32 %v164_v49, %v163_v57 }
0x1dc4   :  { %v5792_v61 = vpop.xlane.xlu1 %3734 }
0x1dc5   :  { %vm3856_vm9 = vcmp.eq.f32.partialorder %v5749_v50, %v5792_v61  ;;  %vm3857_vm10 = vcmp.eq.f32.partialorder %v5753_v55, %v5792_v61  ;;  %vm3858_vm11 = vcmp.eq.f32.partialorder %v5751_v53, %v5792_v61  ;;  %vm3859_vm12 = vcmp.eq.f32.partialorder %v5755_v56, %v5792_v61 }
0x1dc6   :  { %v5802_v22 = vpop.xlane.xlu0 %3739  ;;  %v3864_v25 = vsel %vm3856_vm9, %v5779_v14, 512  ;;  %v3865_v19 = vsel %vm3857_vm10, %v5784_v13, 512  ;;  %v3866_v33 = vsel %vm3858_vm11, %v5787_v16, 512  ;;  %v3867_v12 = vsel %vm3859_vm12, %v5790_v23, 512 }
0x1dc7   :  { %vm3872_vm13 = vcmp.lt.s32.totalorder %v3864_v25, %v3866_v33  ;;  %vm3874_vm14 = vcmp.lt.s32.totalorder %v3865_v19, %v3867_v12  ;;  %vm3860_vm15 = vcmp.eq.f32.partialorder %v5757_v30, %v5802_v22  ;;  %vm3861_vm0 = vcmp.eq.f32.partialorder %v5763_v59, %v5802_v22 }
0x1dc8   :  { %v3873_v31 = vsel %vm3872_vm13, %v3864_v25, %v3866_v33  ;;  %v3875_v60 = vsel %vm3874_vm14, %v3865_v19, %v3867_v12  ;;  %vm3862_vm1 = vcmp.eq.f32.partialorder %v5759_v42, %v5802_v22  ;;  %vm3863_vm2 = vcmp.eq.f32.partialorder %v5765_v52, %v5802_v22 }
0x1dc9   :  { %vm3876_vm3 = vcmp.lt.s32.totalorder %v3873_v31, %v3875_v60  ;;  %v3868_v17 = vsel %vm3860_vm15, %v5779_v14, 512  ;;  %v3869_v38 = vsel %vm3861_vm0, %v5784_v13, 512  ;;  %v3870_v40 = vsel %vm3862_vm1, %v5787_v16, 512 }
0x1dca   :  { %v5818_v39 = vsel %vm3876_vm3, %v3873_v31, %v3875_v60  ;;  %v3871_v43 = vsel %vm3863_vm2, %v5790_v23, 512  ;;  %vm3892_vm4 = vcmp.lt.s32.totalorder %v3868_v17, %v3870_v40  ;;  %v3741_v51 = vsub.f32 %v5749_v50, %v5792_v61 }
0x1dcb   :  { %v3879_v44 = vshra.s32 %v5818_v39, 16  ;;  %vm3894_vm5 = vcmp.lt.s32.totalorder %v3869_v38, %v3871_v43  ;;  %v3893_v46 = vsel %vm3892_vm4, %v3868_v17, %v3870_v40  ;;  %v3742_v58 = vsub.f32 %v5753_v55, %v5792_v61 }
0x1dcc   :  { %v3895_v36 = vsel %vm3894_vm5, %v3869_v38, %v3871_v43  ;;  %v3745_v20 = vsub.f32 %v5757_v30, %v5802_v22  ;;  %v3746_v45 = vsub.f32 %v5763_v59, %v5802_v22  ;;  %v3749_v9 = vmul.f32 1.442695, %v3741_v51 }
0x1dcd   :  { %v5823_v37 = vcvt.s32.f32 %v3879_v44  ;;  %vm3896_vm6 = vcmp.lt.s32.totalorder %v3893_v46, %v3895_v36  ;;  %v3751_v29 = vmul.f32 1.442695, %v3742_v58  ;;  %v3743_v3 = vsub.f32 %v5751_v53, %v5792_v61 }
0x1dce   :  { %v5825_v24 = vsel %vm3896_vm6, %v3893_v46, %v3895_v36  ;;  %v3757_v62 = vmul.f32 1.442695, %v3745_v20  ;;  %v3759_v2 = vmul.f32 1.442695, %v3746_v45  ;;  %4698 = vpow2.f32 %v3749_v9  ;;  %v146_v45 = vpop.xlane.xlu1 %145 }
0x1dcf   :  { %3882 = vmin.xlane.f32.xlu1 %v5823_v37  ;;  %v3899_v27 = vshra.s32 %v5825_v24, 16  ;;  %4700 = vpow2.f32 %v3751_v29  ;;  %v3747_v4 = vsub.f32 %v5759_v42, %v5802_v22  ;;  %v3744_v63 = vsub.f32 %v5755_v56, %v5792_v61 }
0x1dd0   :  { %4702 = vpow2.f32 %v3757_v62  ;;  %v3753_v7 = vmul.f32 1.442695, %v3743_v3  ;;  %v3748_v0 = vsub.f32 %v5765_v52, %v5802_v22  ;;  %v175_v25 = vrot.slane %v174_v8, 2 }
0x1dd1   :  { %v5829_v18 = vcvt.s32.f32 %v3899_v27  ;;  %4704 = vpow2.f32 %v3759_v2  ;;  %v3761_v15 = vmul.f32 1.442695, %v3747_v4  ;;  %v3755_v26 = vmul.f32 1.442695, %v3744_v63 }
0x1dd2   :  { %4706 = vlog2.f32 %v165_v5  ;;  %v3763_v19 = vmul.f32 1.442695, %v3748_v0  ;;  %v176_v17 = vadd.f32 %v175_v25, %v174_v8  ;;  %v3878_v6 = vand.u32 65535, %v5818_v39 }
0x1dd3   :  { %3902 = vmin.xlane.f32.xlu0 %v5829_v18  ;;  %4708 = vpow2.f32 %v3753_v7  ;;  %vm3817_vm3 = vcmp.ne.s32.totalorder %v5836_v47, 0  ;;  %vm3816_vm4 = vcmp.ne.s32.totalorder %v5842_v54, 0  ;;  %vm3822_vm5 = vcmask 7168  }
0x1dd4   :  { %4710 = vpow2.f32 %v3761_v15  ;;  %v177_v46 = vrot.slane %v176_v17, 1  ;;  %vm180_vm6 = vcmask 1024  }
0x1dd5   :  { %4712 = vpow2.f32 %v3755_v26 }
0x1dd6   :  { %4714 = vpow2.f32 %v3763_v19  ;;  %v178_v41 = vadd.f32 %v177_v46, %v176_v17 }
0x1dd7   :  { %4716 = vlog2.f32 %v146_v45 }
0x1dd8   :  { %v4699_v33 = vpop.eup %4698 }
0x1dd9   :  { %v4701_v12 = vpop.eup %4700 }
0x1dda   :  { %v4703_v31 = vpop.eup %4702  ;;  %v3765_v40 = vadd.f32 %v4701_v12, %v4699_v33 }
0x1ddb   :  { %v4705_v60 = vpop.eup %4704 }
0x1ddc   :  { %v4707_v38 = vpop.eup %4706  ;;  %v3770_v43 = vadd.f32 %v4705_v60, %v4703_v31 }
0x1ddd   :  { %v167_v44 = vmul.f32 0.6931472, %v4707_v38  ;;  %v4709_v36 = vpop.eup %4708 }
0x1dde   :  { %v4711_v27 = vpop.eup %4710  ;;  %v3766_v21 = vadd.f32 %v4709_v36, %v3765_v40 }
0x1ddf   :  { %v3771_v35 = vadd.f32 %v4711_v27, %v3770_v43  ;;  %v168_v34 = vadd.f32 %v167_v44, %v5776_v10  ;;  %v4713_v48 = vpop.eup %4712 }
0x1de0   :  { %3788 = vperm.xlu1 %4465, %v5836_v47   ;;  %v4715_v51 = vpop.eup %4714  ;;  %v3767_v57 = vadd.f32 %v4713_v48, %v3766_v21 }
0x1de1   :  { %v3772_v58 = vadd.f32 %v4715_v51, %v3771_v35  ;;  %v194_v20 = vsub.f32 %v168_v34, %v178_v41 }
0x1de3   :  { %v196_v1 = vsel %vm195_vm8, %v194_v20, 0.0 }
0x1de9   :  { %3785 = vperm.xlu0 %4464, %v5842_v54  }
0x1e04   :  { %171 = vadd.xlane.f32.xlu1 %v170_v32 }
0x1e08   :  { %3768 = vadd.xlane.f32.xlu0 %v3767_v57  ;;  %3773 = vadd.xlane.f32.xlu1 %v3772_v58 }
0x1e0c   :  { %197 = vadd.xlane.f32.xlu0 %v196_v1 }
0x1e5c   :  { %v5866_v9 = vpop.xlane.xlu1 %3882 }
0x1e5d   :  { %vm3884_vm15 = vcmp.eq.f32.partialorder %v5823_v37, %v5866_v9  ;;  %v3889_v38 = vcvt.f32.s32 %v5866_v9 }
0x1e5f   :  { %v3890_v44 = vshll.u32 %v3889_v38, 16 }
0x1e60   :  { %v5868_v49 = vpop.xlane.xlu0 %3902  ;;  %v3789_v10 = vpop.permute.xlu1 %3788 }
0x1e61   :  { %vm3794_vm13 = vcmp.eq.s32.totalorder %v5779_v14, %v3789_v10  ;;  %vm3795_vm14 = vcmp.eq.s32.totalorder %v5784_v13, %v3789_v10  ;;  %vm3796_vm0 = vcmp.eq.s32.totalorder %v5787_v16, %v3789_v10  ;;  %vm3904_vm1 = vcmp.eq.f32.partialorder %v5829_v18, %v5868_v49 }
0x1e62   :  { %v3802_v7 = vsel %vm3794_vm13, %v5757_v30, 0.0  ;;  %vm3797_vm2 = vcmp.eq.s32.totalorder %v5790_v23, %v3789_v10  ;;  %v4172_v18 = vsel %vm3817_vm3, 1.0, %v4725_v28  ;;  %v3909_v46 = vcvt.f32.s32 %v5868_v49 }
0x1e63   :  { %v3805_v37 = vsel %vm3797_vm2, %v5765_v52, 0.0  ;;  %v3824_v25 = vsel %vm3822_vm5, %v4172_v18, 0.0 }
0x1e64   :  { %v3910_v41 = vshll.u32 %v3909_v46, 16 }
0x1e68   :  { %v3786_v29 = vpop.permute.xlu0 %3785 }
0x1e69   :  { %vm3790_vm9 = vcmp.eq.s32.totalorder %v5779_v14, %v3786_v29  ;;  %vm3791_vm10 = vcmp.eq.s32.totalorder %v5784_v13, %v3786_v29  ;;  %vm3792_vm11 = vcmp.eq.s32.totalorder %v5787_v16, %v3786_v29  ;;  %vm3793_vm12 = vcmp.eq.s32.totalorder %v5790_v23, %v3786_v29  ;;  %v4717_v16 = vpop.eup %4716 }
0x1e6a   :  { %v3798_v32 = vsel %vm3790_vm9, %v5749_v50, 0.0  ;;  %v3799_v62 = vsel %vm3791_vm10, %v5753_v55, 0.0  ;;  %v3800_v3 = vsel %vm3792_vm11, %v5751_v53, 0.0  ;;  %v3801_v4 = vsel %vm3793_vm12, %v5755_v56, 0.0 }
0x1e6b   :  { %v3806_v2 = vadd.f32 %v3799_v62, %v3798_v32  ;;  %v3803_v50 = vsel %vm3795_vm14, %v5763_v59, 0.0  ;;  %v3898_v53 = vand.u32 65535, %v5825_v24  ;;  %v3880_v55 = vcvt.s32.f32 %v3878_v6 }
0x1e6c   :  { %v3811_v13 = vadd.f32 %v3803_v50, %v3802_v7  ;;  %v3804_v56 = vsel %vm3796_vm0, %v5759_v42, 0.0  ;;  %v148_v0 = vmul.f32 0.6931472, %v4717_v16  ;;  %v4171_v42 = vsel %vm3816_vm4, 1.0, %v4725_v28 }
0x1e6d   :  { %v3807_v5 = vadd.f32 %v3806_v2, %v3800_v3  ;;  %v3885_v8 = vsel %vm3884_vm15, %v3880_v55, inf  ;;  %v3900_v30 = vcvt.s32.f32 %v3898_v53  ;;  %v3823_v52 = vsel %vm3822_vm5, %v4171_v42, 0.0 }
0x1e6e   :  { %v3812_v59 = vadd.f32 %v3811_v13, %v3804_v56  ;;  %v149_v23 = vadd.f32 %v148_v0, %v5738_v11  ;;  %v3825_v33 = vadd.f32 %v3824_v25, %v3823_v52  ;;  %vm3936_vm9 = vcmp.eq.s32.totalorder %v5779_v14, 0 }
0x1e6f   :  { %v3808_v63 = vadd.f32 %v3807_v5, %v3801_v4  ;;  %v3905_v39 = vsel %vm3904_vm1, %v3900_v30, inf  ;;  %vm3939_vm10 = vcmp.eq.s32.totalorder %v5779_v14, 1  ;;  %vm3943_vm11 = vcmp.eq.s32.totalorder %v5779_v14, 2 }
0x1e70   :  { %v3813_v24 = vadd.f32 %v3812_v59, %v3805_v37 }
0x1e71   :  { %3809 = vadd.xlane.f32.xlu1 %v3808_v63 }
0x1e75   :  { %3886 = vmin.xlane.f32.xlu1 %v3885_v8 }
0x1e79   :  { %3906 = vmin.xlane.f32.xlu1 %v3905_v39 }
0x1e7d   :  { %3814 = vadd.xlane.f32.xlu1 %v3813_v24 }
0x1e91   :  { %v172_v15 = vpop.xlane.xlu1 %171 }
0x1e92   :  { %v179_v26 = vsub.f32 %v149_v23, %v172_v15 }
0x1e94   :  { %v181_v19 = vsel %vm180_vm6, %v179_v26, 0.0 }
0x1e95   :  { %182 = vadd.xlane.f32.xlu1 %v181_v19  ;;  %v3769_v12 = vpop.xlane.xlu0 %3768  ;;  %v3774_v31 = vpop.xlane.xlu1 %3773 }
0x1e96   :  { %4718 = vlog2.f32 %v3769_v12 }
0x1e97   :  { %4720 = vlog2.f32 %v3774_v31 }
0x1e99   :  { %3826 = vadd.xlane.f32.xlu1 %v3825_v33  ;;  %v198_v5 = vpop.xlane.xlu0 %197 }
0x1e9a   :  { %v199_v6 = vrot.slane %v198_v5, 4 }
0x1ea0   :  { %v4719_v60 = vpop.eup %4718 }
0x1ea1   :  { %v3776_v11 = vmul.f32 0.6931472, %v4719_v60  ;;  %v4721_v40 = vpop.eup %4720 }
0x1ea2   :  { %v3778_v27 = vmul.f32 0.6931472, %v4721_v40 }
0x1ea3   :  { %v3779_v21 = vadd.f32 %v3776_v11, %v5792_v61 }
0x1ea4   :  { %v3780_v20 = vadd.f32 %v3778_v27, %v5802_v22 }
0x1efe   :  { %v3810_v17 = vpop.xlane.xlu1 %3809 }
0x1eff   :  { %v3836_v48 = vsub.f32 %v3779_v21, %v3810_v17 }
0x1f01   :  { %v3838_v45 = vmul.f32 %v4171_v42, %v3836_v48 }
0x1f02   :  { %v3887_v43 = vpop.xlane.xlu1 %3886 }
0x1f03   :  { %v3888_v36 = vcvt.f32.s32 %v3887_v43  ;;  %v3840_v32 = vsel %vm3822_vm5, %v3838_v45, 0.0 }
0x1f05   :  { %v3891_v35 = vadd.s32 %v3890_v44, %v3888_v36 }
0x1f06   :  { %v3907_v34 = vpop.xlane.xlu1 %3906 }
0x1f07   :  { %vm3912_vm7 = vcmp.eq.s32.totalorder %v3891_v35, %v5842_v54  ;;  %v3908_v51 = vcvt.f32.s32 %v3907_v34 }
0x1f08   :  { %v4173_v57 = vsel %vm3912_vm7, 1.0, %v4725_v28 }
0x1f09   :  { %v3911_v58 = vadd.s32 %v3910_v41, %v3908_v51  ;;  %v3918_v9 = vmul.f32 %v4173_v57, %v4171_v42 }
0x1f0a   :  { %v3815_v1 = vpop.xlane.xlu1 %3814 }
0x1f0b   :  { %vm3913_vm8 = vcmp.eq.s32.totalorder %v3911_v58, %v5836_v47  ;;  %v3837_v49 = vsub.f32 %v3780_v20, %v3815_v1  ;;  %v3920_v62 = vsel %vm3822_vm5, %v3918_v9, 0.0  ;;  %v200_v47 = vadd.f32 %v199_v6, %v198_v5 }
0x1f0c   :  { %v4174_v61 = vsel %vm3913_vm8, 1.0, %v4725_v28 }
0x1f0d   :  { %v3919_v29 = vmul.f32 %v4174_v61, %v4172_v18  ;;  %v3839_v10 = vmul.f32 %v4172_v18, %v3837_v49  ;;  %v201_v4 = vrot.slane %v200_v47, 2 }
0x1f0f   :  { %v3841_v54 = vsel %vm3822_vm5, %v3839_v10, 0.0  ;;  %v3921_v2 = vsel %vm3822_vm5, %v3919_v29, 0.0  ;;  %v202_v50 = vadd.f32 %v201_v4, %v200_v47 }
0x1f10   :  { %v3922_v3 = vadd.f32 %v3921_v2, %v3920_v62  ;;  %v3842_v22 = vadd.f32 %v3841_v54, %v3840_v32 }
0x1f11   :  { %v203_v30 = vrot.slane %v202_v50, 1 }
0x1f12   :  { %3923 = vadd.xlane.f32.xlu1 %v3922_v3  ;;  %3843 = vadd.xlane.f32.xlu0 %v3842_v22 }
0x1f13   :  { %v204_v16 = vadd.f32 %v203_v30, %v202_v50 }
0x1f22   :  { %v183_v63 = vpop.xlane.xlu1 %182 }
0x1f23   :  { %v184_v28 = vrot.slane %v183_v63, 4 }
0x1f25   :  { %v185_v7 = vadd.f32 %v184_v28, %v183_v63 }
0x1f26   :  { %v3827_v53 = vpop.xlane.xlu1 %3826 }
0x1f27   :  { %v186_v55 = vrot.slane %v185_v7, 2  ;;  %v3828_v13 = vrot.slane %v3827_v53, 4 }
0x1f29   :  { %v187_v8 = vadd.f32 %v186_v55, %v185_v7  ;;  %v3829_v56 = vadd.f32 %v3828_v13, %v3827_v53 }
0x1f2b   :  { %v188_v59 = vrot.slane %v187_v8, 1  ;;  %v3830_v39 = vrot.slane %v3829_v56, 2 }
0x1f2d   :  { %v189_v37 = vadd.f32 %v188_v59, %v187_v8  ;;  %v3831_v24 = vadd.f32 %v3830_v39, %v3829_v56 }
0x1f2f   :  { %4446 = vpush %v189_v37  ;;  %v3832_v0 = vrot.slane %v3831_v24, 1 }
0x1f30   :  { %4448 = vpush %v204_v16 }
0x1f31   :  { %v3833_v18 = vadd.f32 %v3832_v0, %v3831_v24 }
0x1f33   :  { %4450 = vpush %v3833_v18 }
0x1f60   :  { %s4447_s5 = spop %4446 }
0x1f61   :  { %s4449_s12 = spop %4448  ;;  %s193_s16 = smul.f32 0.5, %s4447_s5 }
0x1f62   :  { %s208_s17 = smul.f32 0.5, %s4449_s12 }
0x1f64   :  { %s4451_s13 = spop %4450  ;;  %s209_s18 = sadd.f32 %s208_s17, %s193_s16 }
0x1f65   :  { %s3835_s15 = smax.f32 %s4729_s14, %s4451_s13 }
0x1f66   :  { %v3852_v42 = vstv %s3835_s15  ;;  %s210_s19 = smul.f32 0.5, %s209_s18 }
0x1f67   :  { %4722 = vrcp.f32 %v3852_v42 }
0x1f68   :  { %v3937_v44 = vstv %s210_s19 }
0x1f69   :  { %v3938_v36 = vsel %vm3936_vm9, %v3937_v44, 0.0 }
0x1f71   :  { %v4723_v43 = vpop.eup %4722 }
0x1f9f   :  { %v3844_v23 = vpop.xlane.xlu0 %3843  ;;  %v3924_v15 = vpop.xlane.xlu1 %3923 }
0x1fa0   :  { %v3845_v26 = vrot.slane %v3844_v23, 4  ;;  %v3925_v52 = vrot.slane %v3924_v15, 4 }
0x1fa2   :  { %v3846_v25 = vadd.f32 %v3845_v26, %v3844_v23  ;;  %v3926_v19 = vadd.f32 %v3925_v52, %v3924_v15 }
0x1fa4   :  { %v3847_v33 = vrot.slane %v3846_v25, 2  ;;  %v3927_v12 = vrot.slane %v3926_v19, 2 }
0x1fa6   :  { %v3848_v31 = vadd.f32 %v3847_v33, %v3846_v25  ;;  %v3928_v60 = vadd.f32 %v3927_v12, %v3926_v19 }
0x1fa8   :  { %v3849_v17 = vrot.slane %v3848_v31, 1  ;;  %v3929_v38 = vrot.slane %v3928_v60, 1 }
0x1faa   :  { %v3850_v11 = vadd.f32 %v3849_v17, %v3848_v31  ;;  %v3930_v40 = vadd.f32 %v3929_v38, %v3928_v60 }
0x1fac   :  { %4452 = vpush %v3850_v11 }
0x1fad   :  { %4454 = vpush %v4723_v43 }
0x1fae   :  { %4456 = vpush %v3930_v40 }
0x1fdd   :  { %s4453_s20 = spop %4452 }
0x1fde   :  { %s4455_s21 = spop %4454 }
0x1fdf   :  { %s3855_s22 = smul.f32 %s4455_s21, %s4453_s20  ;;  %s4457_s7 = spop %4456 }
0x1fe0   :  { %s3935_s23 = smul.f32 %s4457_s7, %s4455_s21 }
0x1fe1   :  { %v3940_v46 = vstv %s3855_s22 }
0x1fe2   :  { %v3941_v27 = vsel %vm3939_vm10, %v3940_v46, 0.0  ;;  %v3944_v21 = vstv %s3935_s23 }
0x1fe3   :  { %v3942_v35 = vadd.f32 %v3941_v27, %v3938_v36  ;;  %v3945_v34 = vsel %vm3943_vm11, %v3944_v21, 0.0 }
0x1fe5   :  { %v3946_v41 = vadd.f32 %v3945_v34, %v3942_v35 }
0x1fe7   :  { %3947 = vst [vmem:[%s5927_s10] sm:$0x1] %v3946_v41 }

</bundles_post_ra>
